<compile_context>
chip_gen: v7x
topology: tpu7x:2x2x1
jax: 0.10.0
libtpu: 0.0.40
codegen_flags: <defaults>
</compile_context>

<pallas_src>
import jax
import jax.numpy as jnp
import numpy as np
from jax.experimental import pallas as pl
from jax.experimental.pallas import tpu as pltpu

C_IN = 440     # channels of x219 / x225 / x226
C_MID = 110    # squeeze channels
H = W = 7
HW = H * W
EPS = 1e-5


def _se_block_kernel(se_ref, x_ref, skip_ref,
                     w1_ref, b1_ref, w2_ref, b2_ref, w3_ref,
                     gamma_ref, beta_ref, out_ref):
    # --- squeeze-excite gate: 1x1 convs on a 1x1 spatial map == matrix-vector
    #     products, computed in column orientation (C on sublanes) so that no
    #     transpose is ever needed anywhere in the kernel. ---
    se = se_ref[...].astype(jnp.bfloat16)                                   # [C_in, 1]
    h = jnp.dot(w1_ref[...], se, preferred_element_type=jnp.float32)        # [C_mid, 1]
    h = jnp.maximum(h + b1_ref[...], 0.0)                                   # ReLU (f32)
    g = jnp.dot(w2_ref[...], h.astype(jnp.bfloat16),
                preferred_element_type=jnp.float32)                         # [C_in, 1]
    g = jax.nn.sigmoid(g + b2_ref[...])                                     # [C_in, 1] f32

    # --- gate * feature map (broadcast over the HW lane axis), then the 1x1 conv
    #     as a plain matmul in PyTorch-native layouts: [C_out,C_in] @ [C_in,HW]. ---
    y = (x_ref[...] * g).astype(jnp.bfloat16)                               # [C_in, HW]
    z = jnp.dot(w3_ref[...], y, preferred_element_type=jnp.float32)         # [C_out, HW] f32

    # --- BatchNorm2d, training-mode forward: batch stats over (N,H,W) per channel.
    #     Reuse (z - mean) for both variance and normalization. ---
    mean = jnp.mean(z, axis=1, keepdims=True)                               # [C_out, 1]
    zc = z - mean
    var = jnp.mean(zc * zc, axis=1, keepdims=True)                          # biased var (PyTorch fwd)
    zn = zc * jax.lax.rsqrt(var + EPS) * gamma_ref[...] + beta_ref[...]     # f32

    # --- residual add; output already in [C, HW] == flattened NCHW layout. ---
    out_ref[...] = skip_ref[...] + zn


def se_block(x226, x225, x219, params):
    """x226: [1,C,1,1], x225/x219: [1,C,H,W] NCHW f32. Returns [1,C,H,W] f32."""
    w1, b1, w2, b2, w3, gamma, beta = params

    # NCHW -> [C, HW] / [C, 1]: pure reshapes, no data movement, no extra XLA kernels.
    se = x226.reshape(C_IN, 1)
    x = x225.reshape(C_IN, HW)
    skip = x219.reshape(C_IN, HW)

    full = lambda shape: pl.BlockSpec(shape, lambda i: (0, 0))
    out = pl.pallas_call(
        _se_block_kernel,
        out_shape=jax.ShapeDtypeStruct((C_IN, HW), jnp.float32),
        grid=(1,),
        in_specs=[
            full((C_IN, 1)),          # se      (f32)
            full((C_IN, HW)),         # x225    (f32)
            full((C_IN, HW)),         # x219    (f32)
            full((C_MID, C_IN)),      # w1      (bf16, PyTorch [C_out, C_in])
            full((C_MID, 1)),         # b1      (f32)
            full((C_IN, C_MID)),      # w2      (bf16)
            full((C_IN, 1)),          # b2      (f32)
            full((C_IN, C_IN)),       # w3      (bf16)
            full((C_IN, 1)),          # gamma   (f32)
            full((C_IN, 1)),          # beta    (f32)
        ],
        out_specs=full((C_IN, HW)),
        compiler_params=pltpu.CompilerParams(
            dimension_semantics=("arbitrary",)),
    )(se, x, skip, w1, b1, w2, b2, w3, gamma, beta)

    # [C, HW] -> NCHW, also free.
    return out.reshape(1, C_IN, H, W)


def _reference(x226, x225, x219, params):
    """Pure-JAX f32 reference of the PyTorch forward (uses the same weight values)."""
    w1, b1, w2, b2, w3, gamma, beta = params
    w1 = w1.astype(jnp.float32)
    w2 = w2.astype(jnp.float32)
    w3 = w3.astype(jnp.float32)
    se = x226.reshape(C_IN, 1)
    h = jnp.maximum(w1 @ se + b1, 0.0)
    g = jax.nn.sigmoid(w2 @ h + b2)                                         # [C, 1]
    x = x225.reshape(C_IN, HW)
    z = w3 @ (x * g)                                                        # [C, HW]
    mean = jnp.mean(z, axis=1, keepdims=True)
    var = jnp.mean((z - mean) ** 2, axis=1, keepdims=True)
    zn = (z - mean) / jnp.sqrt(var + EPS) * gamma + beta
    out = x219.reshape(C_IN, HW) + zn
    return out.reshape(1, C_IN, H, W)


def make_params(key):
    k1, k2, k3 = jax.random.split(key, 3)
    # 1x1 conv weights kept in PyTorch-native [C_out, C_in] layout; bf16 for MXU/HBM.
    w1 = (jax.random.normal(k1, (C_MID, C_IN), jnp.float32) * 0.05).astype(jnp.bfloat16)
    b1 = jnp.linspace(-0.1, 0.1, C_MID, dtype=jnp.float32).reshape(C_MID, 1)
    w2 = (jax.random.normal(k2, (C_IN, C_MID), jnp.float32) * 0.05).astype(jnp.bfloat16)
    b2 = jnp.linspace(-0.1, 0.1, C_IN, dtype=jnp.float32).reshape(C_IN, 1)
    w3 = (jax.random.normal(k3, (C_IN, C_IN), jnp.float32) * 0.05).astype(jnp.bfloat16)
    # BatchNorm2d default affine init: weight=1, bias=0
    gamma = jnp.ones((C_IN, 1), jnp.float32)
    beta = jnp.zeros((C_IN, 1), jnp.float32)
    return (w1, b1, w2, b2, w3, gamma, beta)


if __name__ == "__main__":
    key = jax.random.PRNGKey(0)
    kp, kx1, kx2, kx3 = jax.random.split(key, 4)

    params = make_params(kp)
    x219 = jax.random.normal(kx1, (1, C_IN, H, W), jnp.float32)
    x225 = jax.random.normal(kx2, (1, C_IN, H, W), jnp.float32)
    x226 = jax.random.normal(kx3, (1, C_IN, 1, 1), jnp.float32)

    out = jax.jit(se_block)(x226, x225, x219, params)
    out = jax.block_until_ready(out)

    ref = _reference(x226, x225, x219, params)
    # bf16 activations/weights in the MXU dots -> tolerance looser than pure f32.
    np.testing.assert_allclose(np.asarray(out), np.asarray(ref), rtol=3e-2, atol=3e-2)

    print("KERNEL_OK")
</pallas_src>

<mosaic_0001>
module attributes {stable_mosaic.version = 11 : i64} {
  func.func @_se_block_kernel(%arg0: i32, %arg1: memref<440x1xf32, #tpu.memory_space<vmem>>, %arg2: memref<440x49xf32, #tpu.memory_space<vmem>>, %arg3: memref<440x49xf32, #tpu.memory_space<vmem>>, %arg4: memref<110x440xbf16, #tpu.memory_space<vmem>>, %arg5: memref<110x1xf32, #tpu.memory_space<vmem>>, %arg6: memref<440x110xbf16, #tpu.memory_space<vmem>>, %arg7: memref<440x1xf32, #tpu.memory_space<vmem>>, %arg8: memref<440x440xbf16, #tpu.memory_space<vmem>>, %arg9: memref<440x1xf32, #tpu.memory_space<vmem>>, %arg10: memref<440x1xf32, #tpu.memory_space<vmem>>, %arg11: memref<440x49xf32, #tpu.memory_space<vmem>>) attributes {dimension_semantics = [#tpu.dimension_semantics<arbitrary>], iteration_bounds = array<i64: 1>, scalar_prefetch = 0 : i64, scratch_operands = 0 : i64, tpu.core_type = #tpu.core_type<tc>, window_params = [{pipeline_mode = #tpu.pipeline_mode<synchronous>, transform_indices = @transform_0, window_bounds = array<i64: 440, 1>}, {pipeline_mode = #tpu.pipeline_mode<synchronous>, transform_indices = @transform_1, window_bounds = array<i64: 440, 49>}, {pipeline_mode = #tpu.pipeline_mode<synchronous>, transform_indices = @transform_2, window_bounds = array<i64: 440, 49>}, {pipeline_mode = #tpu.pipeline_mode<synchronous>, transform_indices = @transform_3, window_bounds = array<i64: 110, 440>}, {pipeline_mode = #tpu.pipeline_mode<synchronous>, transform_indices = @transform_4, window_bounds = array<i64: 110, 1>}, {pipeline_mode = #tpu.pipeline_mode<synchronous>, transform_indices = @transform_5, window_bounds = array<i64: 440, 110>}, {pipeline_mode = #tpu.pipeline_mode<synchronous>, transform_indices = @transform_6, window_bounds = array<i64: 440, 1>}, {pipeline_mode = #tpu.pipeline_mode<synchronous>, transform_indices = @transform_7, window_bounds = array<i64: 440, 440>}, {pipeline_mode = #tpu.pipeline_mode<synchronous>, transform_indices = @transform_8, window_bounds = array<i64: 440, 1>}, {pipeline_mode = #tpu.pipeline_mode<synchronous>, transform_indices = @transform_9, window_bounds = array<i64: 440, 1>}, {pipeline_mode = #tpu.pipeline_mode<synchronous>, transform_indices = @transform_10, window_bounds = array<i64: 440, 49>}]} {
    %c0 = arith.constant 0 : index
    %c0_0 = arith.constant 0 : index
    %0 = vector.load %arg1[%c0, %c0_0] : memref<440x1xf32, #tpu.memory_space<vmem>>, vector<440x1xf32>
    %1 = arith.truncf %0 : vector<440x1xf32> to vector<440x1xbf16>
    %c0_1 = arith.constant 0 : index
    %c0_2 = arith.constant 0 : index
    %2 = vector.load %arg4[%c0_1, %c0_2] : memref<110x440xbf16, #tpu.memory_space<vmem>>, vector<110x440xbf16>
    %cst = arith.constant dense<0.000000e+00> : vector<110x1xf32>
    %3 = tpu.matmul %2, %1, %cst {dimension_numbers = #tpu.dot_dimension_numbers<[1], [0], [0], [1], [0, 0, 1, 1], [], []>} : vector<110x440xbf16>, vector<440x1xbf16>, vector<110x1xf32> -> vector<110x1xf32>
    %c0_3 = arith.constant 0 : index
    %c0_4 = arith.constant 0 : index
    %4 = vector.load %arg5[%c0_3, %c0_4] : memref<110x1xf32, #tpu.memory_space<vmem>>, vector<110x1xf32>
    %5 = arith.addf %3, %4 : vector<110x1xf32>
    %cst_5 = arith.constant 0.000000e+00 : f32
    %6 = vector.broadcast %cst_5 : f32 to vector<110x1xf32>
    %7 = arith.maximumf %5, %6 : vector<110x1xf32>
    %c0_6 = arith.constant 0 : index
    %c0_7 = arith.constant 0 : index
    %8 = vector.load %arg6[%c0_6, %c0_7] : memref<440x110xbf16, #tpu.memory_space<vmem>>, vector<440x110xbf16>
    %9 = arith.truncf %7 : vector<110x1xf32> to vector<110x1xbf16>
    %cst_8 = arith.constant dense<0.000000e+00> : vector<440x1xf32>
    %10 = tpu.matmul %8, %9, %cst_8 {dimension_numbers = #tpu.dot_dimension_numbers<[1], [0], [0], [1], [0, 0, 1, 1], [], []>} : vector<440x110xbf16>, vector<110x1xbf16>, vector<440x1xf32> -> vector<440x1xf32>
    %c0_9 = arith.constant 0 : index
    %c0_10 = arith.constant 0 : index
    %11 = vector.load %arg7[%c0_9, %c0_10] : memref<440x1xf32, #tpu.memory_space<vmem>>, vector<440x1xf32>
    %12 = arith.addf %10, %11 : vector<440x1xf32>
    %13 = arith.negf %12 : vector<440x1xf32>
    %14 = math.exp %13 : vector<440x1xf32>
    %cst_11 = arith.constant 1.000000e+00 : f32
    %15 = vector.broadcast %cst_11 : f32 to vector<440x1xf32>
    %16 = arith.addf %15, %14 : vector<440x1xf32>
    %17 = arith.divf %15, %16 : vector<440x1xf32>
    %c0_12 = arith.constant 0 : index
    %c0_13 = arith.constant 0 : index
    %18 = vector.load %arg2[%c0_12, %c0_13] : memref<440x49xf32, #tpu.memory_space<vmem>>, vector<440x49xf32>
    %19 = vector.broadcast %17 : vector<440x1xf32> to vector<440x49xf32>
    %20 = arith.mulf %18, %19 : vector<440x49xf32>
    %21 = arith.truncf %20 : vector<440x49xf32> to vector<440x49xbf16>
    %c0_14 = arith.constant 0 : index
    %c0_15 = arith.constant 0 : index
    %22 = vector.load %arg8[%c0_14, %c0_15] : memref<440x440xbf16, #tpu.memory_space<vmem>>, vector<440x440xbf16>
    %cst_16 = arith.constant dense<0.000000e+00> : vector<440x49xf32>
    %23 = tpu.matmul %22, %21, %cst_16 {dimension_numbers = #tpu.dot_dimension_numbers<[1], [0], [0], [1], [0, 0, 1, 1], [], []>} : vector<440x440xbf16>, vector<440x49xbf16>, vector<440x49xf32> -> vector<440x49xf32>
    %cst_17 = arith.constant dense<0.000000e+00> : vector<440xf32>
    %24 = vector.multi_reduction <add>, %23, %cst_17 [1] : vector<440x49xf32> to vector<440xf32>
    %25 = vector.shape_cast %24 : vector<440xf32> to vector<440x1xf32>
    %cst_18 = arith.constant 4.900000e+01 : f32
    %26 = vector.broadcast %cst_18 : f32 to vector<440x1xf32>
    %27 = arith.divf %25, %26 : vector<440x1xf32>
    %28 = vector.broadcast %27 : vector<440x1xf32> to vector<440x49xf32>
    %29 = arith.subf %23, %28 : vector<440x49xf32>
    %30 = arith.mulf %29, %29 : vector<440x49xf32>
    %cst_19 = arith.constant dense<0.000000e+00> : vector<440xf32>
    %31 = vector.multi_reduction <add>, %30, %cst_19 [1] : vector<440x49xf32> to vector<440xf32>
    %32 = vector.shape_cast %31 : vector<440xf32> to vector<440x1xf32>
    %cst_20 = arith.constant 4.900000e+01 : f32
    %33 = vector.broadcast %cst_20 : f32 to vector<440x1xf32>
    %34 = arith.divf %32, %33 : vector<440x1xf32>
    %cst_21 = arith.constant 9.99999974E-6 : f32
    %35 = vector.broadcast %cst_21 : f32 to vector<440x1xf32>
    %36 = arith.addf %34, %35 : vector<440x1xf32>
    %37 = math.rsqrt %36 : vector<440x1xf32>
    %38 = vector.broadcast %37 : vector<440x1xf32> to vector<440x49xf32>
    %39 = arith.mulf %29, %38 : vector<440x49xf32>
    %c0_22 = arith.constant 0 : index
    %c0_23 = arith.constant 0 : index
    %40 = vector.load %arg9[%c0_22, %c0_23] : memref<440x1xf32, #tpu.memory_space<vmem>>, vector<440x1xf32>
    %41 = vector.broadcast %40 : vector<440x1xf32> to vector<440x49xf32>
    %42 = arith.mulf %39, %41 : vector<440x49xf32>
    %c0_24 = arith.constant 0 : index
    %c0_25 = arith.constant 0 : index
    %43 = vector.load %arg10[%c0_24, %c0_25] : memref<440x1xf32, #tpu.memory_space<vmem>>, vector<440x1xf32>
    %44 = vector.broadcast %43 : vector<440x1xf32> to vector<440x49xf32>
    %45 = arith.addf %42, %44 : vector<440x49xf32>
    %c0_26 = arith.constant 0 : index
    %c0_27 = arith.constant 0 : index
    %46 = vector.load %arg3[%c0_26, %c0_27] : memref<440x49xf32, #tpu.memory_space<vmem>>, vector<440x49xf32>
    %47 = arith.addf %46, %45 : vector<440x49xf32>
    %c0_28 = arith.constant 0 : index
    %c0_29 = arith.constant 0 : index
    %48 = vector.load %arg11[%c0_28, %c0_29] : memref<440x49xf32, #tpu.memory_space<vmem>>, vector<440x49xf32>
    tpu.vector_store %arg11[%c0_28, %c0_29], %47 {strides = array<i32>} : memref<440x49xf32, #tpu.memory_space<vmem>>, vector<440x49xf32>,
    return
  }
  func.func @transform_0(%arg0: i32) -> (i32, i32) {
    %c0_i32 = arith.constant 0 : i32
    %c0_i32_0 = arith.constant 0 : i32
    %c0_i32_1 = arith.constant 0 : i32
    return %c0_i32, %c0_i32_0 : i32, i32
  }
  func.func @transform_1(%arg0: i32) -> (i32, i32) {
    %c0_i32 = arith.constant 0 : i32
    %c0_i32_0 = arith.constant 0 : i32
    %c0_i32_1 = arith.constant 0 : i32
    return %c0_i32, %c0_i32_0 : i32, i32
  }
  func.func @transform_2(%arg0: i32) -> (i32, i32) {
    %c0_i32 = arith.constant 0 : i32
    %c0_i32_0 = arith.constant 0 : i32
    %c0_i32_1 = arith.constant 0 : i32
    return %c0_i32, %c0_i32_0 : i32, i32
  }
  func.func @transform_3(%arg0: i32) -> (i32, i32) {
    %c0_i32 = arith.constant 0 : i32
    %c0_i32_0 = arith.constant 0 : i32
    %c0_i32_1 = arith.constant 0 : i32
    return %c0_i32, %c0_i32_0 : i32, i32
  }
  func.func @transform_4(%arg0: i32) -> (i32, i32) {
    %c0_i32 = arith.constant 0 : i32
    %c0_i32_0 = arith.constant 0 : i32
    %c0_i32_1 = arith.constant 0 : i32
    return %c0_i32, %c0_i32_0 : i32, i32
  }
  func.func @transform_5(%arg0: i32) -> (i32, i32) {
    %c0_i32 = arith.constant 0 : i32
    %c0_i32_0 = arith.constant 0 : i32
    %c0_i32_1 = arith.constant 0 : i32
    return %c0_i32, %c0_i32_0 : i32, i32
  }
  func.func @transform_6(%arg0: i32) -> (i32, i32) {
    %c0_i32 = arith.constant 0 : i32
    %c0_i32_0 = arith.constant 0 : i32
    %c0_i32_1 = arith.constant 0 : i32
    return %c0_i32, %c0_i32_0 : i32, i32
  }
  func.func @transform_7(%arg0: i32) -> (i32, i32) {
    %c0_i32 = arith.constant 0 : i32
    %c0_i32_0 = arith.constant 0 : i32
    %c0_i32_1 = arith.constant 0 : i32
    return %c0_i32, %c0_i32_0 : i32, i32
  }
  func.func @transform_8(%arg0: i32) -> (i32, i32) {
    %c0_i32 = arith.constant 0 : i32
    %c0_i32_0 = arith.constant 0 : i32
    %c0_i32_1 = arith.constant 0 : i32
    return %c0_i32, %c0_i32_0 : i32, i32
  }
  func.func @transform_9(%arg0: i32) -> (i32, i32) {
    %c0_i32 = arith.constant 0 : i32
    %c0_i32_0 = arith.constant 0 : i32
    %c0_i32_1 = arith.constant 0 : i32
    return %c0_i32, %c0_i32_0 : i32, i32
  }
  func.func @transform_10(%arg0: i32) -> (i32, i32) {
    %c0_i32 = arith.constant 0 : i32
    %c0_i32_0 = arith.constant 0 : i32
    %c0_i32_1 = arith.constant 0 : i32
    return %c0_i32, %c0_i32_0 : i32, i32
  }
}

</mosaic_0001>

<bundles_post_ra>
// kernel: se_block.1
= control target key start
LH: loop header
LB: loop body
LE: loop exit
PB: predicated region body
PF: predicated region fallthrough
CT: control target
= control target key end

     0   :  { %v5865_v0 = vmov 0   ;;  %vm294_vm0 = vcmask 457728   ;;  %vm316_vm1 = vcmask 1043456   ;;  %vm767_vm2 = vcmask 900096   ;;  %s8855_s0 = inlined_call_operand.vmem [shape: f32[440,1], index: 0, kind: input, shape index: {}]   ;;  %s8856_s3 = inlined_call_operand.vmem [shape: bf16[110,440], index: 3, kind: input, shape index: {}]   ;;  %s8857_s5 = inlined_call_operand.vmem [shape: bf16[440,110], index: 5, kind: input, shape index: {}]   ;;  %s8858_s4 = inlined_call_operand.vmem [shape: f32[110,1], index: 4, kind: input, shape index: {}]   ;;  %s8859_s6 = inlined_call_operand.vmem [shape: f32[440,1], index: 6, kind: input, shape index: {}]   ;;  %s8860_s7 = inlined_call_operand.vmem [shape: bf16[440,440], index: 7, kind: input, shape index: {}]   ;;  %s8861_s8 = inlined_call_operand.vmem [shape: f32[440,1], index: 8, kind: input, shape index: {}]   ;;  %s8862_s1 = inlined_call_operand.vmem [shape: f32[440,49], index: 1, kind: input, shape index: {}]   ;;  %s8863_s9 = inlined_call_operand.vmem [shape: f32[440,1], index: 9, kind: input, shape index: {}]   ;;  %s8864_s2 = inlined_call_operand.vmem [shape: f32[440,49], index: 2, kind: input, shape index: {}]   ;;  %s8865_s10 = inlined_call_operand.vmem [shape: f32[440,49], index: 10, kind: output, shape index: {}]  }
   0x1   :  { %409 = vmatprep.subr.bf16.mxu1 %v5865_v0  ;;  %v68_v1 = vld [vmem:[%s8855_s0 + $0x100] sm:$0xff]  ;;  %v69_v2 = vld [vmem:[%s8855_s0 + $0x108] sm:$0xff]  ;;  %v70_v3 = vld [vmem:[%s8855_s0 + $0x110] sm:$0xff]  ;;  %5298 = vset.pattern.permute.xlu1 %v5865_v0  ;;  %vm852_vm3 = vcmask 1046528   ;;  %vm3090_vm4 = vcmask 400384  }
   0x2   :  { %v107_v4 = vpack.c.bf16 %v69_v2, %v68_v1  ;;  %v71_v5 = vld [vmem:[%s8855_s0 + $0x118] sm:$0xff]  ;;  %v52_v6 = vld [vmem:[%s8855_s0 + $0x80] sm:$0xff]  ;;  %v53_v7 = vld [vmem:[%s8855_s0 + $0x88] sm:$0xff]  ;;  %5297 = vset.pattern.permute.xlu0 %v5865_v0 }
   0x3   :  { %v99_v8 = vpack.c.bf16 %v53_v7, %v52_v6  ;;  %v36_v9 = vld [vmem:[%s8855_s0] sm:$0xff]  ;;  %v37_v10 = vld [vmem:[%s8855_s0 + $0x8] sm:$0xff]  ;;  %v108_v11 = vpack.c.bf16 %v71_v5, %v70_v3  ;;  %v54_v14 = vld [vmem:[%s8855_s0 + $0x90] sm:$0xff] }
   0x4   :  { %410 = vmatpush1.bf16.msra.mxu1 %v107_v4  ;;  %v91_v12 = vpack.c.bf16 %v37_v10, %v36_v9  ;;  %v72_v13 = vld [vmem:[%s8855_s0 + $0x120] sm:$0xff]  ;;  %v55_v15 = vld [vmem:[%s8855_s0 + $0x98] sm:$0xff]  ;;  %v73_v16 = vld [vmem:[%s8855_s0 + $0x128] sm:$0xff] }
   0x5   :  { %411 = vmatprep.subr.bf16.mxu1 %v5865_v0  ;;  %5032 = vmatprep.subr.bf16.mxu0 %v99_v8  ;;  %v100_v17 = vpack.c.bf16 %v55_v15, %v54_v14  ;;  %v38_v18 = vld [vmem:[%s8855_s0 + $0x10] sm:$0xff]  ;;  %v39_v19 = vld [vmem:[%s8855_s0 + $0x18] sm:$0xff]  ;;  %v56_v21 = vld [vmem:[%s8855_s0 + $0xa0] sm:$0xff]  ;;  %v109_v26 = vpack.c.bf16 %v73_v16, %v72_v13 }
   0x6   :  { %5033 = vmatpush3.bf16.msra.mxu0 %v91_v12  ;;  %v92_v20 = vpack.c.bf16 %v39_v19, %v38_v18  ;;  %v57_v22 = vld [vmem:[%s8855_s0 + $0xa8] sm:$0xff]  ;;  %v40_v24 = vld [vmem:[%s8855_s0 + $0x20] sm:$0xff]  ;;  %v58_v27 = vld [vmem:[%s8855_s0 + $0xb0] sm:$0xff] }
   0x7   :  { %5034 = vmatprep.subr.bf16.mxu0 %v100_v17  ;;  %v101_v23 = vpack.c.bf16 %v57_v22, %v56_v21  ;;  %v41_v25 = vld [vmem:[%s8855_s0 + $0x28] sm:$0xff]  ;;  %v59_v28 = vld [vmem:[%s8855_s0 + $0xb8] sm:$0xff]  ;;  %v74_v29 = vld [vmem:[%s8855_s0 + $0x130] sm:$0xff] }
   0x8   :  { %412 = vmatpush1.bf16.msra.mxu1 %v108_v11  ;;  %v75_v30 = vld [vmem:[%s8855_s0 + $0x138] sm:$0xff]  ;;  %v93_v31 = vpack.c.bf16 %v41_v25, %v40_v24  ;;  %v102_v32 = vpack.c.bf16 %v59_v28, %v58_v27  ;;  %v42_v33 = vld [vmem:[%s8855_s0 + $0x30] sm:$0xff]  ;;  %v60_v36 = vld [vmem:[%s8855_s0 + $0xc0] sm:$0xff] }
   0x9   :  { %413 = vmatprep.subr.bf16.mxu1 %v5865_v0  ;;  %v43_v34 = vld [vmem:[%s8855_s0 + $0x38] sm:$0xff]  ;;  %v110_v35 = vpack.c.bf16 %v75_v30, %v74_v29  ;;  %v61_v37 = vld [vmem:[%s8855_s0 + $0xc8] sm:$0xff]  ;;  %v76_v38 = vld [vmem:[%s8855_s0 + $0x140] sm:$0xff] }
   0xa   :  { %5035 = vmatpush3.bf16.msra.mxu0 %v92_v20  ;;  %v77_v39 = vld [vmem:[%s8855_s0 + $0x148] sm:$0xff]  ;;  %v94_v40 = vpack.c.bf16 %v43_v34, %v42_v33  ;;  %v103_v41 = vpack.c.bf16 %v61_v37, %v60_v36  ;;  %v44_v42 = vld [vmem:[%s8855_s0 + $0x40] sm:$0xff]  ;;  %v62_v45 = vld [vmem:[%s8855_s0 + $0xd0] sm:$0xff] }
   0xb   :  { %5036 = vmatprep.subr.bf16.mxu0 %v101_v23  ;;  %v45_v43 = vld [vmem:[%s8855_s0 + $0x48] sm:$0xff]  ;;  %v111_v44 = vpack.c.bf16 %v77_v39, %v76_v38  ;;  %v63_v46 = vld [vmem:[%s8855_s0 + $0xd8] sm:$0xff]  ;;  %v78_v47 = vld [vmem:[%s8855_s0 + $0x150] sm:$0xff] }
   0xc   :  { %414 = vmatpush1.bf16.msra.mxu1 %v109_v26  ;;  %v79_v48 = vld [vmem:[%s8855_s0 + $0x158] sm:$0xff]  ;;  %v95_v49 = vpack.c.bf16 %v45_v43, %v44_v42  ;;  %v80_v50 = vld [vmem:[%s8855_s0 + $0x160] sm:$0xff]  ;;  %v81_v51 = vld [vmem:[%s8855_s0 + $0x168] sm:$0xff]  ;;  %v104_v52 = vpack.c.bf16 %v63_v46, %v62_v45 }
   0xd   :  { %415 = vmatprep.subr.bf16.mxu1 %v5865_v0  ;;  %v46_v53 = vld [vmem:[%s8855_s0 + $0x50] sm:$0xff]  ;;  %v47_v54 = vld [vmem:[%s8855_s0 + $0x58] sm:$0xff]  ;;  %v112_v56 = vpack.c.bf16 %v79_v48, %v78_v47  ;;  %v64_v57 = vld [vmem:[%s8855_s0 + $0xe0] sm:$0xff]  ;;  %v113_v2 = vpack.c.bf16 %v81_v51, %v80_v50 }
   0xe   :  { %5037 = vmatpush3.bf16.msra.mxu0 %v93_v31  ;;  %v5301_v55 = vld [vmem:[%s8856_s3 + $0x4] ss:$16 sps:$4 sm:$0xff]   ;;  %v65_v58 = vld [vmem:[%s8855_s0 + $0xe8] sm:$0xff]  ;;  %v96_v60 = vpack.c.bf16 %v47_v54, %v46_v53  ;;  %v67_v3 = vld [vmem:[%s8855_s0 + $0xf8] sm:$0xff] }
   0xf   :  { %5038 = vmatprep.subr.bf16.mxu0 %v102_v32  ;;  %v48_v59 = vld [vmem:[%s8855_s0 + $0x60] sm:$0xff]  ;;  %352 = vmatprep.mubr.bf16.mxu0 %v5301_v55  ;;  %v49_v61 = vld [vmem:[%s8855_s0 + $0x68] sm:$0xff]  ;;  %v105_v63 = vpack.c.bf16 %v65_v58, %v64_v57  ;;  %v66_v1 = vld [vmem:[%s8855_s0 + $0xf0] sm:$0xff] }
  0x10   :  { %416 = vmatpush1.bf16.msra.mxu1 %v110_v35  ;;  %v5306_v62 = vld [vmem:[%s8856_s3 + $0xc] ss:$16 sps:$4 sm:$0xff]   ;;  %v82_v4 = vld [vmem:[%s8855_s0 + $0x170] sm:$0xff]  ;;  %v97_v6 = vpack.c.bf16 %v49_v61, %v48_v59  ;;  %v106_v8 = vpack.c.bf16 %v67_v3, %v66_v1  ;;  %v84_v11 = vld [vmem:[%s8855_s0 + $0x180] sm:$0xff] }
  0x11   :  { %417 = vmatprep.subr.bf16.mxu1 %v5865_v0  ;;  %4774 = vmatprep.mubr.msk.bf16.mxu1 %vm294_vm0, %v5306_v62  ;;  %v83_v5 = vld [vmem:[%s8855_s0 + $0x178] sm:$0xff]  ;;  %v50_v7 = vld [vmem:[%s8855_s0 + $0x70] sm:$0xff]  ;;  %v85_v12 = vld [vmem:[%s8855_s0 + $0x188] sm:$0xff] }
  0x12   :  { %5039 = vmatpush3.bf16.msra.mxu0 %v94_v40  ;;  %v51_v9 = vld [vmem:[%s8855_s0 + $0x78] sm:$0xff]  ;;  %v114_v10 = vpack.c.bf16 %v83_v5, %v82_v4  ;;  %v115_v14 = vpack.c.bf16 %v85_v12, %v84_v11  ;;  %v86_v15 = vld [vmem:[%s8855_s0 + $0x190] sm:$0xff]  ;;  %v88_v20 = vld [vmem:[%s8855_s0 + $0x1a0] sm:$0xff] }
  0x13   :  { %5040 = vmatprep.subr.bf16.mxu0 %v103_v41  ;;  %v98_v13 = vpack.c.bf16 %v51_v9, %v50_v7  ;;  %v87_v16 = vld [vmem:[%s8855_s0 + $0x198] sm:$0xff]  ;;  %v5299_v17 = vld [vmem:[%s8856_s3] ss:$16 sps:$4 sm:$0xff]   ;;  %v5302_v18 = vld [vmem:[%s8856_s3 + $0x24] ss:$16 sps:$4 sm:$0xff]  }
  0x14   :  { %418 = vmatpush1.bf16.msra.mxu1 %v111_v44  ;;  %v116_v19 = vpack.c.bf16 %v87_v16, %v86_v15  ;;  %v89_v21 = vld [vmem:[%s8855_s0 + $0x1a8] sm:$0xff]  ;;  %v90_v22 = vld [vmem:[%s8855_s0 + $0x1b0] sm:$0xff]  ;;  %v5341_v50 = vld [vmem:[%s8857_s5] sm:$0xff]  }
  0x15   :  { %419 = vmatprep.subr.bf16.mxu1 %v5865_v0  ;;  %v117_v23 = vpack.c.bf16 %v89_v21, %v88_v20  ;;  %v118_v24 = vpack.c.bf16 %v90_v22, %v90_v22  ;;  %v5307_v25 = vld [vmem:[%s8856_s3 + $0x20] ss:$16 sps:$4 sm:$0xff]   ;;  %v5308_v26 = vld [vmem:[%s8856_s3 + $0x44] ss:$16 sps:$4 sm:$0xff]   ;;  %v5304_v28 = vld [vmem:[%s8856_s3 + $0x8] ss:$16 sps:$4 sm:$0xff]  }
  0x16   :  { %5041 = vmatpush3.bf16.msra.mxu0 %v95_v49  ;;  %v5310_v29 = vld [vmem:[%s8856_s3 + $0x2c] ss:$16 sps:$4 sm:$0xff]   ;;  %v5312_v30 = vld [vmem:[%s8856_s3 + $0x40] ss:$16 sps:$4 sm:$0xff]   ;;  %v5314_v31 = vld [vmem:[%s8856_s3 + $0x64] ss:$16 sps:$4 sm:$0xff]  }
  0x17   :  { %5042 = vmatprep.subr.bf16.mxu0 %v104_v52  ;;  %v318_v27 = vsel %vm316_vm1, %v118_v24, 0  ;;  %v5313_v32 = vld [vmem:[%s8856_s3 + $0x28] ss:$16 sps:$4 sm:$0xff]   ;;  %v5316_v33 = vld [vmem:[%s8856_s3 + $0x4c] ss:$16 sps:$4 sm:$0xff]   ;;  %v147_v58 = vld [vmem:[%s8858_s4] sm:$0xff] }
  0x18   :  { %420 = vmatpush1.bf16.msra.mxu1 %v112_v56  ;;  %v5318_v34 = vld [vmem:[%s8856_s3 + $0x60] ss:$16 sps:$4 sm:$0xff]   ;;  %v5320_v35 = vld [vmem:[%s8856_s3 + $0x84] ss:$16 sps:$4 sm:$0xff]   ;;  %v5319_v36 = vld [vmem:[%s8856_s3 + $0x48] ss:$16 sps:$4 sm:$0xff]  }
  0x19   :  { %421 = vmatprep.subr.bf16.mxu1 %v5865_v0  ;;  %v5322_v37 = vld [vmem:[%s8856_s3 + $0x6c] ss:$16 sps:$4 sm:$0xff]   ;;  %v5324_v38 = vld [vmem:[%s8856_s3 + $0x80] ss:$16 sps:$4 sm:$0xff]   ;;  %v5326_v39 = vld [vmem:[%s8856_s3 + $0xa4] ss:$16 sps:$4 sm:$0xff]  }
  0x1a   :  { %5043 = vmatpush3.bf16.msra.mxu0 %v96_v60  ;;  %v5325_v40 = vld [vmem:[%s8856_s3 + $0x68] ss:$16 sps:$4 sm:$0xff]   ;;  %v5328_v41 = vld [vmem:[%s8856_s3 + $0x8c] ss:$16 sps:$4 sm:$0xff]   ;;  %v5330_v42 = vld [vmem:[%s8856_s3 + $0xa0] ss:$16 sps:$4 sm:$0xff]  }
  0x1b   :  { %5044 = vmatprep.subr.bf16.mxu0 %v105_v63  ;;  %v5332_v43 = vld [vmem:[%s8856_s3 + $0xc4] ss:$16 sps:$4 sm:$0x7f]   ;;  %v5331_v44 = vld [vmem:[%s8856_s3 + $0x88] ss:$16 sps:$4 sm:$0xff]  }
  0x1c   :  { %422 = vmatpush1.bf16.msra.mxu1 %v113_v2  ;;  %v5334_v45 = vld [vmem:[%s8856_s3 + $0xac] ss:$16 sps:$4 sm:$0xff]   ;;  %v5336_v46 = vld [vmem:[%s8856_s3 + $0xc0] ss:$16 sps:$4 sm:$0x7f]  }
  0x1d   :  { %423 = vmatprep.subr.bf16.mxu1 %v5865_v0  ;;  %v5337_v47 = vld [vmem:[%s8856_s3 + $0xa8] ss:$16 sps:$4 sm:$0xff]   ;;  %v5338_v48 = vld [vmem:[%s8856_s3 + $0xcc] ss:$16 sps:$4 sm:$0x7f]   ;;  %v149_v9 = vld [vmem:[%s8858_s4 + $0x10] sm:$0xff] }
  0x1e   :  { %5045 = vmatpush3.bf16.msra.mxu0 %v97_v6  ;;  %v5340_v49 = vld [vmem:[%s8856_s3 + $0xc8] ss:$16 sps:$4 sm:$0x7f]  }
  0x1f   :  { %5046 = vmatprep.subr.bf16.mxu0 %v106_v8  ;;  %v148_v1 = vld [vmem:[%s8858_s4 + $0x8] sm:$0xff] }
  0x20   :  { %424 = vmatpush1.bf16.msra.mxu1 %v114_v10 }
  0x21   :  { %425 = vmatprep.subr.bf16.mxu1 %v5865_v0 }
  0x22   :  { %5047 = vmatpush3.bf16.msra.mxu0 %v98_v13 }
  0x24   :  { %426 = vmatpush1.bf16.msra.mxu1 %v115_v14 }
  0x25   :  { %427 = vmatprep.subr.bf16.mxu1 %v5865_v0  ;;  %353 = vmatmul.mubr.bf16.vlgmr.msra.gmra.mrb[0].mxu0 %v5299_v17 }
  0x26   :  { %360 = vmatprep.mubr.bf16.mxu0 %v5302_v18 }
  0x28   :  { %428 = vmatpush1.bf16.msra.mxu1 %v116_v19  ;;  %v150_v19 = vld [vmem:[%s8858_s4 + $0x18] sm:$0xff] }
  0x29   :  { %429 = vmatprep.subr.bf16.mxu1 %v5865_v0 }
  0x2c   :  { %430 = vmatpush1.bf16.msra.mxu1 %v117_v23 }
  0x2d   :  { %431 = vmatprep.subr.bf16.mxu1 %v5865_v0  ;;  %361 = vmatmul.mubr.bf16.gmra.mrb[4].mxu0 %v5307_v25 }
  0x2e   :  { %368 = vmatprep.mubr.bf16.mxu0 %v5308_v26 }
  0x30   :  { %432 = vmatpush1.bf16.msra.mxu1 %v318_v27 }
  0x31   :  { %5195 = vmatprep.subr.bf16.mxu1 %v5865_v0 }
  0x33   :  { %442 = vmatmul.mubr.bf16.vlgmr.msra.gmra.mrb[0].mxu1 %v5304_v28  ;;  %v151_v28 = vld [vmem:[%s8858_s4 + $0x20] sm:$0xff] }
  0x34   :  { %4775 = vmatprep.mubr.msk.bf16.mxu1 %vm294_vm0, %v5310_v29 }
  0x35   :  { %369 = vmatmul.mubr.bf16.gmra.mrb[8].mxu0 %v5312_v30 }
  0x36   :  { %376 = vmatprep.mubr.bf16.mxu0 %v5314_v31 }
  0x3b   :  { %450 = vmatmul.mubr.bf16.gmra.mrb[4].mxu1 %v5313_v32 }
  0x3c   :  { %4776 = vmatprep.mubr.msk.bf16.mxu1 %vm294_vm0, %v5316_v33 }
  0x3d   :  { %377 = vmatmul.mubr.bf16.gmra.mrb[12].mxu0 %v5318_v34 }
  0x3e   :  { %384 = vmatprep.mubr.bf16.mxu0 %v5320_v35 }
  0x43   :  { %458 = vmatmul.mubr.bf16.gmra.mrb[8].mxu1 %v5319_v36 }
  0x44   :  { %4777 = vmatprep.mubr.msk.bf16.mxu1 %vm294_vm0, %v5322_v37 }
  0x45   :  { %385 = vmatmul.mubr.bf16.gmra.mrb[16].mxu0 %v5324_v38  ;;  %v152_v38 = vld [vmem:[%s8858_s4 + $0x28] sm:$0xff] }
  0x46   :  { %392 = vmatprep.mubr.bf16.mxu0 %v5326_v39 }
  0x4b   :  { %466 = vmatmul.mubr.bf16.gmra.mrb[12].mxu1 %v5325_v40 }
  0x4c   :  { %4778 = vmatprep.mubr.msk.bf16.mxu1 %vm294_vm0, %v5328_v41 }
  0x4d   :  { %393 = vmatmul.mubr.bf16.gmra.mrb[20].mxu0 %v5330_v42 }
  0x4e   :  { %400 = vmatprep.mubr.bf16.mxu0 %v5332_v43 }
  0x53   :  { %474 = vmatmul.mubr.bf16.gmra.mrb[16].mxu1 %v5331_v44 }
  0x54   :  { %4779 = vmatprep.mubr.msk.bf16.mxu1 %vm294_vm0, %v5334_v45 }
  0x55   :  { %401 = vmatmul.mubr.bf16.gmra.mrb[24].mxu0 %v5336_v46 }
  0x56   :  { %5139 = vmatprep.mubr.msk.bf16.mxu0 %vm767_vm2, %v5341_v50 }
  0x5b   :  { %482 = vmatmul.mubr.bf16.gmra.mrb[20].mxu1 %v5337_v47  ;;  %v153_v47 = vld [vmem:[%s8858_s4 + $0x30] sm:$0xff] }
  0x5c   :  { %4780 = vmatprep.mubr.msk.bf16.mxu1 %vm294_vm0, %v5338_v48 }
  0x63   :  { %490 = vmatmul.mubr.bf16.gmra.mrb[24].mxu1 %v5340_v49 }
  0xf8   :  { %v5048_v51 = vpop.f32.mrb[0].mxu0 }
  0xf9   :  { %v5049_v52 = vpop.f32.mrb[1].mxu0 }
  0xfa   :  { %v5050_v53 = vadd.f32 %v5049_v52, %v5048_v51  ;;  %v5051_v54 = vpop.f32.mrb[2].mxu0 }
  0xfb   :  { %v5052_v55 = vpop.f32.mrb[3].mxu0 }
  0xfc   :  { %v5053_v56 = vadd.f32 %v5052_v55, %v5051_v54  ;;  %v355_v62 = vadd.f32 %v5050_v53, %v147_v58 }
  0xfe   :  { %v358_v6 = vadd.f32 %v5053_v56, %v148_v1 }
 0x100   :  { %v5054_v57 = vpop.f32.mrb[4].mxu0 }
 0x101   :  { %v5055_v59 = vpop.f32.mrb[5].mxu0 }
 0x102   :  { %v5056_v60 = vadd.f32 %v5055_v59, %v5054_v57  ;;  %v5057_v61 = vpop.f32.mrb[6].mxu0  ;;  %v154_v57 = vld [vmem:[%s8858_s4 + $0x38] sm:$0xff] }
 0x103   :  { %v5058_v63 = vpop.f32.mrb[7].mxu0 }
 0x104   :  { %v5059_v2 = vadd.f32 %v5058_v63, %v5057_v61  ;;  %v363_v17 = vadd.f32 %v5056_v60, %v149_v9 }
 0x106   :  { %v443_v3 = vpop.f32.mrb[0].mxu1  ;;  %v366_v25 = vadd.f32 %v5059_v2, %v150_v19 }
 0x107   :  { %v444_v4 = vadd.f32 %v443_v3, %v355_v62  ;;  %v445_v5 = vpop.f32.mrb[1].mxu1  ;;  %v155_v3 = vld [vmem:[%s8858_s4 + $0x40] sm:$0xff] }
 0x108   :  { %v446_v7 = vpop.f32.mrb[2].mxu1  ;;  %v5060_v8 = vpop.f32.mrb[8].mxu0 }
 0x109   :  { %v447_v10 = vadd.f32 %v446_v7, %v358_v6  ;;  %v448_v11 = vpop.f32.mrb[3].mxu1  ;;  %v5061_v12 = vpop.f32.mrb[9].mxu0  ;;  %v498_v15 = vmax.f32 %v444_v4, 0.0 }
 0x10a   :  { %v5062_v13 = vadd.f32 %v5061_v12, %v5060_v8  ;;  %v5063_v14 = vpop.f32.mrb[10].mxu0 }
 0x10b   :  { %v499_v16 = vmax.f32 %v447_v10, 0.0  ;;  %v5064_v18 = vpop.f32.mrb[11].mxu0 }
 0x10c   :  { %v5065_v20 = vadd.f32 %v5064_v18, %v5063_v14  ;;  %v371_v36 = vadd.f32 %v5062_v13, %v151_v28  ;;  %v156_v13 = vld [vmem:[%s8858_s4 + $0x48] sm:$0xff] }
 0x10d   :  { %v567_v21 = vpack.c.bf16 %v499_v16, %v498_v15 }
 0x10e   :  { %v451_v22 = vpop.f32.mrb[4].mxu1  ;;  %v374_v44 = vadd.f32 %v5065_v20, %v152_v38 }
 0x10f   :  { %v452_v23 = vadd.f32 %v451_v22, %v363_v17  ;;  %v453_v24 = vpop.f32.mrb[5].mxu1  ;;  %5125 = vmatprep.subr.bf16.mxu0 %v567_v21  ;;  %v157_v22 = vld [vmem:[%s8858_s4 + $0x50] sm:$0xff] }
 0x110   :  { %v454_v26 = vpop.f32.mrb[6].mxu1  ;;  %5126 = vmatpush3.bf16.msra.mxu0 %v567_v21  ;;  %v5066_v27 = vpop.f32.mrb[12].mxu0 }
 0x111   :  { %v455_v29 = vadd.f32 %v454_v26, %v366_v25  ;;  %v456_v30 = vpop.f32.mrb[7].mxu1  ;;  %v5067_v31 = vpop.f32.mrb[13].mxu0  ;;  %v500_v34 = vmax.f32 %v452_v23, 0.0 }
 0x112   :  { %v5068_v32 = vadd.f32 %v5067_v31, %v5066_v27  ;;  %v5069_v33 = vpop.f32.mrb[14].mxu0 }
 0x113   :  { %v501_v35 = vmax.f32 %v455_v29, 0.0  ;;  %v5070_v37 = vpop.f32.mrb[15].mxu0 }
 0x114   :  { %v5071_v39 = vadd.f32 %v5070_v37, %v5069_v33  ;;  %v379_v55 = vadd.f32 %v5068_v32, %v153_v47  ;;  %v158_v32 = vld [vmem:[%s8858_s4 + $0x58] sm:$0xff] }
 0x115   :  { %v568_v40 = vpack.c.bf16 %v501_v35, %v500_v34 }
 0x116   :  { %v459_v41 = vpop.f32.mrb[8].mxu1  ;;  %v382_v63 = vadd.f32 %v5071_v39, %v154_v57 }
 0x117   :  { %v460_v42 = vadd.f32 %v459_v41, %v371_v36  ;;  %v461_v43 = vpop.f32.mrb[9].mxu1  ;;  %5127 = vmatprep.subr.bf16.mxu0 %v568_v40 }
 0x118   :  { %v462_v45 = vpop.f32.mrb[10].mxu1  ;;  %5128 = vmatpush3.bf16.msra.mxu0 %v568_v40  ;;  %v5072_v46 = vpop.f32.mrb[16].mxu0  ;;  %v159_v40 = vld [vmem:[%s8858_s4 + $0x60] sm:$0xff] }
 0x119   :  { %v463_v48 = vadd.f32 %v462_v45, %v374_v44  ;;  %v464_v49 = vpop.f32.mrb[11].mxu1  ;;  %v5073_v50 = vpop.f32.mrb[17].mxu0  ;;  %v502_v53 = vmax.f32 %v460_v42, 0.0 }
 0x11a   :  { %v5074_v51 = vadd.f32 %v5073_v50, %v5072_v46  ;;  %v5075_v52 = vpop.f32.mrb[18].mxu0  ;;  %v160_v46 = vld [vmem:[%s8858_s4 + $0x68] sm:$0x3f] }
 0x11b   :  { %v503_v54 = vmax.f32 %v463_v48, 0.0  ;;  %v5076_v56 = vpop.f32.mrb[19].mxu0 }
 0x11c   :  { %v5077_v58 = vadd.f32 %v5076_v56, %v5075_v52  ;;  %v387_v11 = vadd.f32 %v5074_v51, %v155_v3  ;;  %v5349_v3 = vld [vmem:[%s8857_s5 + $0x40] sm:$0xff]  }
 0x11d   :  { %v569_v59 = vpack.c.bf16 %v503_v54, %v502_v53 }
 0x11e   :  { %v467_v60 = vpop.f32.mrb[12].mxu1  ;;  %v390_v19 = vadd.f32 %v5077_v58, %v156_v13  ;;  %v5359_v13 = vld [vmem:[%s8857_s5 + $0x90] sm:$0xff]  }
 0x11f   :  { %v468_v61 = vadd.f32 %v467_v60, %v379_v55  ;;  %v469_v62 = vpop.f32.mrb[13].mxu1  ;;  %5129 = vmatprep.subr.bf16.mxu0 %v569_v59  ;;  %v5343_v60 = vld [vmem:[%s8857_s5 + $0x10] sm:$0xff]  }
 0x120   :  { %v470_v1 = vpop.f32.mrb[14].mxu1  ;;  %5130 = vmatpush3.bf16.msra.mxu0 %v569_v59  ;;  %v5078_v2 = vpop.f32.mrb[20].mxu0  ;;  %v5342_v59 = vld [vmem:[%s8857_s5 + $0x8] sm:$0xff]   ;;  %v5345_v62 = vld [vmem:[%s8857_s5 + $0x20] sm:$0xff]  }
 0x121   :  { %v471_v4 = vadd.f32 %v470_v1, %v382_v63  ;;  %v472_v5 = vpop.f32.mrb[15].mxu1  ;;  %v5079_v6 = vpop.f32.mrb[21].mxu0  ;;  %v504_v9 = vmax.f32 %v468_v61, 0.0  ;;  %v5344_v61 = vld [vmem:[%s8857_s5 + $0x18] sm:$0xff]   ;;  %v5346_v63 = vld [vmem:[%s8857_s5 + $0x28] sm:$0xff]   ;;  %v5347_v1 = vld [vmem:[%s8857_s5 + $0x30] sm:$0xff]  }
 0x122   :  { %v5080_v7 = vadd.f32 %v5079_v6, %v5078_v2  ;;  %v5081_v8 = vpop.f32.mrb[22].mxu0  ;;  %v5348_v2 = vld [vmem:[%s8857_s5 + $0x38] sm:$0xff]   ;;  %v5351_v5 = vld [vmem:[%s8857_s5 + $0x50] sm:$0xff]  }
 0x123   :  { %v505_v10 = vmax.f32 %v471_v4, 0.0  ;;  %v5082_v12 = vpop.f32.mrb[23].mxu0  ;;  %v5350_v4 = vld [vmem:[%s8857_s5 + $0x48] sm:$0xff]   ;;  %v5352_v6 = vld [vmem:[%s8857_s5 + $0x58] sm:$0xff]  }
 0x124   :  { %v5083_v14 = vadd.f32 %v5082_v12, %v5081_v8  ;;  %v395_v30 = vadd.f32 %v5080_v7, %v157_v22  ;;  %v5353_v7 = vld [vmem:[%s8857_s5 + $0x60] sm:$0xff]   ;;  %v5354_v8 = vld [vmem:[%s8857_s5 + $0x68] sm:$0xff]   ;;  %v5368_v22 = vld [vmem:[%s8857_s5 + $0xd8] ss:$0 sps:$4 sm:$0xff]  }
 0x125   :  { %v570_v15 = vpack.c.bf16 %v505_v10, %v504_v9  ;;  %v5355_v9 = vld [vmem:[%s8857_s5 + $0x70] sm:$0xff]   ;;  %v5356_v10 = vld [vmem:[%s8857_s5 + $0x78] sm:$0xff]   ;;  %v5358_v12 = vld [vmem:[%s8857_s5 + $0x88] sm:$0xff]  }
 0x126   :  { %v475_v16 = vpop.f32.mrb[16].mxu1  ;;  %v398_v38 = vadd.f32 %v5083_v14, %v158_v32  ;;  %v5360_v14 = vld [vmem:[%s8857_s5 + $0x98] sm:$0xff]  }
 0x127   :  { %v476_v17 = vadd.f32 %v475_v16, %v387_v11  ;;  %v477_v18 = vpop.f32.mrb[17].mxu1  ;;  %5131 = vmatprep.subr.bf16.mxu0 %v570_v15  ;;  %v5357_v11 = vld [vmem:[%s8857_s5 + $0x80] sm:$0xff]   ;;  %v5362_v16 = vld [vmem:[%s8857_s5 + $0xa8] sm:$0xff]  }
 0x128   :  { %v478_v20 = vpop.f32.mrb[18].mxu1  ;;  %5132 = vmatpush3.bf16.msra.mxu0 %v570_v15  ;;  %v5084_v21 = vpop.f32.mrb[24].mxu0  ;;  %v5361_v15 = vld [vmem:[%s8857_s5 + $0xa0] sm:$0xff]   ;;  %v5364_v18 = vld [vmem:[%s8857_s5 + $0xb8] sm:$0xff]  }
 0x129   :  { %v479_v23 = vadd.f32 %v478_v20, %v390_v19  ;;  %v480_v24 = vpop.f32.mrb[19].mxu1  ;;  %v5085_v25 = vpop.f32.mrb[25].mxu0  ;;  %v506_v28 = vmax.f32 %v476_v17, 0.0  ;;  %v5363_v17 = vld [vmem:[%s8857_s5 + $0xb0] sm:$0xff]   ;;  %v5365_v19 = vld [vmem:[%s8857_s5 + $0xc0] sm:$0xff]   ;;  %v5366_v20 = vld [vmem:[%s8857_s5 + $0xc8] sm:$0xff]  }
 0x12a   :  { %v5086_v26 = vadd.f32 %v5085_v25, %v5084_v21  ;;  %v5087_v27 = vpop.f32.mrb[26].mxu0  ;;  %v5367_v21 = vld [vmem:[%s8857_s5 + $0xd0] sm:$0xff]   ;;  %v574_v24 = vld [vmem:[%s8859_s6] sm:$0xff] }
 0x12b   :  { %v507_v29 = vmax.f32 %v479_v23, 0.0  ;;  %v5088_v31 = vpop.f32.mrb[27].mxu0  ;;  %v576_v23 = vld [vmem:[%s8859_s6 + $0x10] sm:$0xff] }
 0x12c   :  { %v5089_v33 = vadd.f32 %v5088_v31, %v5087_v27  ;;  %v403_v45 = vadd.f32 %v5086_v26, %v159_v40  ;;  %v577_v26 = vld [vmem:[%s8859_s6 + $0x18] sm:$0xff]  ;;  %v578_v40 = vld [vmem:[%s8859_s6 + $0x20] sm:$0xff] }
 0x12d   :  { %v571_v34 = vpack.c.bf16 %v507_v29, %v506_v28  ;;  %v575_v29 = vld [vmem:[%s8859_s6 + $0x8] sm:$0xff] }
 0x12e   :  { %v483_v35 = vpop.f32.mrb[20].mxu1  ;;  %v406_v51 = vadd.f32 %v5089_v33, %v160_v46 }
 0x12f   :  { %v484_v36 = vadd.f32 %v483_v35, %v395_v30  ;;  %v485_v37 = vpop.f32.mrb[21].mxu1  ;;  %5133 = vmatprep.subr.bf16.mxu0 %v571_v34 }
 0x130   :  { %v486_v39 = vpop.f32.mrb[22].mxu1  ;;  %5134 = vmatpush3.bf16.msra.mxu0 %v571_v34 }
 0x131   :  { %v487_v41 = vadd.f32 %v486_v39, %v398_v38  ;;  %v488_v42 = vpop.f32.mrb[23].mxu1  ;;  %v508_v43 = vmax.f32 %v484_v36, 0.0  ;;  %v580_v39 = vld [vmem:[%s8859_s6 + $0x30] sm:$0xff] }
 0x132   :  { %v581_v42 = vld [vmem:[%s8859_s6 + $0x38] sm:$0xff] }
 0x133   :  { %v509_v44 = vmax.f32 %v487_v41, 0.0 }
 0x135   :  { %v572_v47 = vpack.c.bf16 %v509_v44, %v508_v43 }
 0x136   :  { %v491_v48 = vpop.f32.mrb[24].mxu1 }
 0x137   :  { %v492_v49 = vadd.f32 %v491_v48, %v403_v45  ;;  %v493_v50 = vpop.f32.mrb[25].mxu1  ;;  %5135 = vmatprep.subr.bf16.mxu0 %v572_v47  ;;  %v579_v45 = vld [vmem:[%s8859_s6 + $0x28] sm:$0xff] }
 0x138   :  { %v494_v52 = vpop.f32.mrb[26].mxu1  ;;  %5136 = vmatpush3.bf16.msra.mxu0 %v572_v47 }
 0x139   :  { %v495_v53 = vadd.f32 %v494_v52, %v406_v51  ;;  %v496_v54 = vpop.f32.mrb[27].mxu1  ;;  %v510_v55 = vmax.f32 %v492_v49, 0.0 }
 0x13b   :  { %v511_v56 = vmax.f32 %v495_v53, 0.0 }
 0x13d   :  { %v573_v57 = vpack.c.bf16 %v511_v56, %v510_v55  ;;  %v584_v55 = vld [vmem:[%s8859_s6 + $0x50] sm:$0xff] }
 0x13f   :  { %5295 = vmatprep.subr.msk.bf16.mxu0 %vm852_vm3, %v573_v57  ;;  %v854_v58 = vsel %vm852_vm3, %v573_v57, 0  ;;  %v582_v57 = vld [vmem:[%s8859_s6 + $0x40] sm:$0xff] }
 0x140   :  { %5138 = vmatpush3.bf16.msra.mxu0 %v854_v58 }
 0x141   :  { %2578 = vmatprep.subr.bf16.mxu0 %v5865_v0 }
 0x143   :  { %5140 = vmatmul.mubr.msk.bf16.vlgmr.msra.gmra.mrb[28].mxu0 %vm767_vm2, %v5342_v59 }
 0x144   :  { %5143 = vmatprep.mubr.msk.bf16.mxu0 %vm767_vm2, %v5343_v60 }
 0x14b   :  { %5144 = vmatmul.mubr.msk.bf16.gmra.mrb[32].mxu0 %vm767_vm2, %v5344_v61  ;;  %v585_v61 = vld [vmem:[%s8859_s6 + $0x58] sm:$0xff] }
 0x14c   :  { %5147 = vmatprep.mubr.msk.bf16.mxu0 %vm767_vm2, %v5345_v62 }
 0x153   :  { %5148 = vmatmul.mubr.msk.bf16.gmra.mrb[36].mxu0 %vm767_vm2, %v5346_v63 }
 0x154   :  { %5151 = vmatprep.mubr.msk.bf16.mxu0 %vm767_vm2, %v5347_v1 }
 0x15b   :  { %5152 = vmatmul.mubr.msk.bf16.gmra.mrb[40].mxu0 %vm767_vm2, %v5348_v2 }
 0x15c   :  { %5155 = vmatprep.mubr.msk.bf16.mxu0 %vm767_vm2, %v5349_v3  ;;  %v583_v3 = vld [vmem:[%s8859_s6 + $0x48] sm:$0xff] }
 0x163   :  { %5156 = vmatmul.mubr.msk.bf16.gmra.mrb[44].mxu0 %vm767_vm2, %v5350_v4 }
 0x164   :  { %5159 = vmatprep.mubr.msk.bf16.mxu0 %vm767_vm2, %v5351_v5 }
 0x16b   :  { %5160 = vmatmul.mubr.msk.bf16.gmra.mrb[48].mxu0 %vm767_vm2, %v5352_v6 }
 0x16c   :  { %5163 = vmatprep.mubr.msk.bf16.mxu0 %vm767_vm2, %v5353_v7 }
 0x173   :  { %5164 = vmatmul.mubr.msk.bf16.gmra.mrb[52].mxu0 %vm767_vm2, %v5354_v8 }
 0x174   :  { %5167 = vmatprep.mubr.msk.bf16.mxu0 %vm767_vm2, %v5355_v9 }
 0x17b   :  { %5168 = vmatmul.mubr.msk.bf16.gmra.mrb[56].mxu0 %vm767_vm2, %v5356_v10 }
 0x17c   :  { %5171 = vmatprep.mubr.msk.bf16.mxu0 %vm767_vm2, %v5357_v11 }
 0x183   :  { %5172 = vmatmul.mubr.msk.bf16.gmra.mrb[60].mxu0 %vm767_vm2, %v5358_v12 }
 0x184   :  { %5175 = vmatprep.mubr.msk.bf16.mxu0 %vm767_vm2, %v5359_v13 }
 0x18b   :  { %5176 = vmatmul.mubr.msk.bf16.gmra.mrb[64].mxu0 %vm767_vm2, %v5360_v14 }
 0x18c   :  { %5179 = vmatprep.mubr.msk.bf16.mxu0 %vm767_vm2, %v5361_v15 }
 0x193   :  { %5180 = vmatmul.mubr.msk.bf16.gmra.mrb[68].mxu0 %vm767_vm2, %v5362_v16  ;;  %v588_v16 = vld [vmem:[%s8859_s6 + $0x70] sm:$0xff] }
 0x194   :  { %5183 = vmatprep.mubr.msk.bf16.mxu0 %vm767_vm2, %v5363_v17 }
 0x19b   :  { %5184 = vmatmul.mubr.msk.bf16.gmra.mrb[72].mxu0 %vm767_vm2, %v5364_v18  ;;  %v586_v18 = vld [vmem:[%s8859_s6 + $0x60] sm:$0xff] }
 0x19c   :  { %5187 = vmatprep.mubr.msk.bf16.mxu0 %vm767_vm2, %v5365_v19 }
 0x1a3   :  { %5188 = vmatmul.mubr.msk.bf16.gmra.mrb[76].mxu0 %vm767_vm2, %v5366_v20 }
 0x1a4   :  { %5191 = vmatprep.mubr.msk.bf16.mxu0 %vm767_vm2, %v5367_v21 }
 0x1ab   :  { %5192 = vmatmul.mubr.msk.bf16.gmra.mrb[80].mxu0 %vm767_vm2, %v5368_v22  ;;  %v589_v22 = vld [vmem:[%s8859_s6 + $0x78] sm:$0xff] }
 0x216   :  { %v5141_v25 = vpop.f32.mrb[28].mxu0 }
 0x217   :  { %v899_v27 = vadd.f32 %v5141_v25, %v576_v23  ;;  %v890_v28 = vpop.f32.mrb[29].mxu0 }
 0x218   :  { %v891_v30 = vadd.f32 %v890_v28, %v574_v24  ;;  %v5142_v31 = vpop.f32.mrb[30].mxu0 }
 0x219   :  { %v4839_v32 = vmul.f32 -1.442695, %v899_v27  ;;  %v902_v33 = vadd.f32 %v5142_v31, %v577_v26  ;;  %v893_v34 = vpop.f32.mrb[31].mxu0  ;;  %v587_v27 = vld [vmem:[%s8859_s6 + $0x68] sm:$0xff] }
 0x21a   :  { %v4837_v35 = vmul.f32 -1.442695, %v891_v30  ;;  %v894_v36 = vadd.f32 %v893_v34, %v575_v29 }
 0x21b   :  { %5535 = vpow2.f32 %v4839_v32  ;;  %v4840_v37 = vmul.f32 -1.442695, %v902_v33 }
 0x21c   :  { %5537 = vpow2.f32 %v4837_v35  ;;  %v4838_v38 = vmul.f32 -1.442695, %v894_v36 }
 0x21d   :  { %5539 = vpow2.f32 %v4840_v37 }
 0x21e   :  { %5541 = vpow2.f32 %v4838_v38  ;;  %v5145_v41 = vpop.f32.mrb[32].mxu0 }
 0x21f   :  { %v915_v43 = vadd.f32 %v5145_v41, %v580_v39  ;;  %v906_v44 = vpop.f32.mrb[33].mxu0 }
 0x220   :  { %v907_v46 = vadd.f32 %v906_v44, %v578_v40  ;;  %v5146_v47 = vpop.f32.mrb[34].mxu0 }
 0x221   :  { %v4843_v48 = vmul.f32 -1.442695, %v915_v43  ;;  %v918_v49 = vadd.f32 %v5146_v47, %v581_v42  ;;  %v909_v50 = vpop.f32.mrb[35].mxu0  ;;  %v592_v43 = vld [vmem:[%s8859_s6 + $0x90] sm:$0xff] }
 0x222   :  { %v4841_v51 = vmul.f32 -1.442695, %v907_v46  ;;  %v910_v52 = vadd.f32 %v909_v50, %v579_v45  ;;  %v590_v45 = vld [vmem:[%s8859_s6 + $0x80] sm:$0xff] }
 0x223   :  { %5543 = vpow2.f32 %v4843_v48  ;;  %v4844_v53 = vmul.f32 -1.442695, %v918_v49  ;;  %v593_v48 = vld [vmem:[%s8859_s6 + $0x98] sm:$0xff] }
 0x224   :  { %5545 = vpow2.f32 %v4841_v51  ;;  %v4842_v54 = vmul.f32 -1.442695, %v910_v52 }
 0x225   :  { %v5536_v56 = vpop.eup %5535  ;;  %5547 = vpow2.f32 %v4844_v53  ;;  %v591_v53 = vld [vmem:[%s8859_s6 + $0x88] sm:$0xff] }
 0x226   :  { %v5538_v58 = vpop.eup %5537  ;;  %v1279_v59 = vadd.f32 1.0, %v5536_v56  ;;  %5549 = vpow2.f32 %v4842_v54  ;;  %v5149_v60 = vpop.f32.mrb[36].mxu0 }
 0x227   :  { %v5540_v62 = vpop.eup %5539  ;;  %v1277_v63 = vadd.f32 1.0, %v5538_v58  ;;  %v931_v1 = vadd.f32 %v5149_v60, %v584_v55  ;;  %v922_v2 = vpop.f32.mrb[37].mxu0 }
 0x228   :  { %v5542_v4 = vpop.eup %5541  ;;  %5551 = vrcp.f32 %v1279_v59  ;;  %v1280_v5 = vadd.f32 1.0, %v5540_v62  ;;  %v923_v6 = vadd.f32 %v922_v2, %v582_v57  ;;  %v5150_v7 = vpop.f32.mrb[38].mxu0 }
 0x229   :  { %5553 = vrcp.f32 %v1277_v63  ;;  %v1278_v8 = vadd.f32 1.0, %v5542_v4  ;;  %v4847_v9 = vmul.f32 -1.442695, %v931_v1  ;;  %v934_v10 = vadd.f32 %v5150_v7, %v585_v61  ;;  %v925_v11 = vpop.f32.mrb[39].mxu0 }
 0x22a   :  { %5555 = vrcp.f32 %v1280_v5  ;;  %v4845_v12 = vmul.f32 -1.442695, %v923_v6  ;;  %v926_v13 = vadd.f32 %v925_v11, %v583_v3 }
 0x22b   :  { %5557 = vrcp.f32 %v1278_v8  ;;  %v4848_v14 = vmul.f32 -1.442695, %v934_v10  ;;  %v596_v8 = vld [vmem:[%s8859_s6 + $0xb0] sm:$0xff]  ;;  %v594_v10 = vld [vmem:[%s8859_s6 + $0xa0] sm:$0xff] }
 0x22c   :  { %5559 = vpow2.f32 %v4847_v9  ;;  %v4846_v15 = vmul.f32 -1.442695, %v926_v13  ;;  %v597_v13 = vld [vmem:[%s8859_s6 + $0xb8] sm:$0xff] }
 0x22d   :  { %v5544_v17 = vpop.eup %5543  ;;  %5561 = vpow2.f32 %v4845_v12 }
 0x22e   :  { %v5546_v19 = vpop.eup %5545  ;;  %v1283_v20 = vadd.f32 1.0, %v5544_v17  ;;  %5563 = vpow2.f32 %v4848_v14  ;;  %v5153_v21 = vpop.f32.mrb[40].mxu0 }
 0x22f   :  { %v5548_v23 = vpop.eup %5547  ;;  %v1281_v24 = vadd.f32 1.0, %v5546_v19  ;;  %5565 = vpow2.f32 %v4846_v15  ;;  %v947_v25 = vadd.f32 %v5153_v21, %v588_v16  ;;  %v938_v26 = vpop.f32.mrb[41].mxu0 }
 0x230   :  { %v5550_v28 = vpop.eup %5549  ;;  %5567 = vrcp.f32 %v1283_v20  ;;  %v1284_v29 = vadd.f32 1.0, %v5548_v23  ;;  %v939_v30 = vadd.f32 %v938_v26, %v586_v18  ;;  %v5154_v31 = vpop.f32.mrb[42].mxu0  ;;  %v595_v18 = vld [vmem:[%s8859_s6 + $0xa8] sm:$0xff] }
 0x231   :  { %5569 = vrcp.f32 %v1281_v24  ;;  %v1282_v32 = vadd.f32 1.0, %v5550_v28  ;;  %v4851_v33 = vmul.f32 -1.442695, %v947_v25  ;;  %v950_v34 = vadd.f32 %v5154_v31, %v589_v22  ;;  %v941_v35 = vpop.f32.mrb[43].mxu0 }
 0x232   :  { %v5552_v36 = vpop.eup %5551  ;;  %5571 = vrcp.f32 %v1284_v29  ;;  %v4849_v37 = vmul.f32 -1.442695, %v939_v30  ;;  %v942_v38 = vadd.f32 %v941_v35, %v587_v27  ;;  %v600_v35 = vld [vmem:[%s8859_s6 + $0xd0] sm:$0xff] }
 0x233   :  { %v5554_v39 = vpop.eup %5553  ;;  %5573 = vrcp.f32 %v1282_v32  ;;  %v4852_v40 = vmul.f32 -1.442695, %v950_v34  ;;  %1509 = vperm.xlu1 %5298, %v5552_v36  }
 0x234   :  { %v5556_v41 = vpop.eup %5555  ;;  %5575 = vpow2.f32 %v4851_v33  ;;  %v4850_v42 = vmul.f32 -1.442695, %v942_v38  ;;  %1499 = vperm.xlu0 %5297, %v5554_v39  }
 0x235   :  { %v5558_v44 = vpop.eup %5557  ;;  %5577 = vpow2.f32 %v4849_v37  ;;  %v598_v37 = vld [vmem:[%s8859_s6 + $0xc0] sm:$0xff] }
 0x236   :  { %v5560_v46 = vpop.eup %5559  ;;  %5579 = vpow2.f32 %v4852_v40  ;;  %v5157_v47 = vpop.f32.mrb[44].mxu0  ;;  %v601_v40 = vld [vmem:[%s8859_s6 + $0xd8] sm:$0xff] }
 0x237   :  { %v5562_v49 = vpop.eup %5561  ;;  %v1287_v50 = vadd.f32 1.0, %v5560_v46  ;;  %5581 = vpow2.f32 %v4850_v42  ;;  %v963_v51 = vadd.f32 %v5157_v47, %v592_v43  ;;  %1514 = vperm.xlu1 %5298, %v5556_v41   ;;  %v954_v52 = vpop.f32.mrb[45].mxu0 }
 0x238   :  { %v5564_v54 = vpop.eup %5563  ;;  %v1285_v55 = vadd.f32 1.0, %v5562_v49  ;;  %v955_v56 = vadd.f32 %v954_v52, %v590_v45  ;;  %v5158_v57 = vpop.f32.mrb[46].mxu0  ;;  %1504 = vperm.xlu0 %5297, %v5558_v44   ;;  %v599_v44 = vld [vmem:[%s8859_s6 + $0xc8] sm:$0xff] }
 0x239   :  { %v5566_v58 = vpop.eup %5565  ;;  %5583 = vrcp.f32 %v1287_v50  ;;  %v1288_v59 = vadd.f32 1.0, %v5564_v54  ;;  %v4855_v60 = vmul.f32 -1.442695, %v963_v51  ;;  %v966_v61 = vadd.f32 %v5158_v57, %v593_v48  ;;  %v957_v62 = vpop.f32.mrb[47].mxu0 }
 0x23a   :  { %v5568_v63 = vpop.eup %5567  ;;  %5585 = vrcp.f32 %v1285_v55  ;;  %v1286_v1 = vadd.f32 1.0, %v5566_v58  ;;  %v4853_v2 = vmul.f32 -1.442695, %v955_v56  ;;  %v958_v3 = vadd.f32 %v957_v62, %v591_v53  ;;  %v604_v62 = vld [vmem:[%s8859_s6 + $0xf0] sm:$0xff] }
 0x23b   :  { %v5570_v4 = vpop.eup %5569  ;;  %5587 = vrcp.f32 %v1288_v59  ;;  %v4856_v5 = vmul.f32 -1.442695, %v966_v61 }
 0x23c   :  { %v5572_v6 = vpop.eup %5571  ;;  %5589 = vrcp.f32 %v1286_v1  ;;  %v4854_v7 = vmul.f32 -1.442695, %v958_v3  ;;  %1519 = vperm.xlu0 %5297, %v5570_v4  }
 0x23d   :  { %v5574_v9 = vpop.eup %5573  ;;  %5591 = vpow2.f32 %v4855_v60 }
 0x23e   :  { %v5576_v11 = vpop.eup %5575  ;;  %5593 = vpow2.f32 %v4853_v2  ;;  %v5161_v12 = vpop.f32.mrb[48].mxu0  ;;  %1524 = vperm.xlu1 %5298, %v5574_v9   ;;  %v602_v2 = vld [vmem:[%s8859_s6 + $0xe0] sm:$0xff]  ;;  %v603_v9 = vld [vmem:[%s8859_s6 + $0xe8] sm:$0xff] }
 0x23f   :  { %v5578_v14 = vpop.eup %5577  ;;  %v1291_v15 = vadd.f32 1.0, %v5576_v11  ;;  %5595 = vpow2.f32 %v4856_v5  ;;  %v979_v16 = vadd.f32 %v5161_v12, %v596_v8  ;;  %v970_v17 = vpop.f32.mrb[49].mxu0  ;;  %v605_v5 = vld [vmem:[%s8859_s6 + $0xf8] sm:$0xff] }
 0x240   :  { %v5580_v19 = vpop.eup %5579  ;;  %v1289_v20 = vadd.f32 1.0, %v5578_v14  ;;  %5597 = vpow2.f32 %v4854_v7  ;;  %v971_v21 = vadd.f32 %v970_v17, %v594_v10  ;;  %v5162_v22 = vpop.f32.mrb[50].mxu0  ;;  %1529 = vperm.xlu0 %5297, %v5568_v63  }
 0x241   :  { %v5582_v23 = vpop.eup %5581  ;;  %5599 = vrcp.f32 %v1291_v15  ;;  %v1292_v24 = vadd.f32 1.0, %v5580_v19  ;;  %v4859_v25 = vmul.f32 -1.442695, %v979_v16  ;;  %v982_v26 = vadd.f32 %v5162_v22, %v597_v13  ;;  %v973_v27 = vpop.f32.mrb[51].mxu0 }
 0x242   :  { %5601 = vrcp.f32 %v1289_v20  ;;  %v1290_v28 = vadd.f32 1.0, %v5582_v23  ;;  %v4857_v29 = vmul.f32 -1.442695, %v971_v21  ;;  %v974_v30 = vadd.f32 %v973_v27, %v595_v18  ;;  %1534 = vperm.xlu1 %5298, %v5572_v6  }
 0x243   :  { %v5584_v31 = vpop.eup %5583  ;;  %5603 = vrcp.f32 %v1292_v24  ;;  %v4860_v32 = vmul.f32 -1.442695, %v982_v26  ;;  %v608_v26 = vld [vmem:[%s8859_s6 + $0x110] sm:$0xff] }
 0x244   :  { %v5586_v33 = vpop.eup %5585  ;;  %5605 = vrcp.f32 %v1290_v28  ;;  %v4858_v34 = vmul.f32 -1.442695, %v974_v30 }
 0x245   :  { %v5588_v36 = vpop.eup %5587  ;;  %5607 = vpow2.f32 %v4859_v25  ;;  %1539 = vperm.xlu0 %5297, %v5586_v33  }
 0x246   :  { %v5590_v38 = vpop.eup %5589  ;;  %5609 = vpow2.f32 %v4857_v29  ;;  %v5165_v39 = vpop.f32.mrb[52].mxu0  ;;  %v606_v29 = vld [vmem:[%s8859_s6 + $0x100] sm:$0xff] }
 0x247   :  { %v5592_v41 = vpop.eup %5591  ;;  %5611 = vpow2.f32 %v4860_v32  ;;  %v995_v42 = vadd.f32 %v5165_v39, %v600_v35  ;;  %1544 = vperm.xlu1 %5298, %v5590_v38   ;;  %v986_v43 = vpop.f32.mrb[53].mxu0  ;;  %v609_v32 = vld [vmem:[%s8859_s6 + $0x118] sm:$0xff] }
 0x248   :  { %v5594_v45 = vpop.eup %5593  ;;  %v1295_v46 = vadd.f32 1.0, %v5592_v41  ;;  %5613 = vpow2.f32 %v4858_v34  ;;  %v987_v47 = vadd.f32 %v986_v43, %v598_v37  ;;  %v5166_v48 = vpop.f32.mrb[54].mxu0 }
 0x249   :  { %v5596_v49 = vpop.eup %5595  ;;  %v1293_v50 = vadd.f32 1.0, %v5594_v45  ;;  %v998_v51 = vadd.f32 %v5166_v48, %v601_v40  ;;  %1549 = vperm.xlu0 %5297, %v5584_v31   ;;  %v989_v52 = vpop.f32.mrb[55].mxu0  ;;  %v4863_v55 = vmul.f32 -1.442695, %v995_v42 }
 0x24a   :  { %v5598_v53 = vpop.eup %5597  ;;  %5615 = vrcp.f32 %v1295_v46  ;;  %v1296_v54 = vadd.f32 1.0, %v5596_v49  ;;  %v990_v56 = vadd.f32 %v989_v52, %v599_v44  ;;  %v4861_v59 = vmul.f32 -1.442695, %v987_v47 }
 0x24b   :  { %v5600_v57 = vpop.eup %5599  ;;  %5617 = vrcp.f32 %v1293_v50  ;;  %v1294_v58 = vadd.f32 1.0, %v5598_v53  ;;  %1554 = vperm.xlu1 %5298, %v5588_v36   ;;  %v4864_v61 = vmul.f32 -1.442695, %v998_v51  ;;  %v607_v36 = vld [vmem:[%s8859_s6 + $0x108] sm:$0xff]  ;;  %v612_v53 = vld [vmem:[%s8859_s6 + $0x130] sm:$0xff] }
 0x24c   :  { %v5602_v60 = vpop.eup %5601  ;;  %5619 = vrcp.f32 %v1296_v54  ;;  %v4862_v1 = vmul.f32 -1.442695, %v990_v56  ;;  %v610_v56 = vld [vmem:[%s8859_s6 + $0x120] sm:$0xff] }
 0x24d   :  { %v5604_v63 = vpop.eup %5603  ;;  %5621 = vrcp.f32 %v1294_v58  ;;  %1559 = vperm.xlu0 %5297, %v5602_v60   ;;  %v613_v60 = vld [vmem:[%s8859_s6 + $0x138] sm:$0xff] }
 0x24e   :  { %v5606_v3 = vpop.eup %5605  ;;  %5623 = vpow2.f32 %v4863_v55  ;;  %v5169_v4 = vpop.f32.mrb[56].mxu0 }
 0x24f   :  { %v5608_v6 = vpop.eup %5607  ;;  %5625 = vpow2.f32 %v4861_v59  ;;  %v1011_v7 = vadd.f32 %v5169_v4, %v604_v62  ;;  %1564 = vperm.xlu1 %5298, %v5606_v3   ;;  %v1002_v8 = vpop.f32.mrb[57].mxu0 }
 0x250   :  { %v5610_v10 = vpop.eup %5609  ;;  %v1299_v11 = vadd.f32 1.0, %v5608_v6  ;;  %5627 = vpow2.f32 %v4864_v61  ;;  %v1003_v12 = vadd.f32 %v1002_v8, %v602_v2  ;;  %v5170_v13 = vpop.f32.mrb[58].mxu0 }
 0x251   :  { %v5612_v14 = vpop.eup %5611  ;;  %v1297_v15 = vadd.f32 1.0, %v5610_v10  ;;  %5629 = vpow2.f32 %v4862_v1  ;;  %v1014_v16 = vadd.f32 %v5170_v13, %v605_v5  ;;  %1569 = vperm.xlu0 %5297, %v5600_v57   ;;  %v1005_v17 = vpop.f32.mrb[59].mxu0  ;;  %v4867_v20 = vmul.f32 -1.442695, %v1011_v7  ;;  %v611_v1 = vld [vmem:[%s8859_s6 + $0x128] sm:$0xff] }
 0x252   :  { %v5614_v18 = vpop.eup %5613  ;;  %5631 = vrcp.f32 %v1299_v11  ;;  %v1300_v19 = vadd.f32 1.0, %v5612_v14  ;;  %v1006_v21 = vadd.f32 %v1005_v17, %v603_v9  ;;  %v4865_v23 = vmul.f32 -1.442695, %v1003_v12  ;;  %v616_v17 = vld [vmem:[%s8859_s6 + $0x150] sm:$0xff] }
 0x253   :  { %5633 = vrcp.f32 %v1297_v15  ;;  %v1298_v22 = vadd.f32 1.0, %v5614_v18  ;;  %1574 = vperm.xlu1 %5298, %v5604_v63   ;;  %v4868_v25 = vmul.f32 -1.442695, %v1014_v16 }
 0x254   :  { %v5616_v24 = vpop.eup %5615  ;;  %5635 = vrcp.f32 %v1300_v19  ;;  %v4866_v28 = vmul.f32 -1.442695, %v1006_v21 }
 0x255   :  { %v5618_v27 = vpop.eup %5617  ;;  %5637 = vrcp.f32 %v1298_v22 }
 0x256   :  { %v5620_v30 = vpop.eup %5619  ;;  %5639 = vpow2.f32 %v4867_v20  ;;  %1579 = vperm.xlu0 %5297, %v5618_v27   ;;  %v5173_v31 = vpop.f32.mrb[60].mxu0  ;;  %v614_v20 = vld [vmem:[%s8859_s6 + $0x140] sm:$0xff] }
 0x257   :  { %v5622_v33 = vpop.eup %5621  ;;  %5641 = vpow2.f32 %v4865_v23  ;;  %v1027_v34 = vadd.f32 %v5173_v31, %v608_v26  ;;  %v1018_v35 = vpop.f32.mrb[61].mxu0 }
 0x258   :  { %v5624_v37 = vpop.eup %5623  ;;  %5643 = vpow2.f32 %v4868_v25  ;;  %1584 = vperm.xlu1 %5298, %v5622_v33   ;;  %v1019_v38 = vadd.f32 %v1018_v35, %v606_v29  ;;  %v5174_v39 = vpop.f32.mrb[62].mxu0 }
 0x259   :  { %v5626_v40 = vpop.eup %5625  ;;  %v1303_v41 = vadd.f32 1.0, %v5624_v37  ;;  %5645 = vpow2.f32 %v4866_v28  ;;  %v1030_v42 = vadd.f32 %v5174_v39, %v609_v32  ;;  %v1021_v43 = vpop.f32.mrb[63].mxu0  ;;  %v4871_v49 = vmul.f32 -1.442695, %v1027_v34  ;;  %v615_v28 = vld [vmem:[%s8859_s6 + $0x148] sm:$0xff] }
 0x25a   :  { %v5628_v44 = vpop.eup %5627  ;;  %v1301_v45 = vadd.f32 1.0, %v5626_v40  ;;  %1589 = vperm.xlu0 %5297, %v5616_v24   ;;  %v1022_v46 = vadd.f32 %v1021_v43, %v607_v36  ;;  %v4869_v52 = vmul.f32 -1.442695, %v1019_v38  ;;  %v617_v24 = vld [vmem:[%s8859_s6 + $0x158] sm:$0xff]  ;;  %v620_v43 = vld [vmem:[%s8859_s6 + $0x170] sm:$0xff] }
 0x25b   :  { %v5630_v47 = vpop.eup %5629  ;;  %5647 = vrcp.f32 %v1303_v41  ;;  %v1304_v48 = vadd.f32 1.0, %v5628_v44  ;;  %v4872_v55 = vmul.f32 -1.442695, %v1030_v42 }
 0x25c   :  { %v5632_v50 = vpop.eup %5631  ;;  %5649 = vrcp.f32 %v1301_v45  ;;  %v1302_v51 = vadd.f32 1.0, %v5630_v47  ;;  %1594 = vperm.xlu1 %5298, %v5620_v30   ;;  %v4870_v58 = vmul.f32 -1.442695, %v1022_v46 }
 0x25d   :  { %v5634_v54 = vpop.eup %5633  ;;  %5651 = vrcp.f32 %v1304_v48 }
 0x25e   :  { %v5636_v57 = vpop.eup %5635  ;;  %5653 = vrcp.f32 %v1302_v51  ;;  %1599 = vperm.xlu0 %5297, %v5634_v54   ;;  %v5177_v59 = vpop.f32.mrb[64].mxu0 }
 0x25f   :  { %v5638_v61 = vpop.eup %5637  ;;  %5655 = vpow2.f32 %v4871_v49  ;;  %v1043_v62 = vadd.f32 %v5177_v59, %v612_v53  ;;  %v1034_v63 = vpop.f32.mrb[65].mxu0 }
 0x260   :  { %v5640_v2 = vpop.eup %5639  ;;  %5657 = vpow2.f32 %v4869_v52  ;;  %1604 = vperm.xlu1 %5298, %v5638_v61   ;;  %v1035_v3 = vadd.f32 %v1034_v63, %v610_v56  ;;  %v5178_v4 = vpop.f32.mrb[66].mxu0 }
 0x261   :  { %v5642_v5 = vpop.eup %5641  ;;  %v1307_v6 = vadd.f32 1.0, %v5640_v2  ;;  %5659 = vpow2.f32 %v4872_v55  ;;  %v1046_v7 = vadd.f32 %v5178_v4, %v613_v60  ;;  %v1037_v8 = vpop.f32.mrb[67].mxu0  ;;  %v4875_v14 = vmul.f32 -1.442695, %v1043_v62  ;;  %v621_v55 = vld [vmem:[%s8859_s6 + $0x178] sm:$0xff] }
 0x262   :  { %v5644_v9 = vpop.eup %5643  ;;  %v1305_v10 = vadd.f32 1.0, %v5642_v5  ;;  %5661 = vpow2.f32 %v4870_v58  ;;  %1609 = vperm.xlu0 %5297, %v5632_v50   ;;  %v1038_v11 = vadd.f32 %v1037_v8, %v611_v1  ;;  %v4873_v16 = vmul.f32 -1.442695, %v1035_v3  ;;  %v618_v50 = vld [vmem:[%s8859_s6 + $0x160] sm:$0xff]  ;;  %v619_v58 = vld [vmem:[%s8859_s6 + $0x168] sm:$0xff]  ;;  %v624_v8 = vld [vmem:[%s8859_s6 + $0x190] sm:$0xff] }
 0x263   :  { %v5646_v12 = vpop.eup %5645  ;;  %5663 = vrcp.f32 %v1307_v6  ;;  %v1308_v13 = vadd.f32 1.0, %v5644_v9  ;;  %v4876_v19 = vmul.f32 -1.442695, %v1046_v7 }
 0x264   :  { %5665 = vrcp.f32 %v1305_v10  ;;  %v1306_v15 = vadd.f32 1.0, %v5646_v12  ;;  %1614 = vperm.xlu1 %5298, %v5636_v57   ;;  %v4874_v22 = vmul.f32 -1.442695, %v1038_v11 }
 0x265   :  { %v5648_v18 = vpop.eup %5647  ;;  %5667 = vrcp.f32 %v1308_v13 }
 0x266   :  { %v5650_v21 = vpop.eup %5649  ;;  %5669 = vrcp.f32 %v1306_v15  ;;  %v5181_v23 = vpop.f32.mrb[68].mxu0 }
 0x267   :  { %v5652_v25 = vpop.eup %5651  ;;  %5671 = vpow2.f32 %v4875_v14  ;;  %1619 = vperm.xlu0 %5297, %v5650_v21   ;;  %v1059_v26 = vadd.f32 %v5181_v23, %v616_v17  ;;  %v1050_v27 = vpop.f32.mrb[69].mxu0  ;;  %v622_v14 = vld [vmem:[%s8859_s6 + $0x180] sm:$0xff]  ;;  %v623_v23 = vld [vmem:[%s8859_s6 + $0x188] sm:$0xff] }
 0x268   :  { %v5654_v29 = vpop.eup %5653  ;;  %5673 = vpow2.f32 %v4873_v16  ;;  %v1051_v30 = vadd.f32 %v1050_v27, %v614_v20  ;;  %v5182_v31 = vpop.f32.mrb[70].mxu0 }
 0x269   :  { %v5656_v32 = vpop.eup %5655  ;;  %5675 = vpow2.f32 %v4876_v19  ;;  %v4879_v33 = vmul.f32 -1.442695, %v1059_v26  ;;  %1624 = vperm.xlu1 %5298, %v5654_v29   ;;  %v1062_v34 = vadd.f32 %v5182_v31, %v617_v24  ;;  %v1053_v35 = vpop.f32.mrb[71].mxu0  ;;  %v625_v19 = vld [vmem:[%s8859_s6 + $0x198] sm:$0xff] }
 0x26a   :  { %v5658_v36 = vpop.eup %5657  ;;  %v1311_v37 = vadd.f32 1.0, %v5656_v32  ;;  %5677 = vpow2.f32 %v4874_v22  ;;  %v1054_v38 = vadd.f32 %v1053_v35, %v615_v28  ;;  %v4877_v42 = vmul.f32 -1.442695, %v1051_v30 }
 0x26b   :  { %v5660_v39 = vpop.eup %5659  ;;  %v1309_v40 = vadd.f32 1.0, %v5658_v36  ;;  %5679 = vpow2.f32 %v4879_v33  ;;  %1629 = vperm.xlu0 %5297, %v5648_v18   ;;  %v4880_v46 = vmul.f32 -1.442695, %v1062_v34 }
 0x26c   :  { %v5662_v41 = vpop.eup %5661  ;;  %v4878_v48 = vmul.f32 -1.442695, %v1054_v38  ;;  %v1312_v52 = vadd.f32 1.0, %v5660_v39  ;;  %v626_v38 = vld [vmem:[%s8859_s6 + $0x1a0] sm:$0xff] }
 0x26d   :  { %v5664_v44 = vpop.eup %5663  ;;  %5681 = vrcp.f32 %v1309_v40  ;;  %v1310_v45 = vadd.f32 1.0, %v5662_v41  ;;  %1634 = vperm.xlu1 %5298, %v5652_v25   ;;  %v628_v41 = vld [vmem:[%s8859_s6 + $0x1b0] sm:$0xff] }
 0x26e   :  { %v5666_v47 = vpop.eup %5665  ;;  %5683 = vrcp.f32 %v1311_v37  ;;  %v5185_v49 = vpop.f32.mrb[72].mxu0 }
 0x26f   :  { %v5668_v51 = vpop.eup %5667  ;;  %5685 = vrcp.f32 %v1310_v45  ;;  %1639 = vperm.xlu0 %5297, %v5666_v47   ;;  %v1075_v53 = vadd.f32 %v5185_v49, %v620_v43  ;;  %v1066_v54 = vpop.f32.mrb[73].mxu0  ;;  %v5371_v43 = vld [vmem:[%s8860_s7 + $0x2c4] ss:$16 sps:$4 sm:$0xff]   ;;  %v627_v47 = vld [vmem:[%s8859_s6 + $0x1a8] sm:$0xff] }
 0x270   :  { %v5670_v56 = vpop.eup %5669  ;;  %5687 = vpow2.f32 %v4877_v42  ;;  %v5186_v57 = vpop.f32.mrb[74].mxu0  ;;  %v1067_v61 = vadd.f32 %v1066_v54, %v618_v50  ;;  %2786 = vmatprep.mubr.bf16.mxu1 %v5371_v43 }
 0x271   :  { %v5672_v59 = vpop.eup %5671  ;;  %5689 = vpow2.f32 %v4880_v46  ;;  %v4883_v60 = vmul.f32 -1.442695, %v1075_v53  ;;  %1644 = vperm.xlu1 %5298, %v5670_v56   ;;  %v1069_v62 = vpop.f32.mrb[75].mxu0  ;;  %v1078_v2 = vadd.f32 %v5186_v57, %v621_v55 }
 0x272   :  { %v5674_v63 = vpop.eup %5673  ;;  %v1315_v1 = vadd.f32 1.0, %v5672_v59  ;;  %5691 = vpow2.f32 %v4878_v48  ;;  %v1070_v5 = vadd.f32 %v1069_v62, %v619_v58  ;;  %v4881_v11 = vmul.f32 -1.442695, %v1067_v61 }
 0x273   :  { %v5676_v3 = vpop.eup %5675  ;;  %5693 = vrcp.f32 %v1312_v52  ;;  %v1313_v4 = vadd.f32 1.0, %v5674_v63  ;;  %1649 = vperm.xlu0 %5297, %v5664_v44   ;;  %v4884_v12 = vmul.f32 -1.442695, %v1078_v2 }
 0x274   :  { %v5678_v6 = vpop.eup %5677  ;;  %v1316_v7 = vadd.f32 1.0, %v5676_v3  ;;  %5695 = vpow2.f32 %v4883_v60  ;;  %v4882_v16 = vmul.f32 -1.442695, %v1070_v5 }
 0x275   :  { %v5680_v9 = vpop.eup %5679  ;;  %5697 = vrcp.f32 %v1313_v4  ;;  %v1314_v10 = vadd.f32 1.0, %v5678_v6  ;;  %1654 = vperm.xlu1 %5298, %v5668_v51  }
 0x276   :  { %5699 = vrcp.f32 %v1315_v1  ;;  %v5189_v13 = vpop.f32.mrb[76].mxu0  ;;  %v1319_v21 = vadd.f32 1.0, %v5680_v9 }
 0x277   :  { %v5682_v15 = vpop.eup %5681  ;;  %5701 = vrcp.f32 %v1314_v10  ;;  %v1091_v17 = vadd.f32 %v5189_v13, %v624_v8  ;;  %v1082_v18 = vpop.f32.mrb[77].mxu0 }
 0x278   :  { %v5684_v20 = vpop.eup %5683  ;;  %5703 = vrcp.f32 %v1316_v7  ;;  %1659 = vperm.xlu0 %5297, %v5682_v15   ;;  %v5190_v22 = vpop.f32.mrb[78].mxu0  ;;  %v1083_v25 = vadd.f32 %v1082_v18, %v622_v14 }
 0x279   :  { %v5686_v24 = vpop.eup %5685  ;;  %5705 = vpow2.f32 %v4881_v11  ;;  %v1085_v26 = vpop.f32.mrb[79].mxu0  ;;  %v4887_v28 = vmul.f32 -1.442695, %v1091_v17  ;;  %v1094_v29 = vadd.f32 %v5190_v22, %v625_v19 }
 0x27a   :  { %v5688_v27 = vpop.eup %5687  ;;  %5707 = vpow2.f32 %v4884_v12  ;;  %1664 = vperm.xlu1 %5298, %v5686_v24   ;;  %v1086_v32 = vadd.f32 %v1085_v26, %v623_v23  ;;  %v4885_v37 = vmul.f32 -1.442695, %v1083_v25 }
 0x27b   :  { %v5690_v30 = vpop.eup %5689  ;;  %v1317_v31 = vadd.f32 1.0, %v5688_v27  ;;  %5709 = vpow2.f32 %v4882_v16  ;;  %v4888_v40 = vmul.f32 -1.442695, %v1094_v29 }
 0x27c   :  { %v5692_v33 = vpop.eup %5691  ;;  %5711 = vrcp.f32 %v1319_v21  ;;  %v1320_v34 = vadd.f32 1.0, %v5690_v30  ;;  %1669 = vperm.xlu0 %5297, %v5684_v20   ;;  %v4886_v45 = vmul.f32 -1.442695, %v1086_v32  ;;  %v3808_v32 = vld [vmem:[%s8861_s8 + $0x8] sm:$0xff] }
 0x27d   :  { %v5694_v35 = vpop.eup %5693  ;;  %5713 = vrcp.f32 %v1317_v31  ;;  %v1318_v36 = vadd.f32 1.0, %v5692_v33  ;;  %v3807_v33 = vld [vmem:[%s8861_s8] sm:$0xff] }
 0x27e   :  { %v5696_v39 = vpop.eup %5695  ;;  %5715 = vpow2.f32 %v4887_v28  ;;  %1674 = vperm.xlu1 %5298, %v5694_v35   ;;  %v5193_v42 = vpop.f32.mrb[80].mxu0  ;;  %v3810_v35 = vld [vmem:[%s8861_s8 + $0x18] sm:$0xff] }
 0x27f   :  { %v5698_v44 = vpop.eup %5697  ;;  %5717 = vrcp.f32 %v1318_v36  ;;  %v1098_v46 = vpop.f32.mrb[81].mxu0  ;;  %v1107_v52 = vadd.f32 %v5193_v42, %v628_v41  ;;  %v1323_v58 = vadd.f32 1.0, %v5696_v39  ;;  %v5388_v36 = vld [vmem:[%s8860_s7 + $0x4] ss:$16 sps:$4 sm:$0xff]  }
 0x280   :  { %v5700_v48 = vpop.eup %5699  ;;  %5719 = vrcp.f32 %v1320_v34  ;;  %1679 = vperm.xlu0 %5297, %v5698_v44   ;;  %v1099_v49 = vadd.f32 %v1098_v46, %v626_v38  ;;  %v5194_v50 = vpop.f32.mrb[82].mxu0  ;;  %v3809_v34 = vld [vmem:[%s8861_s8 + $0x10] sm:$0xff]  ;;  %2610 = vmatprep.mubr.bf16.mxu0 %v5388_v36  ;;  %v3812_v38 = vld [vmem:[%s8861_s8 + $0x28] sm:$0xff]  ;;  %v3815_v42 = vld [vmem:[%s8861_s8 + $0x40] sm:$0xff] }
 0x281   :  { %v5702_v51 = vpop.eup %5701  ;;  %5721 = vpow2.f32 %v4885_v37  ;;  %v1101_v53 = vpop.f32.mrb[83].mxu0  ;;  %v4891_v62 = vmul.f32 -1.442695, %v1107_v52  ;;  %v3811_v37 = vld [vmem:[%s8861_s8 + $0x20] sm:$0xff]  ;;  %v3813_v39 = vld [vmem:[%s8861_s8 + $0x30] sm:$0xff]  ;;  %v3816_v46 = vld [vmem:[%s8861_s8 + $0x48] sm:$0xff] }
 0x282   :  { %v5704_v54 = vpop.eup %5703  ;;  %5723 = vpow2.f32 %v4888_v40  ;;  %1684 = vperm.xlu1 %5298, %v5702_v51   ;;  %v4889_v55 = vmul.f32 -1.442695, %v1099_v49  ;;  %v1102_v56 = vadd.f32 %v1101_v53, %v627_v47  ;;  %v3814_v40 = vld [vmem:[%s8861_s8 + $0x38] sm:$0xff]  ;;  %v1442_v44 = vld [vmem:[%s8862_s1] sm:$0xff]  ;;  %v3817_v51 = vld [vmem:[%s8861_s8 + $0x50] sm:$0xff] }
 0x283   :  { %v5706_v57 = vpop.eup %5705  ;;  %5725 = vpow2.f32 %v4886_v45  ;;  %v1443_v45 = vld [vmem:[%s8862_s1 + $0x8] sm:$0xff]  ;;  %v1445_v47 = vld [vmem:[%s8862_s1 + $0x18] sm:$0xff]  ;;  %v1444_v53 = vld [vmem:[%s8862_s1 + $0x10] sm:$0xff] }
 0x284   :  { %v5708_v59 = vpop.eup %5707  ;;  %v1321_v60 = vadd.f32 1.0, %v5706_v57  ;;  %1689 = vperm.xlu0 %5297, %v5700_v48   ;;  %5727 = vpow2.f32 %v4889_v55  ;;  %v4890_v2 = vmul.f32 -1.442695, %v1102_v56  ;;  %v3818_v56 = vld [vmem:[%s8861_s8 + $0x58] sm:$0xff]  ;;  %v3828_v36 = vld [vmem:[%s8861_s8 + $0xa8] sm:$0xff] }
 0x285   :  { %v5710_v61 = vpop.eup %5709  ;;  %v1324_v5 = vadd.f32 1.0, %v5708_v59 }
 0x286   :  { %v5712_v63 = vpop.eup %5711  ;;  %5729 = vrcp.f32 %v1321_v60  ;;  %v1322_v1 = vadd.f32 1.0, %v5710_v61  ;;  %1694 = vperm.xlu1 %5298, %v5704_v54   ;;  %v3819_v60 = vld [vmem:[%s8861_s8 + $0x60] sm:$0xff] }
 0x287   :  { %v5714_v3 = vpop.eup %5713  ;;  %5731 = vrcp.f32 %v1323_v58  ;;  %v1447_v58 = vld [vmem:[%s8862_s1 + $0x28] sm:$0xff]  ;;  %v1446_v61 = vld [vmem:[%s8862_s1 + $0x20] sm:$0xff] }
 0x288   :  { %v5716_v4 = vpop.eup %5715  ;;  %5733 = vrcp.f32 %v1322_v1  ;;  %1699 = vperm.xlu0 %5297, %v5714_v3   ;;  %v3820_v1 = vld [vmem:[%s8861_s8 + $0x68] sm:$0xff] }
 0x289   :  { %v5718_v6 = vpop.eup %5717  ;;  %5735 = vpow2.f32 %v4891_v62  ;;  %v1327_v12 = vadd.f32 1.0, %v5716_v4  ;;  %v1449_v4 = vld [vmem:[%s8862_s1 + $0x38] sm:$0xff] }
 0x28a   :  { %v5720_v7 = vpop.eup %5719  ;;  %5737 = vpow2.f32 %v4890_v2  ;;  %1704 = vperm.xlu1 %5298, %v5718_v6   ;;  %v3821_v6 = vld [vmem:[%s8861_s8 + $0x70] sm:$0xff] }
 0x28b   :  { %v5722_v8 = vpop.eup %5721  ;;  %5739 = vrcp.f32 %v1324_v5 }
 0x28c   :  { %v5724_v9 = vpop.eup %5723  ;;  %v1325_v10 = vadd.f32 1.0, %v5722_v8  ;;  %1709 = vperm.xlu0 %5297, %v5712_v63  }
 0x28d   :  { %v5726_v11 = vpop.eup %5725  ;;  %v1328_v15 = vadd.f32 1.0, %v5724_v9 }
 0x28e   :  { %5741 = vrcp.f32 %v1325_v10  ;;  %v1326_v13 = vadd.f32 1.0, %v5726_v11  ;;  %1714 = vperm.xlu1 %5298, %v5720_v7   ;;  %v5728_v14 = vpop.eup %5727  ;;  %v1448_v7 = vld [vmem:[%s8862_s1 + $0x30] sm:$0xff]  ;;  %v3822_v10 = vld [vmem:[%s8861_s8 + $0x78] sm:$0xff] }
 0x28f   :  { %v1329_v17 = vadd.f32 1.0, %v5728_v14 }
 0x290   :  { %v5730_v16 = vpop.eup %5729  ;;  %5743 = vrcp.f32 %v1326_v13  ;;  %v3823_v13 = vld [vmem:[%s8861_s8 + $0x80] sm:$0xff] }
 0x291   :  { %v5732_v18 = vpop.eup %5731  ;;  %1719 = vperm.xlu0 %5297, %v5730_v16   ;;  %5745 = vrcp.f32 %v1327_v12  ;;  %v1450_v16 = vld [vmem:[%s8862_s1 + $0x40] sm:$0xff] }
 0x292   :  { %v5734_v19 = vpop.eup %5733  ;;  %5747 = vrcp.f32 %v1328_v15  ;;  %v1451_v15 = vld [vmem:[%s8862_s1 + $0x48] sm:$0xff] }
 0x293   :  { %v5736_v20 = vpop.eup %5735  ;;  %1724 = vperm.xlu1 %5298, %v5734_v19   ;;  %5749 = vrcp.f32 %v1329_v17 }
 0x294   :  { %v5738_v21 = vpop.eup %5737  ;;  %v1331_v24 = vadd.f32 1.0, %v5736_v20 }
 0x295   :  { %v1330_v22 = vadd.f32 1.0, %v5738_v21  ;;  %1729 = vperm.xlu0 %5297, %v5732_v18   ;;  %v5740_v23 = vpop.eup %5739  ;;  %v3824_v18 = vld [vmem:[%s8861_s8 + $0x88] sm:$0xff] }
 0x297   :  { %5751 = vrcp.f32 %v1330_v22  ;;  %1734 = vperm.xlu1 %5298, %v5740_v23   ;;  %v3825_v22 = vld [vmem:[%s8861_s8 + $0x90] sm:$0xff] }
 0x298   :  { %v5742_v25 = vpop.eup %5741  ;;  %5753 = vrcp.f32 %v1331_v24  ;;  %v1453_v24 = vld [vmem:[%s8862_s1 + $0x58] sm:$0xff] }
 0x299   :  { %1739 = vperm.xlu0 %5297, %v5742_v25   ;;  %v1452_v25 = vld [vmem:[%s8862_s1 + $0x50] sm:$0xff] }
 0x29a   :  { %v5744_v26 = vpop.eup %5743 }
 0x29b   :  { %1744 = vperm.xlu1 %5298, %v5744_v26   ;;  %v5746_v27 = vpop.eup %5745 }
 0x29c   :  { %v5748_v28 = vpop.eup %5747 }
 0x29d   :  { %1749 = vperm.xlu0 %5297, %v5746_v27   ;;  %v5750_v29 = vpop.eup %5749  ;;  %v3826_v27 = vld [vmem:[%s8861_s8 + $0x98] sm:$0xff] }
 0x29f   :  { %1754 = vperm.xlu1 %5298, %v5748_v28  }
 0x2a1   :  { %v5752_v30 = vpop.eup %5751  ;;  %1759 = vperm.xlu0 %5297, %v5750_v29  }
 0x2a2   :  { %v5754_v31 = vpop.eup %5753 }
 0x2a3   :  { %1764 = vperm.xlu1 %5298, %v5752_v30  }
 0x2a5   :  { %1769 = vperm.xlu0 %5297, %v5754_v31   ;;  %v3827_v31 = vld [vmem:[%s8861_s8 + $0xa0] sm:$0xff] }
 0x2a7   :  { %3869 = vperm.xlu1 %5298, %v3808_v32  }
 0x2a9   :  { %3864 = vperm.xlu0 %5297, %v3807_v33   ;;  %v1455_v33 = vld [vmem:[%s8862_s1 + $0x68] sm:$0xff] }
 0x2ab   :  { %3874 = vperm.xlu1 %5298, %v3809_v34   ;;  %v1454_v34 = vld [vmem:[%s8862_s1 + $0x60] sm:$0xff] }
 0x2ad   :  { %3879 = vperm.xlu0 %5297, %v3810_v35  }
 0x2af   :  { %3884 = vperm.xlu1 %5298, %v3811_v37  }
 0x2b1   :  { %3889 = vperm.xlu0 %5297, %v3812_v38  }
 0x2b2   :  { %v1510_v41 = vpop.permute.xlu1 %1509 }
 0x2b3   :  { %3894 = vperm.xlu1 %5298, %v3813_v39   ;;  %v1500_v43 = vpop.permute.xlu0 %1499  ;;  %v1774_v59 = vmul.f32 %v1510_v41, %v1444_v53 }
 0x2b4   :  { %v1772_v50 = vmul.f32 %v1500_v43, %v1442_v44  ;;  %v1456_v43 = vld [vmem:[%s8862_s1 + $0x70] sm:$0xff] }
 0x2b5   :  { %3899 = vperm.xlu0 %5297, %v3814_v40   ;;  %v3829_v40 = vld [vmem:[%s8861_s8 + $0xb0] sm:$0xff] }
 0x2b6   :  { %v1515_v48 = vpop.permute.xlu1 %1514 }
 0x2b7   :  { %3904 = vperm.xlu1 %5298, %v3815_v42   ;;  %v1505_v49 = vpop.permute.xlu0 %1504  ;;  %v1775_v54 = vmul.f32 %v1515_v48, %v1445_v47  ;;  %v1457_v42 = vld [vmem:[%s8862_s1 + $0x78] sm:$0xff] }
 0x2b8   :  { %v1773_v52 = vmul.f32 %v1505_v49, %v1443_v45  ;;  %v3830_v45 = vld [vmem:[%s8861_s8 + $0xb8] sm:$0xff]  ;;  %v3831_v49 = vld [vmem:[%s8861_s8 + $0xc0] sm:$0xff] }
 0x2b9   :  { %3909 = vperm.xlu0 %5297, %v3816_v46   ;;  %v1828_v63 = vpack.c.bf16 %v1775_v54, %v1774_v59  ;;  %v3832_v54 = vld [vmem:[%s8861_s8 + $0xc8] sm:$0xff]  ;;  %v1460_v59 = vld [vmem:[%s8862_s1 + $0x90] sm:$0xff] }
 0x2ba   :  { %v1827_v55 = vpack.c.bf16 %v1773_v52, %v1772_v50  ;;  %v1458_v50 = vld [vmem:[%s8862_s1 + $0x80] sm:$0xff]  ;;  %v1459_v52 = vld [vmem:[%s8862_s1 + $0x88] sm:$0xff] }
 0x2bb   :  { %3914 = vperm.xlu1 %5298, %v3817_v51   ;;  %v1520_v57 = vpop.permute.xlu0 %1519 }
 0x2bc   :  { %2579 = vmatpush1.bf16.msra.mxu0 %v1827_v55  ;;  %5211 = vmatpush1.bf16.msra.mxu1 %v1827_v55  ;;  %v1776_v5 = vmul.f32 %v1520_v57, %v1446_v61  ;;  %v1461_v61 = vld [vmem:[%s8862_s1 + $0x98] sm:$0xff] }
 0x2bd   :  { %3919 = vperm.xlu0 %5297, %v3818_v56   ;;  %v1525_v62 = vpop.permute.xlu1 %1524  ;;  %2580 = vmatprep.subr.bf16.mxu0 %v5865_v0 }
 0x2be   :  { %v1777_v2 = vmul.f32 %v1525_v62, %v1447_v58  ;;  %5196 = vmatprep.subr.bf16.mxu1 %v5865_v0  ;;  %v3833_v58 = vld [vmem:[%s8861_s8 + $0xd0] sm:$0xff] }
 0x2bf   :  { %3924 = vperm.xlu1 %5298, %v3819_v60   ;;  %v1530_v3 = vpop.permute.xlu0 %1529 }
 0x2c0   :  { %2581 = vmatpush1.bf16.msra.mxu0 %v1828_v63  ;;  %5212 = vmatpush1.bf16.msra.mxu1 %v1828_v63  ;;  %v1829_v9 = vpack.c.bf16 %v1777_v2, %v1776_v5  ;;  %v1778_v12 = vmul.f32 %v1530_v3, %v1448_v7  ;;  %v3834_v63 = vld [vmem:[%s8861_s8 + $0xd8] sm:$0xff]  ;;  %v1462_v5 = vld [vmem:[%s8862_s1 + $0xa0] sm:$0xff]  ;;  %v1463_v7 = vld [vmem:[%s8862_s1 + $0xa8] sm:$0xff] }
 0x2c1   :  { %3929 = vperm.xlu0 %5297, %v3820_v1   ;;  %v1535_v8 = vpop.permute.xlu1 %1534  ;;  %2582 = vmatprep.subr.bf16.mxu0 %v5865_v0 }
 0x2c2   :  { %v1779_v11 = vmul.f32 %v1535_v8, %v1449_v4  ;;  %5197 = vmatprep.subr.bf16.mxu1 %v5865_v0  ;;  %v3835_v4 = vld [vmem:[%s8861_s8 + $0xe0] sm:$0xff] }
 0x2c3   :  { %3934 = vperm.xlu1 %5298, %v3821_v6  }
 0x2c4   :  { %v1540_v14 = vpop.permute.xlu0 %1539  ;;  %2583 = vmatpush1.bf16.msra.mxu0 %v1829_v9  ;;  %5213 = vmatpush1.bf16.msra.mxu1 %v1829_v9  ;;  %v1830_v17 = vpack.c.bf16 %v1779_v11, %v1778_v12  ;;  %v3836_v9 = vld [vmem:[%s8861_s8 + $0xe8] sm:$0xff] }
 0x2c5   :  { %3939 = vperm.xlu0 %5297, %v3822_v10   ;;  %2584 = vmatprep.subr.bf16.mxu0 %v5865_v0  ;;  %v1780_v21 = vmul.f32 %v1540_v14, %v1450_v16  ;;  %v1464_v14 = vld [vmem:[%s8862_s1 + $0xb0] sm:$0xff]  ;;  %v1465_v16 = vld [vmem:[%s8862_s1 + $0xb8] sm:$0xff] }
 0x2c6   :  { %v1545_v19 = vpop.permute.xlu1 %1544  ;;  %5198 = vmatprep.subr.bf16.mxu1 %v5865_v0 }
 0x2c7   :  { %3944 = vperm.xlu1 %5298, %v3823_v13   ;;  %v1781_v20 = vmul.f32 %v1545_v19, %v1451_v15  ;;  %v3837_v13 = vld [vmem:[%s8861_s8 + $0xf0] sm:$0xff] }
 0x2c8   :  { %v1550_v23 = vpop.permute.xlu0 %1549  ;;  %2585 = vmatpush1.bf16.msra.mxu0 %v1830_v17  ;;  %5214 = vmatpush1.bf16.msra.mxu1 %v1830_v17 }
 0x2c9   :  { %3949 = vperm.xlu0 %5297, %v3824_v18   ;;  %2586 = vmatprep.subr.bf16.mxu0 %v5865_v0  ;;  %v1831_v26 = vpack.c.bf16 %v1781_v20, %v1780_v21  ;;  %v1782_v30 = vmul.f32 %v1550_v23, %v1452_v25  ;;  %v3838_v18 = vld [vmem:[%s8861_s8 + $0xf8] sm:$0xff] }
 0x2ca   :  { %v1555_v28 = vpop.permute.xlu1 %1554  ;;  %5199 = vmatprep.subr.bf16.mxu1 %v5865_v0 }
 0x2cb   :  { %3954 = vperm.xlu1 %5298, %v3825_v22   ;;  %v1783_v29 = vmul.f32 %v1555_v28, %v1453_v24  ;;  %v3839_v22 = vld [vmem:[%s8861_s8 + $0x100] sm:$0xff] }
 0x2cc   :  { %v1560_v32 = vpop.permute.xlu0 %1559  ;;  %2587 = vmatpush1.bf16.msra.mxu0 %v1831_v26  ;;  %5215 = vmatpush1.bf16.msra.mxu1 %v1831_v26  ;;  %v1466_v24 = vld [vmem:[%s8862_s1 + $0xc0] sm:$0xff]  ;;  %v3840_v26 = vld [vmem:[%s8861_s8 + $0x108] sm:$0xff] }
 0x2cd   :  { %3959 = vperm.xlu0 %5297, %v3826_v27   ;;  %2588 = vmatprep.subr.bf16.mxu0 %v5865_v0  ;;  %v1832_v35 = vpack.c.bf16 %v1783_v29, %v1782_v30  ;;  %v1784_v39 = vmul.f32 %v1560_v32, %v1454_v34  ;;  %v1467_v27 = vld [vmem:[%s8862_s1 + $0xc8] sm:$0xff]  ;;  %v3841_v29 = vld [vmem:[%s8861_s8 + $0x110] sm:$0xff]  ;;  %v3842_v34 = vld [vmem:[%s8861_s8 + $0x118] sm:$0xff] }
 0x2ce   :  { %v1565_v37 = vpop.permute.xlu1 %1564  ;;  %5200 = vmatprep.subr.bf16.mxu1 %v5865_v0  ;;  %v1468_v32 = vld [vmem:[%s8862_s1 + $0xd0] sm:$0xff] }
 0x2cf   :  { %3964 = vperm.xlu1 %5298, %v3827_v31   ;;  %v1785_v38 = vmul.f32 %v1565_v37, %v1455_v33 }
 0x2d0   :  { %v1570_v41 = vpop.permute.xlu0 %1569  ;;  %2589 = vmatpush1.bf16.msra.mxu0 %v1832_v35  ;;  %5216 = vmatpush1.bf16.msra.mxu1 %v1832_v35  ;;  %v1469_v35 = vld [vmem:[%s8862_s1 + $0xd8] sm:$0xff] }
 0x2d1   :  { %3969 = vperm.xlu0 %5297, %v3828_v36   ;;  %2590 = vmatprep.subr.bf16.mxu0 %v5865_v0  ;;  %v1833_v44 = vpack.c.bf16 %v1785_v38, %v1784_v39  ;;  %v1786_v48 = vmul.f32 %v1570_v41, %v1456_v43  ;;  %v3843_v38 = vld [vmem:[%s8861_s8 + $0x120] sm:$0xff]  ;;  %v3844_v43 = vld [vmem:[%s8861_s8 + $0x128] sm:$0xff] }
 0x2d2   :  { %v1575_v46 = vpop.permute.xlu1 %1574  ;;  %5201 = vmatprep.subr.bf16.mxu1 %v5865_v0  ;;  %v1470_v41 = vld [vmem:[%s8862_s1 + $0xe0] sm:$0xff] }
 0x2d3   :  { %3974 = vperm.xlu1 %5298, %v3829_v40   ;;  %v1787_v47 = vmul.f32 %v1575_v46, %v1457_v42 }
 0x2d4   :  { %2591 = vmatpush1.bf16.msra.mxu0 %v1833_v44  ;;  %5217 = vmatpush1.bf16.msra.mxu1 %v1833_v44  ;;  %v1471_v44 = vld [vmem:[%s8862_s1 + $0xe8] sm:$0xff] }
 0x2d5   :  { %3979 = vperm.xlu0 %5297, %v3830_v45   ;;  %v1580_v51 = vpop.permute.xlu0 %1579  ;;  %2592 = vmatprep.subr.bf16.mxu0 %v5865_v0  ;;  %v1834_v53 = vpack.c.bf16 %v1787_v47, %v1786_v48  ;;  %v3845_v47 = vld [vmem:[%s8861_s8 + $0x130] sm:$0xff] }
 0x2d6   :  { %5202 = vmatprep.subr.bf16.mxu1 %v5865_v0  ;;  %v1788_v56 = vmul.f32 %v1580_v51, %v1458_v50  ;;  %v1472_v50 = vld [vmem:[%s8862_s1 + $0xf0] sm:$0xff] }
 0x2d7   :  { %3984 = vperm.xlu1 %5298, %v3831_v49   ;;  %v1585_v55 = vpop.permute.xlu1 %1584 }
 0x2d8   :  { %v1789_v57 = vmul.f32 %v1585_v55, %v1459_v52  ;;  %2593 = vmatpush1.bf16.msra.mxu0 %v1834_v53  ;;  %5218 = vmatpush1.bf16.msra.mxu1 %v1834_v53  ;;  %v3846_v52 = vld [vmem:[%s8861_s8 + $0x138] sm:$0xff] }
 0x2d9   :  { %3989 = vperm.xlu0 %5297, %v3832_v54   ;;  %v1590_v60 = vpop.permute.xlu0 %1589  ;;  %2594 = vmatprep.subr.bf16.mxu0 %v5865_v0  ;;  %v1473_v53 = vld [vmem:[%s8862_s1 + $0xf8] sm:$0xff] }
 0x2da   :  { %v1835_v62 = vpack.c.bf16 %v1789_v57, %v1788_v56  ;;  %5203 = vmatprep.subr.bf16.mxu1 %v5865_v0  ;;  %v1790_v2 = vmul.f32 %v1590_v60, %v1460_v59  ;;  %v3847_v56 = vld [vmem:[%s8861_s8 + $0x140] sm:$0xff]  ;;  %v3848_v59 = vld [vmem:[%s8861_s8 + $0x148] sm:$0xff] }
 0x2db   :  { %3994 = vperm.xlu1 %5298, %v3833_v58   ;;  %v1595_v1 = vpop.permute.xlu1 %1594 }
 0x2dc   :  { %v1791_v3 = vmul.f32 %v1595_v1, %v1461_v61  ;;  %2595 = vmatpush1.bf16.msra.mxu0 %v1835_v62  ;;  %5219 = vmatpush1.bf16.msra.mxu1 %v1835_v62  ;;  %v1474_v61 = vld [vmem:[%s8862_s1 + $0x100] sm:$0xff]  ;;  %v3849_v1 = vld [vmem:[%s8861_s8 + $0x150] sm:$0xff] }
 0x2dd   :  { %3999 = vperm.xlu0 %5297, %v3834_v63   ;;  %v1600_v6 = vpop.permute.xlu0 %1599  ;;  %2596 = vmatprep.subr.bf16.mxu0 %v5865_v0  ;;  %v1475_v63 = vld [vmem:[%s8862_s1 + $0x108] sm:$0xff] }
 0x2de   :  { %v1836_v8 = vpack.c.bf16 %v1791_v3, %v1790_v2  ;;  %5204 = vmatprep.subr.bf16.mxu1 %v5865_v0  ;;  %v1792_v11 = vmul.f32 %v1600_v6, %v1462_v5  ;;  %v5386_v2 = vld [vmem:[%s8860_s7] ss:$16 sps:$4 sm:$0xff]  }
 0x2df   :  { %4004 = vperm.xlu1 %5298, %v3835_v4   ;;  %v1605_v10 = vpop.permute.xlu1 %1604  ;;  %v5369_v4 = vld [vmem:[%s8860_s7 + $0x2c0] ss:$16 sps:$4 sm:$0xff]  }
 0x2e0   :  { %v1793_v12 = vmul.f32 %v1605_v10, %v1463_v7  ;;  %2597 = vmatpush1.bf16.msra.mxu0 %v1836_v8  ;;  %5220 = vmatpush1.bf16.msra.mxu1 %v1836_v8  ;;  %v3850_v7 = vld [vmem:[%s8861_s8 + $0x158] sm:$0xff]  ;;  %v5372_v8 = vld [vmem:[%s8860_s7 + $0x2e4] ss:$16 sps:$4 sm:$0xff]  }
 0x2e1   :  { %4009 = vperm.xlu0 %5297, %v3836_v9   ;;  %v1610_v15 = vpop.permute.xlu0 %1609  ;;  %2598 = vmatprep.subr.bf16.mxu0 %v5865_v0  ;;  %v1476_v9 = vld [vmem:[%s8862_s1 + $0x110] sm:$0xff] }
 0x2e2   :  { %v1837_v17 = vpack.c.bf16 %v1793_v12, %v1792_v11  ;;  %5205 = vmatprep.subr.bf16.mxu1 %v5865_v0  ;;  %v1794_v20 = vmul.f32 %v1610_v15, %v1464_v14  ;;  %v1477_v11 = vld [vmem:[%s8862_s1 + $0x118] sm:$0xff]  ;;  %v5392_v14 = vld [vmem:[%s8860_s7 + $0x24] ss:$16 sps:$4 sm:$0xff]  }
 0x2e3   :  { %4014 = vperm.xlu1 %5298, %v3837_v13   ;;  %v1615_v19 = vpop.permute.xlu1 %1614  ;;  %v3851_v13 = vld [vmem:[%s8861_s8 + $0x160] sm:$0xff] }
 0x2e4   :  { %v1795_v21 = vmul.f32 %v1615_v19, %v1465_v16  ;;  %2599 = vmatpush1.bf16.msra.mxu0 %v1837_v17  ;;  %5221 = vmatpush1.bf16.msra.mxu1 %v1837_v17  ;;  %v1478_v19 = vld [vmem:[%s8862_s1 + $0x120] sm:$0xff] }
 0x2e5   :  { %4019 = vperm.xlu0 %5297, %v3838_v18   ;;  %2600 = vmatprep.subr.bf16.mxu0 %v5865_v0  ;;  %v3852_v18 = vld [vmem:[%s8861_s8 + $0x168] sm:$0xff] }
 0x2e6   :  { %v1838_v23 = vpack.c.bf16 %v1795_v21, %v1794_v20  ;;  %v1620_v25 = vpop.permute.xlu0 %1619  ;;  %5206 = vmatprep.subr.bf16.mxu1 %v5865_v0  ;;  %v1479_v21 = vld [vmem:[%s8862_s1 + $0x128] sm:$0xff] }
 0x2e7   :  { %4024 = vperm.xlu1 %5298, %v3839_v22   ;;  %v1796_v30 = vmul.f32 %v1620_v25, %v1466_v24  ;;  %v5396_v24 = vld [vmem:[%s8860_s7 + $0x20] ss:$16 sps:$4 sm:$0xff]  }
 0x2e8   :  { %v1625_v28 = vpop.permute.xlu1 %1624  ;;  %2601 = vmatpush1.bf16.msra.mxu0 %v1838_v23  ;;  %5222 = vmatpush1.bf16.msra.mxu1 %v1838_v23  ;;  %v3853_v23 = vld [vmem:[%s8861_s8 + $0x170] sm:$0xff] }
 0x2e9   :  { %4029 = vperm.xlu0 %5297, %v3840_v26   ;;  %v1797_v31 = vmul.f32 %v1625_v28, %v1467_v27  ;;  %2602 = vmatprep.subr.bf16.mxu0 %v5865_v0  ;;  %v5374_v26 = vld [vmem:[%s8860_s7 + $0x2e0] ss:$16 sps:$4 sm:$0xff]  }
 0x2ea   :  { %v1630_v33 = vpop.permute.xlu0 %1629  ;;  %5207 = vmatprep.subr.bf16.mxu1 %v5865_v0 }
 0x2eb   :  { %v1839_v36 = vpack.c.bf16 %v1797_v31, %v1796_v30  ;;  %4034 = vperm.xlu1 %5298, %v3841_v29   ;;  %v1798_v39 = vmul.f32 %v1630_v33, %v1468_v32  ;;  %v3854_v29 = vld [vmem:[%s8861_s8 + $0x178] sm:$0xff]  ;;  %v5375_v30 = vld [vmem:[%s8860_s7 + $0x304] ss:$16 sps:$4 sm:$0xff]  }
 0x2ec   :  { %v1635_v37 = vpop.permute.xlu1 %1634  ;;  %v1480_v31 = vld [vmem:[%s8862_s1 + $0x130] sm:$0xff]  ;;  %v1481_v33 = vld [vmem:[%s8862_s1 + $0x138] sm:$0xff] }
 0x2ed   :  { %4039 = vperm.xlu0 %5297, %v3842_v34   ;;  %v1799_v40 = vmul.f32 %v1635_v37, %v1469_v35  ;;  %2603 = vmatpush1.bf16.msra.mxu0 %v1839_v36  ;;  %v3855_v35 = vld [vmem:[%s8861_s8 + $0x180] sm:$0xff] }
 0x2ee   :  { %v1640_v42 = vpop.permute.xlu0 %1639  ;;  %5223 = vmatpush1.bf16.msra.mxu1 %v1839_v36  ;;  %2604 = vmatprep.subr.bf16.mxu0 %v5865_v0  ;;  %v5398_v36 = vld [vmem:[%s8860_s7 + $0x44] ss:$16 sps:$4 sm:$0xff]  }
 0x2ef   :  { %v1840_v45 = vpack.c.bf16 %v1799_v40, %v1798_v39  ;;  %4044 = vperm.xlu1 %5298, %v3843_v38   ;;  %5208 = vmatprep.subr.bf16.mxu1 %v5865_v0  ;;  %v1800_v48 = vmul.f32 %v1640_v42, %v1470_v41  ;;  %v3856_v40 = vld [vmem:[%s8861_s8 + $0x188] sm:$0xff]  ;;  %v1482_v41 = vld [vmem:[%s8862_s1 + $0x140] sm:$0xff] }
 0x2f0   :  { %v1645_v46 = vpop.permute.xlu1 %1644 }
 0x2f1   :  { %4049 = vperm.xlu0 %5297, %v3844_v43   ;;  %v1801_v49 = vmul.f32 %v1645_v46, %v1471_v44  ;;  %2605 = vmatpush1.bf16.msra.mxu0 %v1840_v45  ;;  %v1483_v43 = vld [vmem:[%s8862_s1 + $0x148] sm:$0xff]  ;;  %v5402_v46 = vld [vmem:[%s8860_s7 + $0x40] ss:$16 sps:$4 sm:$0xff]  }
 0x2f2   :  { %v1650_v51 = vpop.permute.xlu0 %1649  ;;  %5224 = vmatpush1.bf16.msra.mxu1 %v1840_v45  ;;  %2606 = vmatprep.subr.bf16.mxu0 %v5865_v0  ;;  %v3857_v45 = vld [vmem:[%s8861_s8 + $0x190] sm:$0xff] }
 0x2f3   :  { %v1841_v54 = vpack.c.bf16 %v1801_v49, %v1800_v48  ;;  %4054 = vperm.xlu1 %5298, %v3845_v47   ;;  %5209 = vmatprep.subr.bf16.mxu1 %v5865_v0  ;;  %v1802_v57 = vmul.f32 %v1650_v51, %v1472_v50  ;;  %v5377_v48 = vld [vmem:[%s8860_s7 + $0x300] ss:$16 sps:$4 sm:$0xff]   ;;  %v3858_v51 = vld [vmem:[%s8861_s8 + $0x198] sm:$0xff] }
 0x2f4   :  { %v1655_v55 = vpop.permute.xlu1 %1654 }
 0x2f5   :  { %4059 = vperm.xlu0 %5297, %v3846_v52   ;;  %v1803_v58 = vmul.f32 %v1655_v55, %v1473_v53  ;;  %2607 = vmatpush1.bf16.msra.mxu0 %v1841_v54  ;;  %v5378_v52 = vld [vmem:[%s8860_s7 + $0x324] ss:$16 sps:$4 sm:$0xff]   ;;  %v1485_v55 = vld [vmem:[%s8862_s1 + $0x158] sm:$0xff] }
 0x2f6   :  { %5225 = vmatpush1.bf16.msra.mxu1 %v1841_v54  ;;  %2608 = vmatprep.subr.bf16.mxu0 %v5865_v0  ;;  %v1484_v53 = vld [vmem:[%s8862_s1 + $0x150] sm:$0xff] }
 0x2f7   :  { %v1842_v60 = vpack.c.bf16 %v1803_v58, %v1802_v57  ;;  %4064 = vperm.xlu1 %5298, %v3847_v56   ;;  %v1660_v62 = vpop.permute.xlu0 %1659  ;;  %5210 = vmatprep.subr.bf16.mxu1 %v5865_v0  ;;  %v3859_v57 = vld [vmem:[%s8861_s8 + $0x1a0] sm:$0xff] }
 0x2f8   :  { %v1804_v5 = vmul.f32 %v1660_v62, %v1474_v61  ;;  %v5404_v58 = vld [vmem:[%s8860_s7 + $0x64] ss:$16 sps:$4 sm:$0xff]   ;;  %v3860_v62 = vld [vmem:[%s8861_s8 + $0x1a8] sm:$0xff] }
 0x2f9   :  { %4069 = vperm.xlu0 %5297, %v3848_v59   ;;  %v1665_v3 = vpop.permute.xlu1 %1664  ;;  %2609 = vmatpush1.bf16.msra.mxu0 %v1842_v60 }
 0x2fa   :  { %v1805_v6 = vmul.f32 %v1665_v3, %v1475_v63  ;;  %5226 = vmatpush1.bf16.msra.mxu1 %v1842_v60  ;;  %v1486_v63 = vld [vmem:[%s8862_s1 + $0x160] sm:$0xff]  ;;  %v1487_v3 = vld [vmem:[%s8862_s1 + $0x168] sm:$0xff] }
 0x2fb   :  { %4074 = vperm.xlu1 %5298, %v3849_v1   ;;  %v1670_v10 = vpop.permute.xlu0 %1669  ;;  %2834 = vmatprep.subr.bf16.mxu1 %v5865_v0 }
 0x2fc   :  { %v1843_v12 = vpack.c.bf16 %v1805_v6, %v1804_v5  ;;  %2611 = vmatmul.mubr.bf16.vlgmr.msra.gmra.mrb[84].mxu0 %v5386_v2  ;;  %v1806_v16 = vmul.f32 %v1670_v10, %v1476_v9  ;;  %v5408_v5 = vld [vmem:[%s8860_s7 + $0x60] ss:$16 sps:$4 sm:$0xff]   ;;  %v5381_v9 = vld [vmem:[%s8860_s7 + $0x344] ss:$16 sps:$4 sm:$0xff]  }
 0x2fd   :  { %4079 = vperm.xlu0 %5297, %v3850_v7   ;;  %v1675_v15 = vpop.permute.xlu1 %1674  ;;  %2787 = vmatmul.mubr.bf16.vlgmr.msra.gmra.mrb[28].mxu1 %v5369_v4  ;;  %v3861_v4 = vld [vmem:[%s8861_s8 + $0x1b0] sm:$0xff] }
 0x2fe   :  { %v1807_v17 = vmul.f32 %v1675_v15, %v1477_v11  ;;  %2835 = vmatpush1.bf16.msra.mxu1 %v1843_v12  ;;  %2794 = vmatprep.mubr.bf16.mxu1 %v5372_v8  ;;  %v5380_v6 = vld [vmem:[%s8860_s7 + $0x320] ss:$16 sps:$4 sm:$0xff]   ;;  %v5410_v10 = vld [vmem:[%s8860_s7 + $0x84] ss:$16 sps:$4 sm:$0xff]   ;;  %v1489_v15 = vld [vmem:[%s8862_s1 + $0x178] sm:$0xff] }
 0x2ff   :  { %4084 = vperm.xlu1 %5298, %v3851_v13   ;;  %v1680_v20 = vpop.permute.xlu0 %1679  ;;  %2836 = vmatprep.subr.bf16.mxu1 %v5865_v0  ;;  %v4192_v8 = vld [vmem:[%s8863_s9] sm:$0xff]  ;;  %v1488_v13 = vld [vmem:[%s8862_s1 + $0x170] sm:$0xff] }
 0x300   :  { %v1844_v22 = vpack.c.bf16 %v1807_v17, %v1806_v16  ;;  %2618 = vmatprep.mubr.bf16.mxu0 %v5392_v14  ;;  %v1808_v27 = vmul.f32 %v1680_v20, %v1478_v19  ;;  %v4193_v16 = vld [vmem:[%s8863_s9 + $0x8] sm:$0xff]  ;;  %v4194_v19 = vld [vmem:[%s8863_s9 + $0x10] sm:$0xff] }
 0x301   :  { %4089 = vperm.xlu0 %5297, %v3852_v18   ;;  %v1685_v25 = vpop.permute.xlu1 %1684 }
 0x302   :  { %v1809_v28 = vmul.f32 %v1685_v25, %v1479_v21  ;;  %2837 = vmatpush1.bf16.msra.mxu1 %v1844_v22  ;;  %v1490_v22 = vld [vmem:[%s8862_s1 + $0x180] sm:$0xff]  ;;  %v1491_v25 = vld [vmem:[%s8862_s1 + $0x188] sm:$0xff] }
 0x303   :  { %4094 = vperm.xlu1 %5298, %v3853_v23   ;;  %v1690_v32 = vpop.permute.xlu0 %1689  ;;  %2838 = vmatprep.subr.bf16.mxu1 %v5865_v0  ;;  %v1963_v23 = vld [vmem:[%s8860_s7 + $0x360] sm:$0xff] }
 0x304   :  { %v1845_v34 = vpack.c.bf16 %v1809_v28, %v1808_v27  ;;  %2619 = vmatmul.mubr.bf16.gmra.mrb[88].mxu0 %v5396_v24  ;;  %v1810_v38 = vmul.f32 %v1690_v32, %v1480_v31  ;;  %v5414_v27 = vld [vmem:[%s8860_s7 + $0x80] ss:$16 sps:$4 sm:$0xff]   ;;  %v5001_v32 = vcombine.high %v1963_v23, %v1963_v23 }
 0x305   :  { %4099 = vperm.xlu0 %5297, %v3854_v29   ;;  %v1695_v37 = vpop.permute.xlu1 %1694  ;;  %2795 = vmatmul.mubr.bf16.gmra.mrb[32].mxu1 %v5374_v26  ;;  %v4195_v26 = vld [vmem:[%s8863_s9 + $0x18] sm:$0xff]  ;;  %v5383_v29 = vld [vmem:[%s8860_s7 + $0x340] ss:$16 sps:$4 sm:$0xff]  }
 0x306   :  { %v1811_v39 = vmul.f32 %v1695_v37, %v1481_v33  ;;  %2839 = vmatpush1.bf16.msra.mxu1 %v1845_v34  ;;  %2802 = vmatprep.mubr.bf16.mxu1 %v5375_v30  ;;  %v4196_v31 = vld [vmem:[%s8863_s9 + $0x20] sm:$0xff] }
 0x307   :  { %4104 = vperm.xlu1 %5298, %v3855_v35   ;;  %v1700_v42 = vpop.permute.xlu0 %1699  ;;  %2840 = vmatprep.subr.bf16.mxu1 %v5865_v0  ;;  %v5416_v33 = vld [vmem:[%s8860_s7 + $0xa4] ss:$16 sps:$4 sm:$0xff]  }
 0x308   :  { %v1846_v44 = vpack.c.bf16 %v1811_v39, %v1810_v38  ;;  %2626 = vmatprep.mubr.bf16.mxu0 %v5398_v36  ;;  %v1812_v49 = vmul.f32 %v1700_v42, %v1482_v41  ;;  %v1492_v36 = vld [vmem:[%s8862_s1 + $0x190] sm:$0xff]  ;;  %v1493_v38 = vld [vmem:[%s8862_s1 + $0x198] sm:$0xff]  ;;  %v4197_v39 = vld [vmem:[%s8863_s9 + $0x28] sm:$0xff] }
 0x309   :  { %4109 = vperm.xlu0 %5297, %v3856_v40   ;;  %v1705_v47 = vpop.permute.xlu1 %1704  ;;  %v4198_v42 = vld [vmem:[%s8863_s9 + $0x30] sm:$0xff] }
 0x30a   :  { %v1813_v50 = vmul.f32 %v1705_v47, %v1483_v43  ;;  %2841 = vmatpush1.bf16.msra.mxu1 %v1846_v44  ;;  %v1495_v47 = vld [vmem:[%s8862_s1 + $0x1a8] sm:$0xff] }
 0x30b   :  { %4114 = vperm.xlu1 %5298, %v3857_v45   ;;  %v1710_v54 = vpop.permute.xlu0 %1709  ;;  %2842 = vmatprep.subr.bf16.mxu1 %v5865_v0  ;;  %v1494_v45 = vld [vmem:[%s8862_s1 + $0x1a0] sm:$0xff] }
 0x30c   :  { %v1847_v56 = vpack.c.bf16 %v1813_v50, %v1812_v49  ;;  %2627 = vmatmul.mubr.bf16.gmra.mrb[92].mxu0 %v5402_v46  ;;  %v1814_v60 = vmul.f32 %v1710_v54, %v1484_v53  ;;  %v5420_v49 = vld [vmem:[%s8860_s7 + $0xa0] ss:$16 sps:$4 sm:$0xff]  }
 0x30d   :  { %4119 = vperm.xlu0 %5297, %v3858_v51   ;;  %v1715_v59 = vpop.permute.xlu1 %1714  ;;  %2803 = vmatmul.mubr.bf16.gmra.mrb[36].mxu1 %v5377_v48  ;;  %v4199_v48 = vld [vmem:[%s8863_s9 + $0x38] sm:$0xff]  ;;  %v1496_v51 = vld [vmem:[%s8862_s1 + $0x1b0] sm:$0xff]  ;;  %v4200_v54 = vld [vmem:[%s8863_s9 + $0x40] sm:$0xff] }
 0x30e   :  { %v1815_v61 = vmul.f32 %v1715_v59, %v1485_v55  ;;  %2843 = vmatpush1.bf16.msra.mxu1 %v1847_v56  ;;  %2810 = vmatprep.mubr.bf16.mxu1 %v5378_v52  ;;  %v5000_v52 = vcombine.low %v1963_v23, %v1963_v23  ;;  %v5391_v55 = vld [vmem:[%s8860_s7 + $0xc] ss:$16 sps:$4 sm:$0xff]   ;;  %v5422_v56 = vld [vmem:[%s8860_s7 + $0xc4] ss:$16 sps:$4 sm:$0xff]  }
 0x30f   :  { %4124 = vperm.xlu1 %5298, %v3859_v57   ;;  %2844 = vmatprep.subr.bf16.mxu1 %v5865_v0  ;;  %v5440_v23 = vld [vmem:[%s8860_s7 + $0x124] ss:$16 sps:$4 sm:$0xff]  }
 0x310   :  { %v1848_v1 = vpack.c.bf16 %v1815_v61, %v1814_v60  ;;  %v1720_v2 = vpop.permute.xlu0 %1719  ;;  %2634 = vmatprep.mubr.bf16.mxu0 %v5404_v58  ;;  %v4201_v60 = vld [vmem:[%s8863_s9 + $0x48] sm:$0xff] }
 0x311   :  { %4129 = vperm.xlu0 %5297, %v3860_v62   ;;  %v1816_v11 = vmul.f32 %v1720_v2, %v1486_v63  ;;  %v4202_v63 = vld [vmem:[%s8863_s9 + $0x50] sm:$0xff]  ;;  %v4203_v2 = vld [vmem:[%s8863_s9 + $0x58] sm:$0xff] }
 0x312   :  { %v1725_v7 = vpop.permute.xlu1 %1724  ;;  %2845 = vmatpush1.bf16.msra.mxu1 %v1848_v1 }
 0x313   :  { %v1817_v12 = vmul.f32 %v1725_v7, %v1487_v3  ;;  %4134 = vperm.xlu1 %5298, %v3861_v4   ;;  %2846 = vmatprep.subr.bf16.mxu1 %v5865_v0  ;;  %v5426_v3 = vld [vmem:[%s8860_s7 + $0xc0] ss:$16 sps:$4 sm:$0xff]   ;;  %v5428_v4 = vld [vmem:[%s8860_s7 + $0xe4] ss:$16 sps:$4 sm:$0xff]   ;;  %v5389_v7 = vld [vmem:[%s8860_s7 + $0x8] ss:$16 sps:$4 sm:$0xff]  }
 0x314   :  { %v1730_v14 = vpop.permute.xlu0 %1729  ;;  %2635 = vmatmul.mubr.bf16.gmra.mrb[96].mxu0 %v5408_v5  ;;  %v4204_v5 = vld [vmem:[%s8863_s9 + $0x60] sm:$0xff] }
 0x315   :  { %v1849_v17 = vpack.c.bf16 %v1817_v12, %v1816_v11  ;;  %4249 = vperm.xlu0 %5297, %v4192_v8   ;;  %2811 = vmatmul.mubr.bf16.gmra.mrb[40].mxu1 %v5380_v6  ;;  %v1818_v20 = vmul.f32 %v1730_v14, %v1488_v13  ;;  %v4205_v8 = vld [vmem:[%s8863_s9 + $0x68] sm:$0xff]  ;;  %v5432_v11 = vld [vmem:[%s8860_s7 + $0xe0] ss:$16 sps:$4 sm:$0xff]   ;;  %v5434_v12 = vld [vmem:[%s8860_s7 + $0x104] ss:$16 sps:$4 sm:$0xff]  }
 0x316   :  { %v1735_v18 = vpop.permute.xlu1 %1734  ;;  %2818 = vmatprep.mubr.bf16.mxu1 %v5381_v9  ;;  %2642 = vmatprep.mubr.bf16.mxu0 %v5410_v10  ;;  %v4206_v9 = vld [vmem:[%s8863_s9 + $0x70] sm:$0xff]  ;;  %v4207_v10 = vld [vmem:[%s8863_s9 + $0x78] sm:$0xff]  ;;  %v4208_v13 = vld [vmem:[%s8863_s9 + $0x80] sm:$0xff] }
 0x317   :  { %v1819_v21 = vmul.f32 %v1735_v18, %v1489_v15  ;;  %4254 = vperm.xlu1 %5298, %v4193_v16   ;;  %2847 = vmatpush1.bf16.msra.mxu1 %v1849_v17  ;;  %v5397_v14 = vld [vmem:[%s8860_s7 + $0x28] ss:$16 sps:$4 sm:$0xff]   ;;  %v5400_v16 = vld [vmem:[%s8860_s7 + $0x4c] ss:$16 sps:$4 sm:$0xff]  }
 0x318   :  { %v1740_v24 = vpop.permute.xlu0 %1739  ;;  %2848 = vmatprep.subr.bf16.mxu1 %v5865_v0  ;;  %v4209_v18 = vld [vmem:[%s8863_s9 + $0x88] sm:$0xff] }
 0x319   :  { %v1850_v28 = vpack.c.bf16 %v1819_v21, %v1818_v20  ;;  %4259 = vperm.xlu0 %5297, %v4194_v19   ;;  %v1820_v34 = vmul.f32 %v1740_v24, %v1490_v22  ;;  %v4210_v19 = vld [vmem:[%s8863_s9 + $0x90] sm:$0xff]  ;;  %v4211_v20 = vld [vmem:[%s8863_s9 + $0x98] sm:$0xff] }
 0x31a   :  { %v1745_v30 = vpop.permute.xlu1 %1744  ;;  %v5438_v21 = vld [vmem:[%s8860_s7 + $0x100] ss:$16 sps:$4 sm:$0xff]  }
 0x31b   :  { %v1821_v35 = vmul.f32 %v1745_v30, %v1491_v25  ;;  %4264 = vperm.xlu1 %5298, %v4195_v26   ;;  %2849 = vmatpush1.bf16.msra.mxu1 %v1850_v28  ;;  %v4212_v25 = vld [vmem:[%s8863_s9 + $0xa0] sm:$0xff]  ;;  %v5403_v26 = vld [vmem:[%s8860_s7 + $0x48] ss:$16 sps:$4 sm:$0xff]  }
 0x31c   :  { %v1750_v37 = vpop.permute.xlu0 %1749  ;;  %2850 = vmatprep.subr.bf16.mxu1 %v5865_v0  ;;  %2643 = vmatmul.mubr.bf16.gmra.mrb[100].mxu0 %v5414_v27  ;;  %v5406_v27 = vld [vmem:[%s8860_s7 + $0x6c] ss:$16 sps:$4 sm:$0xff]  }
 0x31d   :  { %v1851_v40 = vpack.c.bf16 %v1821_v35, %v1820_v34  ;;  %4269 = vperm.xlu0 %5297, %v4196_v31   ;;  %2819 = vmatmul.mubr.bf16.gmra.mrb[44].mxu1 %v5383_v29  ;;  %v1822_v43 = vmul.f32 %v1750_v37, %v1492_v36  ;;  %v4213_v28 = vld [vmem:[%s8863_s9 + $0xa8] sm:$0xff]  ;;  %v4214_v29 = vld [vmem:[%s8863_s9 + $0xb0] sm:$0xff]  ;;  %v4216_v35 = vld [vmem:[%s8863_s9 + $0xc0] sm:$0xff] }
 0x31e   :  { %v1755_v41 = vpop.permute.xlu1 %1754  ;;  %2826 = vmatprep.mubr.bf16.mxu1 %v5001_v32  ;;  %2650 = vmatprep.mubr.bf16.mxu0 %v5416_v33  ;;  %v4215_v32 = vld [vmem:[%s8863_s9 + $0xb8] sm:$0xff]  ;;  %v5444_v33 = vld [vmem:[%s8860_s7 + $0x120] ss:$16 sps:$4 sm:$0xff]   ;;  %v5446_v34 = vld [vmem:[%s8860_s7 + $0x144] ss:$16 sps:$4 sm:$0xff]  }
 0x31f   :  { %v1823_v44 = vmul.f32 %v1755_v41, %v1493_v38  ;;  %4274 = vperm.xlu1 %5298, %v4197_v39   ;;  %2851 = vmatpush1.bf16.msra.mxu1 %v1851_v40  ;;  %v5409_v36 = vld [vmem:[%s8860_s7 + $0x68] ss:$16 sps:$4 sm:$0xff]   ;;  %v5412_v37 = vld [vmem:[%s8860_s7 + $0x8c] ss:$16 sps:$4 sm:$0xff]   ;;  %v4218_v41 = vld [vmem:[%s8863_s9 + $0xd0] sm:$0xff] }
 0x320   :  { %v1760_v46 = vpop.permute.xlu0 %1759  ;;  %2852 = vmatprep.subr.bf16.mxu1 %v5865_v0  ;;  %v4217_v38 = vld [vmem:[%s8863_s9 + $0xc8] sm:$0xff] }
 0x321   :  { %v1852_v50 = vpack.c.bf16 %v1823_v44, %v1822_v43  ;;  %4279 = vperm.xlu0 %5297, %v4198_v42   ;;  %v1824_v57 = vmul.f32 %v1760_v46, %v1494_v45  ;;  %v4219_v42 = vld [vmem:[%s8863_s9 + $0xd8] sm:$0xff]  ;;  %v5450_v43 = vld [vmem:[%s8860_s7 + $0x140] ss:$16 sps:$4 sm:$0xff]   ;;  %v5452_v44 = vld [vmem:[%s8860_s7 + $0x164] ss:$16 sps:$4 sm:$0xff]  }
 0x322   :  { %v1765_v53 = vpop.permute.xlu1 %1764  ;;  %v4220_v45 = vld [vmem:[%s8863_s9 + $0xe0] sm:$0xff]  ;;  %v5415_v46 = vld [vmem:[%s8860_s7 + $0x88] ss:$16 sps:$4 sm:$0xff]  }
 0x323   :  { %v1825_v58 = vmul.f32 %v1765_v53, %v1495_v47  ;;  %4284 = vperm.xlu1 %5298, %v4199_v48   ;;  %2853 = vmatpush1.bf16.msra.mxu1 %v1852_v50  ;;  %v5418_v48 = vld [vmem:[%s8860_s7 + $0xac] ss:$16 sps:$4 sm:$0xff]   ;;  %v5456_v53 = vld [vmem:[%s8860_s7 + $0x160] ss:$16 sps:$4 sm:$0xff]  }
 0x324   :  { %v1770_v59 = vpop.permute.xlu0 %1769  ;;  %2854 = vmatprep.subr.bf16.mxu1 %v5865_v0  ;;  %2651 = vmatmul.mubr.bf16.gmra.mrb[104].mxu0 %v5420_v49  ;;  %v4221_v50 = vld [vmem:[%s8863_s9 + $0xe8] sm:$0xff] }
 0x325   :  { %v1853_v61 = vpack.c.bf16 %v1825_v58, %v1824_v57  ;;  %v1826_v62 = vmul.f32 %v1770_v59, %v1496_v51  ;;  %4289 = vperm.xlu0 %5297, %v4200_v54   ;;  %2827 = vmatmul.mubr.bf16.gmra.mrb[48].mxu1 %v5000_v52  ;;  %v4222_v51 = vld [vmem:[%s8863_s9 + $0xf0] sm:$0xff]  ;;  %v4223_v52 = vld [vmem:[%s8863_s9 + $0xf8] sm:$0xff]  ;;  %v4224_v57 = vld [vmem:[%s8863_s9 + $0x100] sm:$0xff] }
 0x326   :  { %5004 = vmatprep.mubr.msk.bf16.mxu1 %vm294_vm0, %v5391_v55  ;;  %2658 = vmatprep.mubr.bf16.mxu0 %v5422_v56  ;;  %v7035_v15 = vpop.permute.xlu1 %3869  ;;  %v5458_v55 = vld [vmem:[%s8860_s7 + $0x184] ss:$16 sps:$4 sm:$0xff]   ;;  %v5421_v58 = vld [vmem:[%s8860_s7 + $0xa8] ss:$16 sps:$4 sm:$0xff]   ;;  %v5424_v59 = vld [vmem:[%s8860_s7 + $0xcc] ss:$16 sps:$4 sm:$0xff]  }
 0x327   :  { %v1854_v1 = vpack.c.bf16 %v1826_v62, %v1826_v62  ;;  %4294 = vperm.xlu1 %5298, %v4201_v60   ;;  %2855 = vmatpush1.bf16.msra.mxu1 %v1853_v61  ;;  %v4225_v60 = vld [vmem:[%s8863_s9 + $0x108] sm:$0xff]  ;;  %v4226_v61 = vld [vmem:[%s8863_s9 + $0x110] sm:$0xff] }
 0x328   :  { %2856 = vmatprep.subr.bf16.mxu1 %v5865_v0  ;;  %v5394_v0 = vld [vmem:[%s8860_s7 + $0x2c] ss:$16 sps:$4 sm:$0xff]   ;;  %v7040_v17 = vpop.permute.xlu0 %3864 }
 0x329   :  { %4299 = vperm.xlu0 %5297, %v4202_v63   ;;  %v2576_v6 = vsel %vm316_vm1, %v1854_v1, 0  ;;  %v4227_v1 = vld [vmem:[%s8863_s9 + $0x118] sm:$0xff] }
 0x32a   :  { %v7055_v22 = vpop.permute.xlu1 %3874 }
 0x32b   :  { %4304 = vperm.xlu1 %5298, %v4203_v2   ;;  %2857 = vmatpush1.bf16.msra.mxu1 %v2576_v6  ;;  %v5462_v2 = vld [vmem:[%s8860_s7 + $0x180] ss:$16 sps:$4 sm:$0xff]   ;;  %v5430_v6 = vld [vmem:[%s8860_s7 + $0xec] ss:$16 sps:$4 sm:$0xff]  }
 0x32c   :  { %2659 = vmatmul.mubr.bf16.gmra.mrb[108].mxu0 %v5426_v3  ;;  %v7060_v24 = vpop.permute.xlu0 %3879  ;;  %v5464_v3 = vld [vmem:[%s8860_s7 + $0x1a4] ss:$16 sps:$4 sm:$0xff]  }
 0x32d   :  { %4309 = vperm.xlu0 %5297, %v4204_v5   ;;  %2666 = vmatprep.mubr.bf16.mxu0 %v5428_v4  ;;  %v4228_v4 = vld [vmem:[%s8863_s9 + $0x120] sm:$0xff]  ;;  %v5427_v5 = vld [vmem:[%s8860_s7 + $0xc8] ss:$16 sps:$4 sm:$0xff]  }
 0x32e   :  { %2867 = vmatmul.mubr.bf16.vlgmr.msra.gmra.mrb[52].mxu1 %v5389_v7  ;;  %v7077_v30 = vpop.permute.xlu1 %3884  ;;  %v4229_v7 = vld [vmem:[%s8863_s9 + $0x128] sm:$0xff] }
 0x32f   :  { %4314 = vperm.xlu1 %5298, %v4205_v8   ;;  %5005 = vmatprep.mubr.msk.bf16.mxu1 %vm294_vm0, %v5394_v0  ;;  %8878 = vst [vmem:[#allocation2_spill] sm:$0xff] %v7077_v30 }
 0x330   :  { %v7080_v31 = vpop.permute.xlu0 %3889 }
 0x331   :  { %4319 = vperm.xlu0 %5297, %v4206_v9   ;;  %8879 = vst [vmem:[#allocation3_spill] sm:$0xff] %v7080_v31  ;;  %v4230_v9 = vld [vmem:[%s8863_s9 + $0x130] sm:$0xff] }
 0x332   :  { %v7103_v39 = vpop.permute.xlu1 %3894 }
 0x333   :  { %4324 = vperm.xlu1 %5298, %v4207_v10   ;;  %8880 = vst [vmem:[#allocation4_spill] sm:$0xff] %v7103_v39  ;;  %v4231_v10 = vld [vmem:[%s8863_s9 + $0x138] sm:$0xff] }
 0x334   :  { %2667 = vmatmul.mubr.bf16.gmra.mrb[112].mxu0 %v5432_v11  ;;  %v7105_v40 = vpop.permute.xlu0 %3899  ;;  %v5468_v11 = vld [vmem:[%s8860_s7 + $0x1a0] ss:$16 sps:$4 sm:$0xff]  }
 0x335   :  { %4329 = vperm.xlu0 %5297, %v4208_v13   ;;  %2674 = vmatprep.mubr.bf16.mxu0 %v5434_v12  ;;  %8881 = vst [vmem:[#allocation5_spill] sm:$0xff] %v7105_v40  ;;  %v5470_v12 = vld [vmem:[%s8860_s7 + $0x1c4] ss:$16 sps:$4 sm:$0xff]  }
 0x336   :  { %2875 = vmatmul.mubr.bf16.gmra.mrb[56].mxu1 %v5397_v14  ;;  %v7126_v47 = vpop.permute.xlu1 %3904  ;;  %v4232_v13 = vld [vmem:[%s8863_s9 + $0x140] sm:$0xff]  ;;  %v5433_v14 = vld [vmem:[%s8860_s7 + $0xe8] ss:$16 sps:$4 sm:$0xff]  }
 0x337   :  { %4334 = vperm.xlu1 %5298, %v4209_v18   ;;  %5006 = vmatprep.mubr.msk.bf16.mxu1 %vm294_vm0, %v5400_v16  ;;  %8882 = vst [vmem:[#allocation6_spill] sm:$0xff] %v7126_v47  ;;  %v5436_v18 = vld [vmem:[%s8860_s7 + $0x10c] ss:$16 sps:$4 sm:$0xff]  }
 0x338   :  { %v7131_v49 = vpop.permute.xlu0 %3909 }
 0x339   :  { %4339 = vperm.xlu0 %5297, %v4210_v19   ;;  %8883 = vst [vmem:[#allocation7_spill] sm:$0xff] %v7131_v49 }
 0x33a   :  { %v7146_v54 = vpop.permute.xlu1 %3914 }
 0x33b   :  { %4344 = vperm.xlu1 %5298, %v4211_v20   ;;  %8884 = vst [vmem:[#allocation8_spill] sm:$0xff] %v7146_v54  ;;  %v4233_v20 = vld [vmem:[%s8863_s9 + $0x148] sm:$0xff] }
 0x33c   :  { %2675 = vmatmul.mubr.bf16.gmra.mrb[116].mxu0 %v5438_v21  ;;  %v7151_v56 = vpop.permute.xlu0 %3919  ;;  %v4234_v21 = vld [vmem:[%s8863_s9 + $0x150] sm:$0xff] }
 0x33d   :  { %4349 = vperm.xlu0 %5297, %v4212_v25   ;;  %2682 = vmatprep.mubr.bf16.mxu0 %v5440_v23  ;;  %8885 = vst [vmem:[#allocation9_spill] sm:$0xff] %v7151_v56  ;;  %v4235_v23 = vld [vmem:[%s8863_s9 + $0x158] sm:$0xff]  ;;  %v5474_v25 = vld [vmem:[%s8860_s7 + $0x1c0] ss:$16 sps:$4 sm:$0xff]  }
 0x33e   :  { %2883 = vmatmul.mubr.bf16.gmra.mrb[60].mxu1 %v5403_v26  ;;  %v7168_v62 = vpop.permute.xlu1 %3924 }
 0x33f   :  { %4354 = vperm.xlu1 %5298, %v4213_v28   ;;  %5007 = vmatprep.mubr.msk.bf16.mxu1 %vm294_vm0, %v5406_v27  ;;  %8886 = vst [vmem:[#allocation10_spill] sm:$0xff] %v7168_v62  ;;  %v5476_v27 = vld [vmem:[%s8860_s7 + $0x1e4] ss:$16 sps:$4 sm:$0xff]  }
 0x340   :  { %v7171_v63 = vpop.permute.xlu0 %3929 }
 0x341   :  { %4359 = vperm.xlu0 %5297, %v4214_v29   ;;  %8887 = vst [vmem:[#allocation11_spill] sm:$0xff] %v7171_v63  ;;  %v4236_v29 = vld [vmem:[%s8863_s9 + $0x160] sm:$0xff] }
 0x342   :  { %v7194_v0 = vpop.permute.xlu1 %3934 }
 0x343   :  { %4364 = vperm.xlu1 %5298, %v4215_v32   ;;  %8888 = vst [vmem:[#allocation12_spill] sm:$0xff] %v7194_v0  ;;  %v5439_v32 = vld [vmem:[%s8860_s7 + $0x108] ss:$16 sps:$4 sm:$0xff]  }
 0x344   :  { %2683 = vmatmul.mubr.bf16.gmra.mrb[120].mxu0 %v5444_v33  ;;  %v7196_v8 = vpop.permute.xlu0 %3939  ;;  %v5442_v33 = vld [vmem:[%s8860_s7 + $0x12c] ss:$16 sps:$4 sm:$0xff]  }
 0x345   :  { %4369 = vperm.xlu0 %5297, %v4216_v35   ;;  %2690 = vmatprep.mubr.bf16.mxu0 %v5446_v34  ;;  %8889 = vst [vmem:[#allocation13_spill] sm:$0xff] %v7196_v8  ;;  %v4237_v34 = vld [vmem:[%s8863_s9 + $0x168] sm:$0xff]  ;;  %v4238_v35 = vld [vmem:[%s8863_s9 + $0x170] sm:$0xff] }
 0x346   :  { %2891 = vmatmul.mubr.bf16.gmra.mrb[64].mxu1 %v5409_v36  ;;  %v7217_v16 = vpop.permute.xlu1 %3944 }
 0x347   :  { %4374 = vperm.xlu1 %5298, %v4217_v38   ;;  %5008 = vmatprep.mubr.msk.bf16.mxu1 %vm294_vm0, %v5412_v37  ;;  %8890 = vst [vmem:[#allocation14_spill] sm:$0xff] %v7217_v16  ;;  %v4239_v38 = vld [vmem:[%s8863_s9 + $0x178] sm:$0xff] }
 0x348   :  { %v7222_v19 = vpop.permute.xlu0 %3949 }
 0x349   :  { %4379 = vperm.xlu0 %5297, %v4218_v41   ;;  %8891 = vst [vmem:[#allocation15_spill] sm:$0xff] %v7222_v19  ;;  %v5480_v41 = vld [vmem:[%s8860_s7 + $0x1e0] ss:$16 sps:$4 sm:$0xff]  }
 0x34a   :  { %v7237_v26 = vpop.permute.xlu1 %3954 }
 0x34b   :  { %4384 = vperm.xlu1 %5298, %v4219_v42   ;;  %8892 = vst [vmem:[#allocation16_spill] sm:$0xff] %v7237_v26  ;;  %v5482_v42 = vld [vmem:[%s8860_s7 + $0x204] ss:$16 sps:$4 sm:$0xff]  }
 0x34c   :  { %2691 = vmatmul.mubr.bf16.gmra.mrb[124].mxu0 %v5450_v43  ;;  %v7242_v28 = vpop.permute.xlu0 %3959  ;;  %v4240_v43 = vld [vmem:[%s8863_s9 + $0x180] sm:$0xff] }
 0x34d   :  { %4389 = vperm.xlu0 %5297, %v4220_v45   ;;  %2698 = vmatprep.mubr.bf16.mxu0 %v5452_v44  ;;  %8893 = vst [vmem:[#allocation17_spill] sm:$0xff] %v7242_v28  ;;  %v5445_v44 = vld [vmem:[%s8860_s7 + $0x128] ss:$16 sps:$4 sm:$0xff]   ;;  %v5448_v45 = vld [vmem:[%s8860_s7 + $0x14c] ss:$16 sps:$4 sm:$0xff]  }
 0x34e   :  { %2899 = vmatmul.mubr.bf16.gmra.mrb[68].mxu1 %v5415_v46  ;;  %v7259_v36 = vpop.permute.xlu1 %3964  ;;  %v4241_v46 = vld [vmem:[%s8863_s9 + $0x188] sm:$0xff] }
 0x34f   :  { %4394 = vperm.xlu1 %5298, %v4221_v50   ;;  %5009 = vmatprep.mubr.msk.bf16.mxu1 %vm294_vm0, %v5418_v48  ;;  %8894 = vst [vmem:[#allocation18_spill] sm:$0xff] %v7259_v36 }
 0x350   :  { %v7262_v37 = vpop.permute.xlu0 %3969 }
 0x351   :  { %4399 = vperm.xlu0 %5297, %v4222_v51   ;;  %8895 = vst [vmem:[#allocation19_spill] sm:$0xff] %v7262_v37  ;;  %v4242_v51 = vld [vmem:[%s8863_s9 + $0x190] sm:$0xff] }
 0x352   :  { %v7285_v48 = vpop.permute.xlu1 %3974 }
 0x353   :  { %4404 = vperm.xlu1 %5298, %v4223_v52   ;;  %8896 = vst [vmem:[#allocation20_spill] sm:$0xff] %v7285_v48  ;;  %v4243_v52 = vld [vmem:[%s8863_s9 + $0x198] sm:$0xff] }
 0x354   :  { %2699 = vmatmul.mubr.bf16.gmra.mrb[128].mxu0 %v5456_v53  ;;  %v7287_v50 = vpop.permute.xlu0 %3979  ;;  %v5486_v53 = vld [vmem:[%s8860_s7 + $0x200] ss:$16 sps:$4 sm:$0xff]  }
 0x355   :  { %4409 = vperm.xlu0 %5297, %v4224_v57   ;;  %2706 = vmatprep.mubr.bf16.mxu0 %v5458_v55  ;;  %8897 = vst [vmem:[#allocation21_spill] sm:$0xff] %v7287_v50  ;;  %v5488_v55 = vld [vmem:[%s8860_s7 + $0x224] ss:$16 sps:$4 sm:$0xff]  }
 0x356   :  { %2907 = vmatmul.mubr.bf16.gmra.mrb[72].mxu1 %v5421_v58  ;;  %v4244_v57 = vld [vmem:[%s8863_s9 + $0x1a0] sm:$0xff]  ;;  %v5451_v58 = vld [vmem:[%s8860_s7 + $0x148] ss:$16 sps:$4 sm:$0xff]  }
 0x357   :  { %4414 = vperm.xlu1 %5298, %v4225_v60   ;;  %5010 = vmatprep.mubr.msk.bf16.mxu1 %vm294_vm0, %v5424_v59  ;;  %v7308_v59 = vpop.permute.xlu1 %3984  ;;  %v5454_v60 = vld [vmem:[%s8860_s7 + $0x16c] ss:$16 sps:$4 sm:$0xff]  }
 0x358   :  { %8898 = vst [vmem:[#allocation22_spill] sm:$0xff] %v7308_v59 }
 0x359   :  { %4419 = vperm.xlu0 %5297, %v4226_v61   ;;  %v7313_v61 = vpop.permute.xlu0 %3989 }
 0x35a   :  { %8899 = vst [vmem:[#allocation23_spill] sm:$0xff] %v7313_v61 }
 0x35b   :  { %4424 = vperm.xlu1 %5298, %v4227_v1   ;;  %v5492_v1 = vld [vmem:[%s8860_s7 + $0x220] ss:$16 sps:$4 sm:$0xff]  }
 0x35c   :  { %2707 = vmatmul.mubr.bf16.gmra.mrb[132].mxu0 %v5462_v2  ;;  %v7319_v2 = vpop.permute.xlu1 %3994 }
 0x35d   :  { %4429 = vperm.xlu0 %5297, %v4228_v4   ;;  %2714 = vmatprep.mubr.bf16.mxu0 %v5464_v3  ;;  %8900 = vst [vmem:[#allocation24_spill] sm:$0xff] %v7319_v2  ;;  %v5494_v3 = vld [vmem:[%s8860_s7 + $0x244] ss:$16 sps:$4 sm:$0xff]   ;;  %v7324_v4 = vpop.permute.xlu0 %3999 }
 0x35e   :  { %2915 = vmatmul.mubr.bf16.gmra.mrb[76].mxu1 %v5427_v5  ;;  %8901 = vst [vmem:[#allocation25_spill] sm:$0xff] %v7324_v4  ;;  %v5457_v5 = vld [vmem:[%s8860_s7 + $0x168] ss:$16 sps:$4 sm:$0xff]  }
 0x35f   :  { %4434 = vperm.xlu1 %5298, %v4229_v7   ;;  %5011 = vmatprep.mubr.msk.bf16.mxu1 %vm294_vm0, %v5430_v6  ;;  %v5460_v6 = vld [vmem:[%s8860_s7 + $0x18c] ss:$16 sps:$4 sm:$0xff]  }
 0x360   :  { %v7332_v7 = vpop.permute.xlu1 %4004 }
 0x361   :  { %4439 = vperm.xlu0 %5297, %v4230_v9   ;;  %8902 = vst [vmem:[#allocation26_spill] sm:$0xff] %v7332_v7  ;;  %v7335_v9 = vpop.permute.xlu0 %4009 }
 0x362   :  { %8903 = vst [vmem:[#allocation27_spill] sm:$0xff] %v7335_v9 }
 0x363   :  { %4444 = vperm.xlu1 %5298, %v4231_v10   ;;  %v5498_v10 = vld [vmem:[%s8860_s7 + $0x240] ss:$16 sps:$4 sm:$0xff]  }
 0x364   :  { %2715 = vmatmul.mubr.bf16.gmra.mrb[136].mxu0 %v5468_v11  ;;  %v5500_v11 = vld [vmem:[%s8860_s7 + $0x264] ss:$16 sps:$4 sm:$0xff]  }
 0x365   :  { %4449 = vperm.xlu0 %5297, %v4232_v13   ;;  %2722 = vmatprep.mubr.bf16.mxu0 %v5470_v12  ;;  %v5463_v12 = vld [vmem:[%s8860_s7 + $0x188] ss:$16 sps:$4 sm:$0xff]   ;;  %v5466_v13 = vld [vmem:[%s8860_s7 + $0x1ac] ss:$16 sps:$4 sm:$0xff]  }
 0x366   :  { %2923 = vmatmul.mubr.bf16.gmra.mrb[80].mxu1 %v5433_v14  ;;  %v7349_v14 = vpop.permute.xlu1 %4014 }
 0x367   :  { %4454 = vperm.xlu1 %5298, %v4233_v20   ;;  %5012 = vmatprep.mubr.msk.bf16.mxu1 %vm294_vm0, %v5436_v18  ;;  %8904 = vst [vmem:[#allocation28_spill] sm:$0xff] %v7349_v14  ;;  %v7351_v18 = vpop.permute.xlu0 %4019  ;;  %v5504_v20 = vld [vmem:[%s8860_s7 + $0x260] ss:$16 sps:$4 sm:$0xff]  }
 0x368   :  { %8905 = vst [vmem:[#allocation29_spill] sm:$0xff] %v7351_v18 }
 0x369   :  { %4459 = vperm.xlu0 %5297, %v4234_v21   ;;  %v5506_v21 = vld [vmem:[%s8860_s7 + $0x284] ss:$16 sps:$4 sm:$0xff]  }
 0x36b   :  { %4464 = vperm.xlu1 %5298, %v4235_v23   ;;  %v5469_v23 = vld [vmem:[%s8860_s7 + $0x1a8] ss:$16 sps:$4 sm:$0xff]  }
 0x36c   :  { %2723 = vmatmul.mubr.bf16.gmra.mrb[140].mxu0 %v5474_v25  ;;  %v7363_v25 = vpop.permute.xlu1 %4024 }
 0x36d   :  { %4469 = vperm.xlu0 %5297, %v4236_v29   ;;  %2730 = vmatprep.mubr.bf16.mxu0 %v5476_v27  ;;  %8906 = vst [vmem:[#allocation30_spill] sm:$0xff] %v7363_v25  ;;  %v5472_v27 = vld [vmem:[%s8860_s7 + $0x1cc] ss:$16 sps:$4 sm:$0xff]   ;;  %v7368_v29 = vpop.permute.xlu0 %4029 }
 0x36e   :  { %2931 = vmatmul.mubr.bf16.gmra.mrb[84].mxu1 %v5439_v32  ;;  %8907 = vst [vmem:[#allocation31_spill] sm:$0xff] %v7368_v29  ;;  %v5510_v32 = vld [vmem:[%s8860_s7 + $0x280] ss:$16 sps:$4 sm:$0xff]  }
 0x36f   :  { %4474 = vperm.xlu1 %5298, %v4237_v34   ;;  %5013 = vmatprep.mubr.msk.bf16.mxu1 %vm294_vm0, %v5442_v33  ;;  %v5512_v34 = vld [vmem:[%s8860_s7 + $0x2a4] ss:$16 sps:$4 sm:$0xff]  }
 0x370   :  { %v7374_v33 = vpop.permute.xlu1 %4034 }
 0x371   :  { %4479 = vperm.xlu0 %5297, %v4238_v35   ;;  %8908 = vst [vmem:[#allocation32_spill] sm:$0xff] %v7374_v33  ;;  %v7379_v35 = vpop.permute.xlu0 %4039  ;;  %v5532_v33 = vld [vmem:[%s8860_s7 + $0x348] ss:$16 sps:$4 sm:$0xff]  }
 0x372   :  { %8909 = vst [vmem:[#allocation33_spill] sm:$0xff] %v7379_v35 }
 0x373   :  { %4484 = vperm.xlu1 %5298, %v4239_v38   ;;  %v5475_v38 = vld [vmem:[%s8860_s7 + $0x1c8] ss:$16 sps:$4 sm:$0xff]  }
 0x374   :  { %2731 = vmatmul.mubr.bf16.gmra.mrb[144].mxu0 %v5480_v41  ;;  %v5478_v41 = vld [vmem:[%s8860_s7 + $0x1ec] ss:$16 sps:$4 sm:$0xff]  }
 0x375   :  { %4489 = vperm.xlu0 %5297, %v4240_v43   ;;  %2738 = vmatprep.mubr.bf16.mxu0 %v5482_v42  ;;  %v7387_v42 = vpop.permute.xlu1 %4044  ;;  %v7390_v43 = vpop.permute.xlu0 %4049 }
 0x376   :  { %2939 = vmatmul.mubr.bf16.gmra.mrb[88].mxu1 %v5445_v44  ;;  %8910 = vst [vmem:[#allocation34_spill] sm:$0xff] %v7387_v42  ;;  %8911 = vst [vmem:[#allocation35_spill] sm:$0xff] %v7390_v43  ;;  %v5516_v44 = vld [vmem:[%s8860_s7 + $0x2a0] ss:$16 sps:$4 sm:$0xff]  }
 0x377   :  { %4494 = vperm.xlu1 %5298, %v4241_v46   ;;  %5014 = vmatprep.mubr.msk.bf16.mxu1 %vm294_vm0, %v5448_v45  ;;  %v5481_v45 = vld [vmem:[%s8860_s7 + $0x1e8] ss:$16 sps:$4 sm:$0xff]   ;;  %v5484_v46 = vld [vmem:[%s8860_s7 + $0x20c] ss:$16 sps:$4 sm:$0xff]  }
 0x379   :  { %4499 = vperm.xlu0 %5297, %v4242_v51   ;;  %v7401_v51 = vpop.permute.xlu1 %4054 }
 0x37a   :  { %8912 = vst [vmem:[#allocation36_spill] sm:$0xff] %v7401_v51 }
 0x37b   :  { %4504 = vperm.xlu1 %5298, %v4243_v52   ;;  %v7403_v52 = vpop.permute.xlu0 %4059 }
 0x37c   :  { %2739 = vmatmul.mubr.bf16.gmra.mrb[148].mxu0 %v5486_v53  ;;  %8913 = vst [vmem:[#allocation37_spill] sm:$0xff] %v7403_v52  ;;  %v5487_v53 = vld [vmem:[%s8860_s7 + $0x208] ss:$16 sps:$4 sm:$0xff]   ;;  %v5530_v52 = vld [vmem:[%s8860_s7 + $0x34c] ss:$16 sps:$4 sm:$0xff]  }
 0x37d   :  { %4509 = vperm.xlu0 %5297, %v4244_v57   ;;  %2746 = vmatprep.mubr.bf16.mxu0 %v5488_v55  ;;  %v7409_v55 = vpop.permute.xlu1 %4064  ;;  %v5490_v57 = vld [vmem:[%s8860_s7 + $0x22c] ss:$16 sps:$4 sm:$0xff]  }
 0x37e   :  { %2947 = vmatmul.mubr.bf16.gmra.mrb[92].mxu1 %v5451_v58  ;;  %8914 = vst [vmem:[#allocation38_spill] sm:$0xff] %v7409_v55 }
 0x37f   :  { %5015 = vmatprep.mubr.msk.bf16.mxu1 %vm294_vm0, %v5454_v60  ;;  %v7414_v58 = vpop.permute.xlu0 %4069 }
 0x380   :  { %8915 = vst [vmem:[#allocation39_spill] sm:$0xff] %v7414_v58 }
 0x381   :  { %v7417_v60 = vpop.permute.xlu1 %4074 }
 0x382   :  { %8916 = vst [vmem:[#allocation40_spill] sm:$0xff] %v7417_v60 }
 0x384   :  { %2747 = vmatmul.mubr.bf16.gmra.mrb[152].mxu0 %v5492_v1  ;;  %v7419_v1 = vpop.permute.xlu0 %4079 }
 0x385   :  { %2754 = vmatprep.mubr.bf16.mxu0 %v5494_v3  ;;  %8917 = vst [vmem:[#allocation41_spill] sm:$0xff] %v7419_v1  ;;  %v5493_v3 = vld [vmem:[%s8860_s7 + $0x228] ss:$16 sps:$4 sm:$0xff]  }
 0x386   :  { %2955 = vmatmul.mubr.bf16.gmra.mrb[96].mxu1 %v5457_v5  ;;  %v5496_v5 = vld [vmem:[%s8860_s7 + $0x24c] ss:$16 sps:$4 sm:$0xff]  }
 0x387   :  { %5016 = vmatprep.mubr.msk.bf16.mxu1 %vm294_vm0, %v5460_v6  ;;  %v7427_v6 = vpop.permute.xlu1 %4084 }
 0x388   :  { %8918 = vst [vmem:[#allocation42_spill] sm:$0xff] %v7427_v6 }
 0x38c   :  { %2755 = vmatmul.mubr.bf16.gmra.mrb[156].mxu0 %v5498_v10  ;;  %v7430_v10 = vpop.permute.xlu0 %4089 }
 0x38d   :  { %2762 = vmatprep.mubr.bf16.mxu0 %v5500_v11  ;;  %8919 = vst [vmem:[#allocation43_spill] sm:$0xff] %v7430_v10  ;;  %v5499_v11 = vld [vmem:[%s8860_s7 + $0x248] ss:$16 sps:$4 sm:$0xff]  }
 0x38e   :  { %2963 = vmatmul.mubr.bf16.gmra.mrb[100].mxu1 %v5463_v12  ;;  %v5502_v12 = vld [vmem:[%s8860_s7 + $0x26c] ss:$16 sps:$4 sm:$0xff]  }
 0x38f   :  { %5017 = vmatprep.mubr.msk.bf16.mxu1 %vm294_vm0, %v5466_v13  ;;  %v7438_v13 = vpop.permute.xlu1 %4094 }
 0x390   :  { %8920 = vst [vmem:[#allocation44_spill] sm:$0xff] %v7438_v13 }
 0x394   :  { %2763 = vmatmul.mubr.bf16.gmra.mrb[160].mxu0 %v5504_v20  ;;  %v7440_v20 = vpop.permute.xlu0 %4099 }
 0x395   :  { %2770 = vmatprep.mubr.bf16.mxu0 %v5506_v21  ;;  %8921 = vst [vmem:[#allocation45_spill] sm:$0xff] %v7440_v20  ;;  %v5505_v21 = vld [vmem:[%s8860_s7 + $0x268] ss:$16 sps:$4 sm:$0xff]  }
 0x396   :  { %2971 = vmatmul.mubr.bf16.gmra.mrb[104].mxu1 %v5469_v23  ;;  %v7446_v23 = vpop.permute.xlu1 %4104 }
 0x397   :  { %5018 = vmatprep.mubr.msk.bf16.mxu1 %vm294_vm0, %v5472_v27  ;;  %8922 = vst [vmem:[#allocation46_spill] sm:$0xff] %v7446_v23  ;;  %v5508_v27 = vld [vmem:[%s8860_s7 + $0x28c] ss:$16 sps:$4 sm:$0xff]  }
 0x39c   :  { %2771 = vmatmul.mubr.bf16.gmra.mrb[164].mxu0 %v5510_v32  ;;  %v7451_v32 = vpop.permute.xlu0 %4109 }
 0x39d   :  { %2778 = vmatprep.mubr.bf16.mxu0 %v5512_v34  ;;  %8923 = vst [vmem:[#allocation47_spill] sm:$0xff] %v7451_v32  ;;  %v7454_v34 = vpop.permute.xlu1 %4114 }
 0x39e   :  { %2979 = vmatmul.mubr.bf16.gmra.mrb[108].mxu1 %v5475_v38  ;;  %8924 = vst [vmem:[#allocation48_spill] sm:$0xff] %v7454_v34 }
 0x39f   :  { %5019 = vmatprep.mubr.msk.bf16.mxu1 %vm294_vm0, %v5478_v41  ;;  %v5511_v41 = vld [vmem:[%s8860_s7 + $0x288] ss:$16 sps:$4 sm:$0xff]  }
 0x3a0   :  { %v7456_v38 = vpop.permute.xlu0 %4119 }
 0x3a1   :  { %8925 = vst [vmem:[#allocation49_spill] sm:$0xff] %v7456_v38 }
 0x3a4   :  { %2779 = vmatmul.mubr.bf16.gmra.mrb[168].mxu0 %v5516_v44  ;;  %v5514_v44 = vld [vmem:[%s8860_s7 + $0x2ac] ss:$16 sps:$4 sm:$0xff]  }
 0x3a6   :  { %2987 = vmatmul.mubr.bf16.gmra.mrb[112].mxu1 %v5481_v45  ;;  %v7464_v45 = vpop.permute.xlu1 %4124 }
 0x3a7   :  { %5020 = vmatprep.mubr.msk.bf16.mxu1 %vm294_vm0, %v5484_v46  ;;  %8926 = vst [vmem:[#allocation50_spill] sm:$0xff] %v7464_v45 }
 0x3ae   :  { %2995 = vmatmul.mubr.bf16.gmra.mrb[116].mxu1 %v5487_v53  ;;  %v7469_v53 = vpop.permute.xlu0 %4129 }
 0x3af   :  { %5021 = vmatprep.mubr.msk.bf16.mxu1 %vm294_vm0, %v5490_v57  ;;  %8927 = vst [vmem:[#allocation51_spill] sm:$0xff] %v7469_v53 }
 0x3b6   :  { %3003 = vmatmul.mubr.bf16.gmra.mrb[120].mxu1 %v5493_v3 }
 0x3b7   :  { %5022 = vmatprep.mubr.msk.bf16.mxu1 %vm294_vm0, %v5496_v5  ;;  %v5517_v5 = vld [vmem:[%s8860_s7 + $0x2a8] ss:$16 sps:$4 sm:$0xff]  }
 0x3be   :  { %3011 = vmatmul.mubr.bf16.gmra.mrb[124].mxu1 %v5499_v11 }
 0x3bf   :  { %5023 = vmatprep.mubr.msk.bf16.mxu1 %vm294_vm0, %v5502_v12  ;;  %v5518_v12 = vld [vmem:[%s8860_s7 + $0x2cc] ss:$16 sps:$4 sm:$0xff]  }
 0x3c6   :  { %3019 = vmatmul.mubr.bf16.gmra.mrb[128].mxu1 %v5505_v21  ;;  %v7479_v21 = vpop.permute.xlu1 %4134 }
 0x3c7   :  { %5024 = vmatprep.mubr.msk.bf16.mxu1 %vm294_vm0, %v5508_v27  ;;  %8928 = vst [vmem:[#allocation52_spill] sm:$0xff] %v7479_v21  ;;  %v7481_v27 = vpop.permute.xlu0 %4249  ;;  %v5521_v21 = vld [vmem:[%s8860_s7 + $0x2ec] ss:$16 sps:$4 sm:$0xff]  }
 0x3ca   :  { %v7491_v45 = vpop.permute.xlu1 %4254 }
 0x3cb   :  { %v7496_v38 = vpop.permute.xlu0 %4259 }
 0x3cc   :  { %8929 = vst [vmem:[#allocation53_spill] sm:$0xff] %v7496_v38 }
 0x3ce   :  { %3027 = vmatmul.mubr.bf16.gmra.mrb[132].mxu1 %v5511_v41 }
 0x3cf   :  { %5025 = vmatprep.mubr.msk.bf16.mxu1 %vm294_vm0, %v5514_v44  ;;  %v7467_v46 = vpop.f32.mrb[84].mxu0  ;;  %v7505_v32 = vpop.permute.xlu0 %4269 }
 0x3d0   :  { %v2614_v57 = vpop.f32.mrb[85].mxu0  ;;  %8931 = vst [vmem:[#allocation55_spill] sm:$0xff] %v7505_v32 }
 0x3d1   :  { %v7471_v3 = vpop.f32.mrb[86].mxu0 }
 0x3d2   :  { %v2617_v11 = vpop.f32.mrb[87].mxu0 }
 0x3d3   :  { %v5520_v11 = vld [vmem:[%s8860_s7 + $0x2c8] ss:$16 sps:$4 sm:$0xff]   ;;  %v7518_v20 = vpop.permute.xlu0 %4279 }
 0x3d4   :  { %8933 = vst [vmem:[#allocation57_spill] sm:$0xff] %v7518_v20 }
 0x3d6   :  { %3035 = vmatmul.mubr.bf16.gmra.mrb[136].mxu1 %v5517_v5 }
 0x3d7   :  { %5026 = vmatprep.mubr.msk.bf16.mxu1 %vm294_vm0, %v5518_v12  ;;  %v7484_v41 = vpop.f32.mrb[88].mxu0  ;;  %v7530_v1 = vpop.permute.xlu0 %4289 }
 0x3d8   :  { %v2622_v44 = vpop.f32.mrb[89].mxu0  ;;  %8935 = vst [vmem:[#allocation59_spill] sm:$0xff] %v7530_v1 }
 0x3d9   :  { %v7486_v57 = vpop.f32.mrb[90].mxu0  ;;  %v7501_v44 = vpop.permute.xlu1 %4264 }
 0x3da   :  { %v2625_v53 = vpop.f32.mrb[91].mxu0  ;;  %8930 = vst [vmem:[#allocation54_spill] sm:$0xff] %v7501_v44 }
 0x3db   :  { %v5523_v53 = vld [vmem:[%s8860_s7 + $0x2e8] ss:$16 sps:$4 sm:$0xff]   ;;  %v7545_v43 = vpop.permute.xlu0 %4299 }
 0x3dc   :  { %8937 = vst [vmem:[#allocation61_spill] sm:$0xff] %v7545_v43 }
 0x3de   :  { %3043 = vmatmul.mubr.bf16.gmra.mrb[28].mxu1 %v5520_v11  ;;  %v5524_v11 = vld [vmem:[%s8860_s7 + $0x30c] ss:$16 sps:$4 sm:$0xff]  }
 0x3df   :  { %5027 = vmatprep.mubr.msk.bf16.mxu1 %vm294_vm0, %v5521_v21  ;;  %v7499_v5 = vpop.f32.mrb[92].mxu0  ;;  %v7513_v21 = vpop.permute.xlu1 %4274 }
 0x3e0   :  { %v2630_v12 = vpop.f32.mrb[93].mxu0  ;;  %8932 = vst [vmem:[#allocation56_spill] sm:$0xff] %v7513_v21  ;;  %v7557_v35 = vpop.permute.xlu0 %4309 }
 0x3e1   :  { %v7503_v34 = vpop.f32.mrb[94].mxu0  ;;  %8939 = vst [vmem:[#allocation63_spill] sm:$0xff] %v7557_v35 }
 0x3e2   :  { %v2633_v23 = vpop.f32.mrb[95].mxu0 }
 0x3e3   :  { %v5526_v23 = vld [vmem:[%s8860_s7 + $0x308] ss:$16 sps:$4 sm:$0xff]   ;;  %v7528_v60 = vpop.permute.xlu1 %4284 }
 0x3e4   :  { %8934 = vst [vmem:[#allocation58_spill] sm:$0xff] %v7528_v60 }
 0x3e6   :  { %3051 = vmatmul.mubr.bf16.gmra.mrb[32].mxu1 %v5523_v53  ;;  %v5527_v53 = vld [vmem:[%s8860_s7 + $0x32c] ss:$16 sps:$4 sm:$0xff]  }
 0x3e7   :  { %5028 = vmatprep.mubr.msk.bf16.mxu1 %vm294_vm0, %v5524_v11  ;;  %v7516_v12 = vpop.f32.mrb[96].mxu0  ;;  %v7540_v51 = vpop.permute.xlu1 %4294 }
 0x3e8   :  { %v2638_v13 = vpop.f32.mrb[97].mxu0  ;;  %8936 = vst [vmem:[#allocation60_spill] sm:$0xff] %v7540_v51 }
 0x3e9   :  { %v7520_v10 = vpop.f32.mrb[98].mxu0 }
 0x3ea   :  { %v2641_v6 = vpop.f32.mrb[99].mxu0 }
 0x3eb   :  { %v5529_v6 = vld [vmem:[%s8860_s7 + $0x328] ss:$16 sps:$4 sm:$0xff]   ;;  %v7553_v42 = vpop.permute.xlu1 %4304 }
 0x3ec   :  { %8938 = vst [vmem:[#allocation62_spill] sm:$0xff] %v7553_v42 }
 0x3ee   :  { %3059 = vmatmul.mubr.bf16.gmra.mrb[36].mxu1 %v5526_v23 }
 0x3ef   :  { %5029 = vmatprep.mubr.msk.bf16.mxu1 %vm294_vm0, %v5527_v53  ;;  %v7533_v11 = vpop.f32.mrb[100].mxu0  ;;  %v1964_v53 = vld [vmem:[%s8860_s7 + $0x368] sm:$0xff] }
 0x3f0   :  { %v2646_v13 = vpop.f32.mrb[101].mxu0  ;;  %v5003_v29 = vcombine.high %v1964_v53, %v1964_v53 }
 0x3f1   :  { %v7535_v55 = vpop.f32.mrb[102].mxu0 }
 0x3f2   :  { %v2649_v58 = vpop.f32.mrb[103].mxu0 }
 0x3f6   :  { %3067 = vmatmul.mubr.bf16.gmra.mrb[40].mxu1 %v5529_v6 }
 0x3f7   :  { %5030 = vmatprep.mubr.msk.bf16.mxu1 %vm294_vm0, %v5530_v52  ;;  %v7548_v23 = vpop.f32.mrb[104].mxu0  ;;  %v7562_v52 = vpop.permute.xlu1 %4314 }
 0x3f8   :  { %v2654_v13 = vpop.f32.mrb[105].mxu0  ;;  %8940 = vst [vmem:[#allocation64_spill] sm:$0xff] %v7562_v52 }
 0x3f9   :  { %v7555_v58 = vpop.f32.mrb[106].mxu0  ;;  %v7567_v13 = vpop.permute.xlu0 %4319 }
 0x3fa   :  { %v2657_v6 = vpop.f32.mrb[107].mxu0  ;;  %8941 = vst [vmem:[#allocation65_spill] sm:$0xff] %v7567_v13 }
 0x3fb   :  { %v5002_v6 = vcombine.low %v1964_v53, %v1964_v53  ;;  %v7581_v50 = vpop.permute.xlu1 %4324 }
 0x3fc   :  { %8942 = vst [vmem:[#allocation66_spill] sm:$0xff] %v7581_v50 }
 0x3fe   :  { %3075 = vmatmul.mubr.bf16.gmra.mrb[44].mxu1 %v5532_v33 }
 0x3ff   :  { %5031 = vmatprep.mubr.msk.bf16.mxu1 %vm294_vm0, %v5003_v29  ;;  %v7565_v25 = vpop.f32.mrb[108].mxu0  ;;  %v7599_v37 = vpop.permute.xlu1 %4334 }
 0x400   :  { %v2662_v18 = vpop.f32.mrb[109].mxu0  ;;  %8944 = vst [vmem:[#allocation68_spill] sm:$0xff] %v7599_v37 }
 0x401   :  { %v2868_v14 = vpop.f32.mrb[52].mxu1  ;;  %v7569_v9 = vpop.f32.mrb[110].mxu0 }
 0x402   :  { %v7572_v7 = vadd.f32 %v2868_v14, %v7467_v46  ;;  %v2870_v4 = vpop.f32.mrb[53].mxu1  ;;  %v2665_v2 = vpop.f32.mrb[111].mxu0 }
 0x403   :  { %v2871_v33 = vpop.f32.mrb[54].mxu1  ;;  %v7585_v4 = vpop.permute.xlu0 %4329 }
 0x404   :  { %v7575_v61 = vadd.f32 %v2871_v33, %v7471_v3  ;;  %v3091_v29 = vsel %vm3090_vm4, %v7572_v7, 0.0  ;;  %v2873_v59 = vpop.f32.mrb[55].mxu1  ;;  %8943 = vst [vmem:[#allocation67_spill] sm:$0xff] %v7585_v4 }
 0x405   :  { %3092 = vadd.xlane.f32.xlu1 %v3091_v29 }
 0x406   :  { %3083 = vmatmul.mubr.bf16.gmra.mrb[48].mxu1 %v5002_v6  ;;  %v3094_v18 = vsel %vm3090_vm4, %v7575_v61, 0.0 }
 0x407   :  { %3095 = vadd.xlane.f32.xlu0 %v3094_v18  ;;  %v7583_v14 = vpop.f32.mrb[112].mxu0 }
 0x408   :  { %v2670_v2 = vpop.f32.mrb[113].mxu0 }
 0x409   :  { %v2876_v46 = vpop.f32.mrb[56].mxu1  ;;  %v7587_v3 = vpop.f32.mrb[114].mxu0 }
 0x40a   :  { %v7590_v53 = vadd.f32 %v2876_v46, %v7484_v41  ;;  %v2878_v59 = vpop.f32.mrb[57].mxu1  ;;  %v2673_v33 = vpop.f32.mrb[115].mxu0 }
 0x40b   :  { %v2879_v6 = vpop.f32.mrb[58].mxu1  ;;  %v7603_v41 = vpop.permute.xlu0 %4339 }
 0x40c   :  { %v7593_v29 = vadd.f32 %v2879_v6, %v7486_v57  ;;  %v3097_v18 = vsel %vm3090_vm4, %v7590_v53, 0.0  ;;  %v2881_v48 = vpop.f32.mrb[59].mxu1  ;;  %8945 = vst [vmem:[#allocation69_spill] sm:$0xff] %v7603_v41  ;;  %v7617_v41 = vpop.permute.xlu1 %4344 }
 0x40d   :  { %3098 = vadd.xlane.f32.xlu0 %v3097_v18  ;;  %8946 = vst [vmem:[#allocation70_spill] sm:$0xff] %v7617_v41 }
 0x40e   :  { %v3100_v2 = vsel %vm3090_vm4, %v7593_v29, 0.0 }
 0x40f   :  { %3101 = vadd.xlane.f32.xlu1 %v3100_v2  ;;  %v7601_v36 = vpop.f32.mrb[116].mxu0 }
 0x410   :  { %v2678_v46 = vpop.f32.mrb[117].mxu0 }
 0x411   :  { %v2884_v59 = vpop.f32.mrb[60].mxu1  ;;  %v7605_v33 = vpop.f32.mrb[118].mxu0 }
 0x412   :  { %v7608_v57 = vadd.f32 %v2884_v59, %v7499_v5  ;;  %v2886_v6 = vpop.f32.mrb[61].mxu1  ;;  %v2681_v48 = vpop.f32.mrb[119].mxu0 }
 0x413   :  { %v2887_v18 = vpop.f32.mrb[62].mxu1  ;;  %v7621_v5 = vpop.permute.xlu0 %4349 }
 0x414   :  { %v7611_v28 = vadd.f32 %v2887_v18, %v7503_v34  ;;  %v3103_v2 = vsel %vm3090_vm4, %v7608_v57, 0.0  ;;  %v2889_v26 = vpop.f32.mrb[63].mxu1  ;;  %8947 = vst [vmem:[#allocation71_spill] sm:$0xff] %v7621_v5  ;;  %v7635_v5 = vpop.permute.xlu1 %4354 }
 0x415   :  { %3104 = vadd.xlane.f32.xlu0 %v3103_v2  ;;  %8948 = vst [vmem:[#allocation72_spill] sm:$0xff] %v7635_v5 }
 0x416   :  { %v3106_v46 = vsel %vm3090_vm4, %v7611_v28, 0.0 }
 0x417   :  { %3107 = vadd.xlane.f32.xlu1 %v3106_v46  ;;  %v7619_v37 = vpop.f32.mrb[120].mxu0 }
 0x418   :  { %v2686_v59 = vpop.f32.mrb[121].mxu0 }
 0x419   :  { %v2892_v6 = vpop.f32.mrb[64].mxu1  ;;  %v7623_v48 = vpop.f32.mrb[122].mxu0 }
 0x41a   :  { %v7626_v34 = vadd.f32 %v2892_v6, %v7516_v12  ;;  %v2894_v18 = vpop.f32.mrb[65].mxu1  ;;  %v2689_v26 = vpop.f32.mrb[123].mxu0 }
 0x41b   :  { %v2895_v2 = vpop.f32.mrb[66].mxu1  ;;  %v7639_v12 = vpop.permute.xlu0 %4359 }
 0x41c   :  { %v7629_v19 = vadd.f32 %v2895_v2, %v7520_v10  ;;  %v3109_v46 = vsel %vm3090_vm4, %v7626_v34, 0.0  ;;  %v2897_v41 = vpop.f32.mrb[67].mxu1  ;;  %8949 = vst [vmem:[#allocation73_spill] sm:$0xff] %v7639_v12  ;;  %v7653_v12 = vpop.permute.xlu1 %4364 }
 0x41d   :  { %3110 = vadd.xlane.f32.xlu0 %v3109_v46  ;;  %8950 = vst [vmem:[#allocation74_spill] sm:$0xff] %v7653_v12 }
 0x41e   :  { %v3112_v59 = vsel %vm3090_vm4, %v7629_v19, 0.0 }
 0x41f   :  { %3113 = vadd.xlane.f32.xlu1 %v3112_v59  ;;  %v7637_v4 = vpop.f32.mrb[124].mxu0 }
 0x420   :  { %v2694_v6 = vpop.f32.mrb[125].mxu0 }
 0x421   :  { %v2900_v18 = vpop.f32.mrb[68].mxu1  ;;  %v7641_v26 = vpop.f32.mrb[126].mxu0 }
 0x422   :  { %v7644_v10 = vadd.f32 %v2900_v18, %v7533_v11  ;;  %v2902_v2 = vpop.f32.mrb[69].mxu1  ;;  %v2697_v41 = vpop.f32.mrb[127].mxu0 }
 0x423   :  { %v2903_v46 = vpop.f32.mrb[70].mxu1  ;;  %v7657_v11 = vpop.permute.xlu0 %4369 }
 0x424   :  { %v7647_v16 = vadd.f32 %v2903_v46, %v7535_v55  ;;  %v3115_v59 = vsel %vm3090_vm4, %v7644_v10, 0.0  ;;  %v2905_v5 = vpop.f32.mrb[71].mxu1  ;;  %8951 = vst [vmem:[#allocation75_spill] sm:$0xff] %v7657_v11  ;;  %v7671_v11 = vpop.permute.xlu1 %4374 }
 0x425   :  { %3116 = vadd.xlane.f32.xlu0 %v3115_v59  ;;  %8952 = vst [vmem:[#allocation76_spill] sm:$0xff] %v7671_v11 }
 0x426   :  { %v3118_v6 = vsel %vm3090_vm4, %v7647_v16, 0.0 }
 0x427   :  { %3119 = vadd.xlane.f32.xlu1 %v3118_v6  ;;  %v7655_v50 = vpop.f32.mrb[128].mxu0 }
 0x428   :  { %v2702_v18 = vpop.f32.mrb[129].mxu0 }
 0x429   :  { %v2908_v2 = vpop.f32.mrb[72].mxu1  ;;  %v7659_v41 = vpop.f32.mrb[130].mxu0 }
 0x42a   :  { %v7662_v55 = vadd.f32 %v2908_v2, %v7548_v23  ;;  %v2910_v46 = vpop.f32.mrb[73].mxu1  ;;  %v2705_v5 = vpop.f32.mrb[131].mxu0 }
 0x42b   :  { %v2911_v59 = vpop.f32.mrb[74].mxu1  ;;  %v7675_v23 = vpop.permute.xlu0 %4379 }
 0x42c   :  { %v7665_v8 = vadd.f32 %v2911_v59, %v7555_v58  ;;  %v3121_v6 = vsel %vm3090_vm4, %v7662_v55, 0.0  ;;  %v2913_v12 = vpop.f32.mrb[75].mxu1  ;;  %8953 = vst [vmem:[#allocation77_spill] sm:$0xff] %v7675_v23  ;;  %v7689_v23 = vpop.permute.xlu1 %4384 }
 0x42d   :  { %3122 = vadd.xlane.f32.xlu0 %v3121_v6  ;;  %8954 = vst [vmem:[#allocation78_spill] sm:$0xff] %v7689_v23 }
 0x42e   :  { %v3124_v18 = vsel %vm3090_vm4, %v7665_v8, 0.0 }
 0x42f   :  { %3125 = vadd.xlane.f32.xlu1 %v3124_v18  ;;  %v7673_v13 = vpop.f32.mrb[132].mxu0 }
 0x430   :  { %v2710_v2 = vpop.f32.mrb[133].mxu0 }
 0x431   :  { %v2916_v46 = vpop.f32.mrb[76].mxu1  ;;  %v7677_v5 = vpop.f32.mrb[134].mxu0 }
 0x432   :  { %v7680_v58 = vadd.f32 %v2916_v46, %v7565_v25  ;;  %v2918_v59 = vpop.f32.mrb[77].mxu1  ;;  %v2713_v12 = vpop.f32.mrb[135].mxu0 }
 0x433   :  { %v2919_v6 = vpop.f32.mrb[78].mxu1  ;;  %v7693_v25 = vpop.permute.xlu0 %4389 }
 0x434   :  { %v7683_v0 = vadd.f32 %v2919_v6, %v7569_v9  ;;  %v3127_v18 = vsel %vm3090_vm4, %v7680_v58, 0.0  ;;  %v2921_v11 = vpop.f32.mrb[79].mxu1  ;;  %8955 = vst [vmem:[#allocation79_spill] sm:$0xff] %v7693_v25  ;;  %v7707_v25 = vpop.permute.xlu1 %4394 }
 0x435   :  { %3128 = vadd.xlane.f32.xlu0 %v3127_v18  ;;  %8956 = vst [vmem:[#allocation80_spill] sm:$0xff] %v7707_v25 }
 0x436   :  { %v3130_v2 = vsel %vm3090_vm4, %v7683_v0, 0.0 }
 0x437   :  { %3131 = vadd.xlane.f32.xlu1 %v3130_v2  ;;  %v7691_v52 = vpop.f32.mrb[136].mxu0 }
 0x438   :  { %v2718_v46 = vpop.f32.mrb[137].mxu0 }
 0x439   :  { %v2924_v59 = vpop.f32.mrb[80].mxu1  ;;  %v7695_v12 = vpop.f32.mrb[138].mxu0 }
 0x43a   :  { %v7698_v9 = vadd.f32 %v2924_v59, %v7583_v14  ;;  %v2926_v6 = vpop.f32.mrb[81].mxu1  ;;  %v2721_v11 = vpop.f32.mrb[139].mxu0 }
 0x43b   :  { %v2927_v18 = vpop.f32.mrb[82].mxu1  ;;  %v7711_v14 = vpop.permute.xlu0 %4399 }
 0x43c   :  { %v7701_v63 = vadd.f32 %v2927_v18, %v7587_v3  ;;  %v3133_v2 = vsel %vm3090_vm4, %v7698_v9, 0.0  ;;  %v2929_v23 = vpop.f32.mrb[83].mxu1  ;;  %8957 = vst [vmem:[#allocation81_spill] sm:$0xff] %v7711_v14  ;;  %v7725_v14 = vpop.permute.xlu1 %4404 }
 0x43d   :  { %3134 = vadd.xlane.f32.xlu0 %v3133_v2  ;;  %8958 = vst [vmem:[#allocation82_spill] sm:$0xff] %v7725_v14 }
 0x43e   :  { %v3136_v46 = vsel %vm3090_vm4, %v7701_v63, 0.0 }
 0x43f   :  { %3137 = vadd.xlane.f32.xlu1 %v3136_v46  ;;  %v7709_v35 = vpop.f32.mrb[140].mxu0 }
 0x440   :  { %v2726_v59 = vpop.f32.mrb[141].mxu0 }
 0x441   :  { %v2932_v6 = vpop.f32.mrb[84].mxu1  ;;  %v7713_v11 = vpop.f32.mrb[142].mxu0 }
 0x442   :  { %v7716_v3 = vadd.f32 %v2932_v6, %v7601_v36  ;;  %v2934_v18 = vpop.f32.mrb[85].mxu1  ;;  %v2729_v23 = vpop.f32.mrb[143].mxu0 }
 0x443   :  { %v2935_v2 = vpop.f32.mrb[86].mxu1  ;;  %v7729_v36 = vpop.permute.xlu0 %4409 }
 0x444   :  { %v7719_v62 = vadd.f32 %v2935_v2, %v7605_v33  ;;  %v3139_v46 = vsel %vm3090_vm4, %v7716_v3, 0.0  ;;  %v2937_v25 = vpop.f32.mrb[87].mxu1  ;;  %8959 = vst [vmem:[#allocation83_spill] sm:$0xff] %v7729_v36  ;;  %v7743_v36 = vpop.permute.xlu1 %4414 }
 0x445   :  { %3140 = vadd.xlane.f32.xlu0 %v3139_v46  ;;  %8960 = vst [vmem:[#allocation84_spill] sm:$0xff] %v7743_v36 }
 0x446   :  { %v3142_v59 = vsel %vm3090_vm4, %v7719_v62, 0.0 }
 0x447   :  { %3143 = vadd.xlane.f32.xlu1 %v3142_v59  ;;  %v7727_v42 = vpop.f32.mrb[144].mxu0 }
 0x448   :  { %v2734_v6 = vpop.f32.mrb[145].mxu0 }
 0x449   :  { %v2940_v18 = vpop.f32.mrb[88].mxu1  ;;  %v7731_v23 = vpop.f32.mrb[146].mxu0 }
 0x44a   :  { %v7734_v33 = vadd.f32 %v2940_v18, %v7619_v37  ;;  %v2942_v2 = vpop.f32.mrb[89].mxu1  ;;  %v2737_v25 = vpop.f32.mrb[147].mxu0 }
 0x44b   :  { %v2943_v46 = vpop.f32.mrb[90].mxu1  ;;  %v7747_v37 = vpop.permute.xlu0 %4419 }
 0x44c   :  { %v7737_v56 = vadd.f32 %v2943_v46, %v7623_v48  ;;  %v3145_v59 = vsel %vm3090_vm4, %v7734_v33, 0.0  ;;  %v2945_v14 = vpop.f32.mrb[91].mxu1  ;;  %8961 = vst [vmem:[#allocation85_spill] sm:$0xff] %v7747_v37  ;;  %v7761_v37 = vpop.permute.xlu1 %4424 }
 0x44d   :  { %3146 = vadd.xlane.f32.xlu0 %v3145_v59  ;;  %8962 = vst [vmem:[#allocation86_spill] sm:$0xff] %v7761_v37 }
 0x44e   :  { %v3148_v6 = vsel %vm3090_vm4, %v7737_v56, 0.0 }
 0x44f   :  { %3149 = vadd.xlane.f32.xlu1 %v3148_v6  ;;  %v7745_v43 = vpop.f32.mrb[148].mxu0 }
 0x450   :  { %v2742_v18 = vpop.f32.mrb[149].mxu0 }
 0x451   :  { %v2948_v2 = vpop.f32.mrb[92].mxu1  ;;  %v7749_v25 = vpop.f32.mrb[150].mxu0 }
 0x452   :  { %v7752_v48 = vadd.f32 %v2948_v2, %v7637_v4  ;;  %v2950_v46 = vpop.f32.mrb[93].mxu1  ;;  %v2745_v14 = vpop.f32.mrb[151].mxu0 }
 0x453   :  { %v2951_v59 = vpop.f32.mrb[94].mxu1  ;;  %v7765_v4 = vpop.permute.xlu0 %4429 }
 0x454   :  { %v7755_v54 = vadd.f32 %v2951_v59, %v7641_v26  ;;  %v3151_v6 = vsel %vm3090_vm4, %v7752_v48, 0.0  ;;  %v2953_v36 = vpop.f32.mrb[95].mxu1  ;;  %8963 = vst [vmem:[#allocation87_spill] sm:$0xff] %v7765_v4  ;;  %v7779_v4 = vpop.permute.xlu1 %4434 }
 0x455   :  { %3152 = vadd.xlane.f32.xlu0 %v3151_v6  ;;  %8964 = vst [vmem:[#allocation88_spill] sm:$0xff] %v7779_v4 }
 0x456   :  { %v3154_v18 = vsel %vm3090_vm4, %v7755_v54, 0.0 }
 0x457   :  { %3155 = vadd.xlane.f32.xlu1 %v3154_v18  ;;  %v7763_v51 = vpop.f32.mrb[152].mxu0 }
 0x458   :  { %v2750_v2 = vpop.f32.mrb[153].mxu0 }
 0x459   :  { %v2956_v46 = vpop.f32.mrb[96].mxu1  ;;  %v7767_v14 = vpop.f32.mrb[154].mxu0 }
 0x45a   :  { %v7770_v26 = vadd.f32 %v2956_v46, %v7655_v50  ;;  %v2958_v59 = vpop.f32.mrb[97].mxu1  ;;  %v2753_v36 = vpop.f32.mrb[155].mxu0 }
 0x45b   :  { %v2959_v6 = vpop.f32.mrb[98].mxu1  ;;  %v7783_v50 = vpop.permute.xlu0 %4439 }
 0x45c   :  { %v7773_v49 = vadd.f32 %v2959_v6, %v7659_v41  ;;  %v3157_v18 = vsel %vm3090_vm4, %v7770_v26, 0.0  ;;  %v2961_v37 = vpop.f32.mrb[99].mxu1  ;;  %8965 = vst [vmem:[#allocation89_spill] sm:$0xff] %v7783_v50  ;;  %v7797_v50 = vpop.permute.xlu1 %4444 }
 0x45d   :  { %3158 = vadd.xlane.f32.xlu0 %v3157_v18  ;;  %8966 = vst [vmem:[#allocation90_spill] sm:$0xff] %v7797_v50 }
 0x45e   :  { %v3160_v2 = vsel %vm3090_vm4, %v7773_v49, 0.0 }
 0x45f   :  { %3161 = vadd.xlane.f32.xlu1 %v3160_v2  ;;  %v7781_v1 = vpop.f32.mrb[156].mxu0 }
 0x460   :  { %v2758_v46 = vpop.f32.mrb[157].mxu0 }
 0x461   :  { %v2964_v59 = vpop.f32.mrb[100].mxu1  ;;  %v7785_v36 = vpop.f32.mrb[158].mxu0 }
 0x462   :  { %v7788_v41 = vadd.f32 %v2964_v59, %v7673_v13  ;;  %v2966_v6 = vpop.f32.mrb[101].mxu1  ;;  %v2761_v37 = vpop.f32.mrb[159].mxu0 }
 0x463   :  { %v2967_v18 = vpop.f32.mrb[102].mxu1  ;;  %v7801_v13 = vpop.permute.xlu0 %4449 }
 0x464   :  { %v7791_v47 = vadd.f32 %v2967_v18, %v7677_v5  ;;  %v3163_v2 = vsel %vm3090_vm4, %v7788_v41, 0.0  ;;  %v2969_v4 = vpop.f32.mrb[103].mxu1  ;;  %8967 = vst [vmem:[#allocation91_spill] sm:$0xff] %v7801_v13  ;;  %v7815_v13 = vpop.permute.xlu1 %4454 }
 0x465   :  { %3164 = vadd.xlane.f32.xlu0 %v3163_v2  ;;  %8968 = vst [vmem:[#allocation92_spill] sm:$0xff] %v7815_v13 }
 0x466   :  { %v3166_v46 = vsel %vm3090_vm4, %v7791_v47, 0.0 }
 0x467   :  { %3167 = vadd.xlane.f32.xlu1 %v3166_v46  ;;  %v7799_v60 = vpop.f32.mrb[160].mxu0 }
 0x468   :  { %v2766_v59 = vpop.f32.mrb[161].mxu0  ;;  %v7831_v21 = vpop.permute.xlu1 %4464 }
 0x469   :  { %v2972_v6 = vpop.f32.mrb[104].mxu1  ;;  %v7803_v37 = vpop.f32.mrb[162].mxu0  ;;  %8970 = vst [vmem:[#allocation94_spill] sm:$0xff] %v7831_v21 }
 0x46a   :  { %v7806_v5 = vadd.f32 %v2972_v6, %v7691_v52  ;;  %v2974_v18 = vpop.f32.mrb[105].mxu1  ;;  %v2769_v4 = vpop.f32.mrb[163].mxu0 }
 0x46b   :  { %v2975_v2 = vpop.f32.mrb[106].mxu1  ;;  %v7819_v52 = vpop.permute.xlu0 %4459 }
 0x46c   :  { %v7809_v40 = vadd.f32 %v2975_v2, %v7695_v12  ;;  %v3169_v46 = vsel %vm3090_vm4, %v7806_v5, 0.0  ;;  %v2977_v50 = vpop.f32.mrb[107].mxu1  ;;  %8969 = vst [vmem:[#allocation93_spill] sm:$0xff] %v7819_v52  ;;  %v7844_v32 = vpop.permute.xlu1 %4474 }
 0x46d   :  { %3170 = vadd.xlane.f32.xlu0 %v3169_v46  ;;  %8972 = vst [vmem:[#allocation96_spill] sm:$0xff] %v7844_v32 }
 0x46e   :  { %v3172_v59 = vsel %vm3090_vm4, %v7809_v40, 0.0 }
 0x46f   :  { %3173 = vadd.xlane.f32.xlu1 %v3172_v59  ;;  %v7817_v20 = vpop.f32.mrb[164].mxu0 }
 0x470   :  { %v2774_v6 = vpop.f32.mrb[165].mxu0 }
 0x471   :  { %v2980_v18 = vpop.f32.mrb[108].mxu1  ;;  %v7821_v4 = vpop.f32.mrb[166].mxu0 }
 0x472   :  { %v7824_v12 = vadd.f32 %v2980_v18, %v7709_v35  ;;  %v2982_v2 = vpop.f32.mrb[109].mxu1  ;;  %v2777_v50 = vpop.f32.mrb[167].mxu0 }
 0x473   :  { %v2983_v46 = vpop.f32.mrb[110].mxu1  ;;  %v7837_v35 = vpop.permute.xlu0 %4469 }
 0x474   :  { %v7827_v39 = vadd.f32 %v2983_v46, %v7713_v11  ;;  %v3175_v59 = vsel %vm3090_vm4, %v7824_v12, 0.0  ;;  %v2985_v13 = vpop.f32.mrb[111].mxu1  ;;  %8971 = vst [vmem:[#allocation95_spill] sm:$0xff] %v7837_v35 }
 0x475   :  { %3176 = vadd.xlane.f32.xlu0 %v3175_v59 }
 0x476   :  { %v3178_v6 = vsel %vm3090_vm4, %v7827_v39, 0.0 }
 0x477   :  { %3179 = vadd.xlane.f32.xlu1 %v3178_v6  ;;  %v7835_v52 = vpop.f32.mrb[168].mxu0 }
 0x478   :  { %v2782_v18 = vpop.f32.mrb[169].mxu0 }
 0x479   :  { %v2988_v2 = vpop.f32.mrb[112].mxu1  ;;  %v7839_v50 = vpop.f32.mrb[170].mxu0 }
 0x47a   :  { %v7842_v11 = vadd.f32 %v2988_v2, %v7727_v42  ;;  %v2990_v46 = vpop.f32.mrb[113].mxu1  ;;  %v2785_v13 = vpop.f32.mrb[171].mxu0 }
 0x47b   :  { %v2991_v59 = vpop.f32.mrb[114].mxu1  ;;  %v7851_v18 = vpop.permute.xlu0 %4479 }
 0x47c   :  { %v7847_v21 = vadd.f32 %v2991_v59, %v7731_v23  ;;  %v3181_v6 = vsel %vm3090_vm4, %v7842_v11, 0.0  ;;  %v2993_v31 = vpop.f32.mrb[115].mxu1  ;;  %8973 = vst [vmem:[#allocation97_spill] sm:$0xff] %v7851_v18  ;;  %v7855_v2 = vpop.permute.xlu1 %4484 }
 0x47d   :  { %3182 = vadd.xlane.f32.xlu0 %v3181_v6  ;;  %8974 = vst [vmem:[#allocation98_spill] sm:$0xff] %v7855_v2 }
 0x47e   :  { %v3184_v35 = vsel %vm3090_vm4, %v7847_v21, 0.0 }
 0x47f   :  { %3185 = vadd.xlane.f32.xlu1 %v3184_v35  ;;  %v7860_v59 = vpop.permute.xlu0 %4489 }
 0x480   :  { %8975 = vst [vmem:[#allocation99_spill] sm:$0xff] %v7860_v59  ;;  %v7869_v2 = vpop.permute.xlu1 %4494 }
 0x481   :  { %v2996_v42 = vpop.f32.mrb[116].mxu1  ;;  %8976 = vst [vmem:[#allocation100_spill] sm:$0xff] %v7869_v2 }
 0x482   :  { %v7858_v46 = vadd.f32 %v2996_v42, %v7745_v43  ;;  %v2998_v13 = vpop.f32.mrb[117].mxu1 }
 0x483   :  { %v2999_v23 = vpop.f32.mrb[118].mxu1  ;;  %v7871_v42 = vpop.permute.xlu0 %4499 }
 0x484   :  { %v7863_v32 = vadd.f32 %v2999_v23, %v7749_v25  ;;  %v3187_v31 = vsel %vm3090_vm4, %v7858_v46, 0.0  ;;  %v3001_v6 = vpop.f32.mrb[119].mxu1  ;;  %8977 = vst [vmem:[#allocation101_spill] sm:$0xff] %v7871_v42  ;;  %v7881_v18 = vpop.permute.xlu1 %4504 }
 0x485   :  { %3188 = vadd.xlane.f32.xlu0 %v3187_v31  ;;  %8978 = vst [vmem:[#allocation102_spill] sm:$0xff] %v7881_v18 }
 0x486   :  { %v3190_v35 = vsel %vm3090_vm4, %v7863_v32, 0.0 }
 0x487   :  { %3191 = vadd.xlane.f32.xlu1 %v3190_v35  ;;  %v7885_v42 = vpop.permute.xlu0 %4509 }
 0x488   :  { %8979 = vst [vmem:[#allocation103_spill] sm:$0xff] %v7885_v42 }
 0x489   :  { %v3004_v43 = vpop.f32.mrb[120].mxu1 }
 0x48a   :  { %v7874_v13 = vadd.f32 %v3004_v43, %v7763_v51  ;;  %v3006_v59 = vpop.f32.mrb[121].mxu1 }
 0x48b   :  { %v3007_v25 = vpop.f32.mrb[122].mxu1 }
 0x48c   :  { %v7877_v23 = vadd.f32 %v3007_v25, %v7767_v14  ;;  %v3193_v31 = vsel %vm3090_vm4, %v7874_v13, 0.0  ;;  %v3009_v6 = vpop.f32.mrb[123].mxu1 }
 0x48d   :  { %3194 = vadd.xlane.f32.xlu0 %v3193_v31 }
 0x48e   :  { %v3196_v35 = vsel %vm3090_vm4, %v7877_v23, 0.0 }
 0x48f   :  { %3197 = vadd.xlane.f32.xlu1 %v3196_v35 }
 0x491   :  { %v3012_v51 = vpop.f32.mrb[124].mxu1 }
 0x492   :  { %v7888_v59 = vadd.f32 %v3012_v51, %v7781_v1  ;;  %v3014_v43 = vpop.f32.mrb[125].mxu1  ;;  %v3093_v14 = vpop.xlane.xlu1 %3092 }
 0x493   :  { %v3257_v25 = vmul.f32 0.020408163, %v3093_v14  ;;  %v3015_v2 = vpop.f32.mrb[126].mxu1 }
 0x494   :  { %v7891_v30 = vadd.f32 %v3015_v2, %v7785_v36  ;;  %v3096_v31 = vpop.xlane.xlu0 %3095  ;;  %v3199_v6 = vsel %vm3090_vm4, %v7888_v59, 0.0  ;;  %v3017_v18 = vpop.f32.mrb[127].mxu1 }
 0x495   :  { %v7896_v35 = vsub.f32 %v7572_v7, %v3257_v25  ;;  %v3258_v42 = vmul.f32 0.020408163, %v3096_v31  ;;  %3200 = vadd.xlane.f32.xlu0 %v3199_v6 }
 0x496   :  { %v3202_v1 = vsel %vm3090_vm4, %v7891_v30, 0.0 }
 0x497   :  { %v7901_v51 = vsub.f32 %v7575_v61, %v3258_v42  ;;  %3203 = vadd.xlane.f32.xlu1 %v3202_v1  ;;  %v3367_v36 = vmul.f32 %v7896_v35, %v7896_v35 }
 0x499   :  { %v3020_v2 = vpop.f32.mrb[128].mxu1  ;;  %v3422_v43 = vsel %vm3090_vm4, %v3367_v36, 0.0  ;;  %v3368_v18 = vmul.f32 %v7901_v51, %v7901_v51 }
 0x49a   :  { %v7909_v7 = vadd.f32 %v3020_v2, %v7799_v60  ;;  %v3022_v14 = vpop.f32.mrb[129].mxu1  ;;  %v3099_v25 = vpop.xlane.xlu0 %3098 }
 0x49b   :  { %v3259_v31 = vmul.f32 0.020408163, %v3099_v25  ;;  %v3023_v6 = vpop.f32.mrb[130].mxu1  ;;  %3423 = vadd.xlane.f32.xlu1 %v3422_v43  ;;  %v3425_v61 = vsel %vm3090_vm4, %v3368_v18, 0.0 }
 0x49c   :  { %v7913_v42 = vadd.f32 %v3023_v6, %v7803_v37  ;;  %v3102_v1 = vpop.xlane.xlu1 %3101  ;;  %3426 = vadd.xlane.f32.xlu0 %v3425_v61  ;;  %v3025_v44 = vpop.f32.mrb[131].mxu1  ;;  %v3205_v43 = vsel %vm3090_vm4, %v7909_v7, 0.0 }
 0x49d   :  { %v7916_v36 = vsub.f32 %v7590_v53, %v3259_v31  ;;  %v3260_v38 = vmul.f32 0.020408163, %v3102_v1 }
 0x49e   :  { %v3208_v60 = vsel %vm3090_vm4, %v7913_v42, 0.0 }
 0x49f   :  { %v7921_v2 = vsub.f32 %v7593_v29, %v3260_v38  ;;  %3209 = vadd.xlane.f32.xlu1 %v3208_v60  ;;  %v3369_v37 = vmul.f32 %v7916_v36, %v7916_v36 }
 0x4a0   :  { %3206 = vadd.xlane.f32.xlu0 %v3205_v43 }
 0x4a1   :  { %v3028_v18 = vpop.f32.mrb[132].mxu1  ;;  %v3428_v44 = vsel %vm3090_vm4, %v3369_v37, 0.0  ;;  %v3370_v53 = vmul.f32 %v7921_v2, %v7921_v2 }
 0x4a2   :  { %v7931_v14 = vadd.f32 %v3028_v18, %v7817_v20  ;;  %v3030_v25 = vpop.f32.mrb[133].mxu1  ;;  %v3105_v38 = vpop.xlane.xlu0 %3104 }
 0x4a3   :  { %v3261_v29 = vmul.f32 0.020408163, %v3105_v38  ;;  %v3031_v31 = vpop.f32.mrb[134].mxu1  ;;  %3429 = vadd.xlane.f32.xlu1 %v3428_v44  ;;  %v3431_v6 = vsel %vm3090_vm4, %v3370_v53, 0.0 }
 0x4a4   :  { %v7935_v61 = vadd.f32 %v3031_v31, %v7821_v4  ;;  %v3108_v1 = vpop.xlane.xlu1 %3107  ;;  %3432 = vadd.xlane.f32.xlu0 %v3431_v6  ;;  %v3033_v60 = vpop.f32.mrb[135].mxu1  ;;  %v3211_v44 = vsel %vm3090_vm4, %v7931_v14, 0.0 }
 0x4a5   :  { %v7938_v43 = vsub.f32 %v7608_v57, %v3261_v29  ;;  %v3262_v37 = vmul.f32 0.020408163, %v3108_v1 }
 0x4a6   :  { %v3214_v20 = vsel %vm3090_vm4, %v7935_v61, 0.0 }
 0x4a7   :  { %v7943_v18 = vsub.f32 %v7611_v28, %v3262_v37  ;;  %3215 = vadd.xlane.f32.xlu1 %v3214_v20  ;;  %v3371_v4 = vmul.f32 %v7938_v43, %v7938_v43 }
 0x4a8   :  { %3212 = vadd.xlane.f32.xlu0 %v3211_v44 }
 0x4a9   :  { %v3036_v53 = vpop.f32.mrb[136].mxu1  ;;  %v3434_v25 = vsel %vm3090_vm4, %v3371_v4, 0.0  ;;  %v3372_v57 = vmul.f32 %v7943_v18, %v7943_v18 }
 0x4aa   :  { %v7953_v38 = vadd.f32 %v3036_v53, %v7835_v52  ;;  %v3038_v29 = vpop.f32.mrb[137].mxu1  ;;  %v3111_v28 = vpop.xlane.xlu0 %3110 }
 0x4ab   :  { %v3263_v31 = vmul.f32 0.020408163, %v3111_v28  ;;  %v3039_v6 = vpop.f32.mrb[138].mxu1  ;;  %3435 = vadd.xlane.f32.xlu1 %v3434_v25  ;;  %v3437_v1 = vsel %vm3090_vm4, %v3372_v57, 0.0 }
 0x4ac   :  { %v7957_v60 = vadd.f32 %v3039_v6, %v7839_v50  ;;  %v3114_v37 = vpop.xlane.xlu1 %3113  ;;  %3438 = vadd.xlane.f32.xlu0 %v3437_v1  ;;  %v3041_v20 = vpop.f32.mrb[139].mxu1  ;;  %v3217_v25 = vsel %vm3090_vm4, %v7953_v38, 0.0 }
 0x4ad   :  { %v7960_v44 = vsub.f32 %v7626_v34, %v3263_v31  ;;  %v3264_v4 = vmul.f32 0.020408163, %v3114_v37 }
 0x4ae   :  { %v3220_v52 = vsel %vm3090_vm4, %v7957_v60, 0.0 }
 0x4af   :  { %v7965_v53 = vsub.f32 %v7629_v19, %v3264_v4  ;;  %3221 = vadd.xlane.f32.xlu1 %v3220_v52  ;;  %v3373_v50 = vmul.f32 %v7960_v44, %v7960_v44 }
 0x4b0   :  { %3218 = vadd.xlane.f32.xlu0 %v3217_v25 }
 0x4b1   :  { %8980 = vst [vmem:[#allocation104_spill] sm:$0xff] %v7965_v53  ;;  %v7971_v57 = vpop.f32.mrb[28].mxu1  ;;  %v3440_v34 = vsel %vm3090_vm4, %v3373_v50, 0.0  ;;  %v3374_v1 = vmul.f32 %v7965_v53, %v7965_v53 }
 0x4b2   :  { %v3046_v29 = vpop.f32.mrb[29].mxu1  ;;  %v3117_v28 = vpop.xlane.xlu0 %3116  ;;  %v3223_v31 = vsel %vm3090_vm4, %v7971_v57, 0.0 }
 0x4b3   :  { %v3265_v6 = vmul.f32 0.020408163, %v3117_v28  ;;  %v7976_v19 = vpop.f32.mrb[30].mxu1  ;;  %3441 = vadd.xlane.f32.xlu1 %v3440_v34  ;;  %v3443_v29 = vsel %vm3090_vm4, %v3374_v1, 0.0 }
 0x4b4   :  { %v3049_v37 = vpop.f32.mrb[31].mxu1  ;;  %v3120_v20 = vpop.xlane.xlu1 %3119  ;;  %3224 = vadd.xlane.f32.xlu0 %v3223_v31  ;;  %v3226_v25 = vsel %vm3090_vm4, %v7976_v19, 0.0 }
 0x4b5   :  { %v7981_v4 = vsub.f32 %v7644_v10, %v3265_v6  ;;  %v3266_v52 = vmul.f32 0.020408163, %v3120_v20 }
 0x4b7   :  { %8981 = vst [vmem:[#allocation105_spill] sm:$0xff] %v7981_v4  ;;  %v7986_v50 = vsub.f32 %v7647_v16, %v3266_v52  ;;  %3227 = vadd.xlane.f32.xlu1 %v3226_v25  ;;  %v3375_v34 = vmul.f32 %v7981_v4, %v7981_v4 }
 0x4b8   :  { %3444 = vadd.xlane.f32.xlu0 %v3443_v29 }
 0x4b9   :  { %8982 = vst [vmem:[#allocation106_spill] sm:$0xff] %v7986_v50  ;;  %v7991_v28 = vpop.f32.mrb[32].mxu1  ;;  %v3446_v31 = vsel %vm3090_vm4, %v3375_v34, 0.0  ;;  %v3376_v16 = vmul.f32 %v7986_v50, %v7986_v50 }
 0x4ba   :  { %v3054_v10 = vpop.f32.mrb[33].mxu1  ;;  %v3123_v6 = vpop.xlane.xlu0 %3122  ;;  %v3229_v37 = vsel %vm3090_vm4, %v7991_v28, 0.0 }
 0x4bb   :  { %v3267_v20 = vmul.f32 0.020408163, %v3123_v6  ;;  %v7996_v53 = vpop.f32.mrb[34].mxu1  ;;  %3447 = vadd.xlane.f32.xlu1 %v3446_v31  ;;  %v3449_v6 = vsel %vm3090_vm4, %v3376_v16, 0.0 }
 0x4bc   :  { %v3057_v1 = vpop.f32.mrb[35].mxu1  ;;  %v3126_v52 = vpop.xlane.xlu1 %3125  ;;  %3230 = vadd.xlane.f32.xlu0 %v3229_v37  ;;  %v3232_v34 = vsel %vm3090_vm4, %v7996_v53, 0.0 }
 0x4bd   :  { %v8001_v25 = vsub.f32 %v7662_v55, %v3267_v20  ;;  %v3268_v29 = vmul.f32 0.020408163, %v3126_v52 }
 0x4bf   :  { %8983 = vst [vmem:[#allocation107_spill] sm:$0xff] %v8001_v25  ;;  %v8006_v10 = vsub.f32 %v7665_v8, %v3268_v29  ;;  %3233 = vadd.xlane.f32.xlu1 %v3232_v34  ;;  %v3377_v31 = vmul.f32 %v8001_v25, %v8001_v25 }
 0x4c0   :  { %3450 = vadd.xlane.f32.xlu0 %v3449_v6 }
 0x4c1   :  { %8984 = vst [vmem:[#allocation108_spill] sm:$0xff] %v8006_v10  ;;  %v8011_v1 = vpop.f32.mrb[36].mxu1  ;;  %v3452_v37 = vsel %vm3090_vm4, %v3377_v31, 0.0  ;;  %v3378_v8 = vmul.f32 %v8006_v10, %v8006_v10 }
 0x4c2   :  { %v3062_v55 = vpop.f32.mrb[37].mxu1  ;;  %v3129_v20 = vpop.xlane.xlu0 %3128  ;;  %v3235_v52 = vsel %vm3090_vm4, %v8011_v1, 0.0 }
 0x4c3   :  { %v3269_v50 = vmul.f32 0.020408163, %v3129_v20  ;;  %v8016_v4 = vpop.f32.mrb[38].mxu1  ;;  %3453 = vadd.xlane.f32.xlu1 %v3452_v37  ;;  %v3455_v20 = vsel %vm3090_vm4, %v3378_v8, 0.0 }
 0x4c4   :  { %v3065_v16 = vpop.f32.mrb[39].mxu1  ;;  %v3132_v29 = vpop.xlane.xlu1 %3131  ;;  %3236 = vadd.xlane.f32.xlu0 %v3235_v52  ;;  %v3238_v31 = vsel %vm3090_vm4, %v8016_v4, 0.0 }
 0x4c5   :  { %v8021_v34 = vsub.f32 %v7680_v58, %v3269_v50  ;;  %v3270_v6 = vmul.f32 0.020408163, %v3132_v29 }
 0x4c7   :  { %8985 = vst [vmem:[#allocation109_spill] sm:$0xff] %v8021_v34  ;;  %v8026_v55 = vsub.f32 %v7683_v0, %v3270_v6  ;;  %3239 = vadd.xlane.f32.xlu1 %v3238_v31  ;;  %v3379_v37 = vmul.f32 %v8021_v34, %v8021_v34 }
 0x4c8   :  { %3456 = vadd.xlane.f32.xlu0 %v3455_v20 }
 0x4c9   :  { %8986 = vst [vmem:[#allocation110_spill] sm:$0xff] %v8026_v55  ;;  %v8031_v16 = vpop.f32.mrb[40].mxu1  ;;  %v3458_v52 = vsel %vm3090_vm4, %v3379_v37, 0.0  ;;  %v3380_v0 = vmul.f32 %v8026_v55, %v8026_v55 }
 0x4ca   :  { %v3070_v58 = vpop.f32.mrb[41].mxu1  ;;  %v3135_v50 = vpop.xlane.xlu0 %3134  ;;  %v3241_v29 = vsel %vm3090_vm4, %v8031_v16, 0.0 }
 0x4cb   :  { %v3271_v10 = vmul.f32 0.020408163, %v3135_v50  ;;  %v8036_v25 = vpop.f32.mrb[42].mxu1  ;;  %3459 = vadd.xlane.f32.xlu1 %v3458_v52  ;;  %v3461_v50 = vsel %vm3090_vm4, %v3380_v0, 0.0 }
 0x4cc   :  { %v3073_v8 = vpop.f32.mrb[43].mxu1  ;;  %v3138_v6 = vpop.xlane.xlu1 %3137  ;;  %3242 = vadd.xlane.f32.xlu0 %v3241_v29  ;;  %v3244_v37 = vsel %vm3090_vm4, %v8036_v25, 0.0 }
 0x4cd   :  { %v8041_v31 = vsub.f32 %v7698_v9, %v3271_v10  ;;  %v3272_v20 = vmul.f32 0.020408163, %v3138_v6 }
 0x4cf   :  { %8987 = vst [vmem:[#allocation111_spill] sm:$0xff] %v8041_v31  ;;  %v8046_v58 = vsub.f32 %v7701_v63, %v3272_v20  ;;  %3245 = vadd.xlane.f32.xlu1 %v3244_v37  ;;  %v3381_v52 = vmul.f32 %v8041_v31, %v8041_v31 }
 0x4d0   :  { %3462 = vadd.xlane.f32.xlu0 %v3461_v50 }
 0x4d1   :  { %8988 = vst [vmem:[#allocation112_spill] sm:$0xff] %v8046_v58  ;;  %v8051_v8 = vpop.f32.mrb[44].mxu1  ;;  %v3464_v29 = vsel %vm3090_vm4, %v3381_v52, 0.0  ;;  %v3382_v63 = vmul.f32 %v8046_v58, %v8046_v58 }
 0x4d2   :  { %v3078_v9 = vpop.f32.mrb[45].mxu1  ;;  %v3141_v10 = vpop.xlane.xlu0 %3140  ;;  %v3247_v6 = vsel %vm3090_vm4, %v8051_v8, 0.0 }
 0x4d3   :  { %v3273_v55 = vmul.f32 0.020408163, %v3141_v10  ;;  %v8056_v34 = vpop.f32.mrb[46].mxu1  ;;  %3465 = vadd.xlane.f32.xlu1 %v3464_v29  ;;  %v3467_v10 = vsel %vm3090_vm4, %v3382_v63, 0.0 }
 0x4d4   :  { %v3081_v0 = vpop.f32.mrb[47].mxu1  ;;  %v3144_v20 = vpop.xlane.xlu1 %3143  ;;  %3248 = vadd.xlane.f32.xlu0 %v3247_v6  ;;  %v3250_v52 = vsel %vm3090_vm4, %v8056_v34, 0.0 }
 0x4d5   :  { %v8061_v37 = vsub.f32 %v7716_v3, %v3273_v55  ;;  %v3274_v50 = vmul.f32 0.020408163, %v3144_v20 }
 0x4d7   :  { %v8066_v9 = vsub.f32 %v7719_v62, %v3274_v50  ;;  %3251 = vadd.xlane.f32.xlu1 %v3250_v52  ;;  %v3383_v29 = vmul.f32 %v8061_v37, %v8061_v37 }
 0x4d8   :  { %3468 = vadd.xlane.f32.xlu0 %v3467_v10 }
 0x4d9   :  { %v8071_v0 = vpop.f32.mrb[48].mxu1  ;;  %v3470_v6 = vsel %vm3090_vm4, %v3383_v29, 0.0  ;;  %v3384_v62 = vmul.f32 %v8066_v9, %v8066_v9 }
 0x4da   :  { %v3086_v3 = vpop.f32.mrb[49].mxu1  ;;  %v3147_v55 = vpop.xlane.xlu0 %3146  ;;  %v3253_v20 = vsel %vm3090_vm4, %v8071_v0, 0.0 }
 0x4db   :  { %v3275_v58 = vmul.f32 0.020408163, %v3147_v55  ;;  %v3087_v31 = vpop.f32.mrb[50].mxu1  ;;  %3471 = vadd.xlane.f32.xlu1 %v3470_v6  ;;  %v3473_v3 = vsel %vm3090_vm4, %v3384_v62, 0.0 }
 0x4dc   :  { %v3088_v63 = vpop.f32.mrb[51].mxu1  ;;  %v3150_v50 = vpop.xlane.xlu1 %3149  ;;  %3254 = vadd.xlane.f32.xlu0 %v3253_v20 }
 0x4dd   :  { %v8079_v52 = vsub.f32 %v7734_v33, %v3275_v58  ;;  %v3276_v10 = vmul.f32 0.020408163, %v3150_v50 }
 0x4df   :  { %v8082_v29 = vsub.f32 %v7737_v56, %v3276_v10  ;;  %v3385_v55 = vmul.f32 %v8079_v52, %v8079_v52 }
 0x4e0   :  { %3474 = vadd.xlane.f32.xlu0 %v3473_v3 }
 0x4e1   :  { %v3476_v31 = vsel %vm3090_vm4, %v3385_v55, 0.0  ;;  %v3386_v6 = vmul.f32 %v8082_v29, %v8082_v29 }
 0x4e2   :  { %3477 = vadd.xlane.f32.xlu1 %v3476_v31  ;;  %v3153_v20 = vpop.xlane.xlu0 %3152 }
 0x4e3   :  { %v3277_v63 = vmul.f32 0.020408163, %v3153_v20  ;;  %v3479_v33 = vsel %vm3090_vm4, %v3386_v6, 0.0 }
 0x4e4   :  { %v3156_v58 = vpop.xlane.xlu1 %3155  ;;  %3480 = vadd.xlane.f32.xlu0 %v3479_v33 }
 0x4e5   :  { %v8092_v56 = vsub.f32 %v7752_v48, %v3277_v63  ;;  %v3278_v62 = vmul.f32 0.020408163, %v3156_v58 }
 0x4e7   :  { %v8095_v50 = vsub.f32 %v7755_v54, %v3278_v62  ;;  %v3387_v10 = vmul.f32 %v8092_v56, %v8092_v56 }
 0x4e9   :  { %v3482_v3 = vsel %vm3090_vm4, %v3387_v10, 0.0  ;;  %v3388_v55 = vmul.f32 %v8095_v50, %v8095_v50 }
 0x4ea   :  { %3483 = vadd.xlane.f32.xlu1 %v3482_v3  ;;  %v3159_v31 = vpop.xlane.xlu0 %3158 }
 0x4eb   :  { %v3279_v6 = vmul.f32 0.020408163, %v3159_v31  ;;  %v3485_v20 = vsel %vm3090_vm4, %v3388_v55, 0.0 }
 0x4ec   :  { %v3162_v33 = vpop.xlane.xlu1 %3161  ;;  %3486 = vadd.xlane.f32.xlu0 %v3485_v20 }
 0x4ed   :  { %v8104_v48 = vsub.f32 %v7770_v26, %v3279_v6  ;;  %v3280_v54 = vmul.f32 0.020408163, %v3162_v33 }
 0x4ef   :  { %v8107_v63 = vsub.f32 %v7773_v49, %v3280_v54  ;;  %v3389_v58 = vmul.f32 %v8104_v48, %v8104_v48 }
 0x4f1   :  { %v3488_v62 = vsel %vm3090_vm4, %v3389_v58, 0.0  ;;  %v3390_v10 = vmul.f32 %v8107_v63, %v8107_v63 }
 0x4f2   :  { %3489 = vadd.xlane.f32.xlu1 %v3488_v62  ;;  %v3165_v3 = vpop.xlane.xlu0 %3164 }
 0x4f3   :  { %v3281_v55 = vmul.f32 0.020408163, %v3165_v3  ;;  %v3491_v31 = vsel %vm3090_vm4, %v3390_v10, 0.0 }
 0x4f4   :  { %v3168_v20 = vpop.xlane.xlu1 %3167  ;;  %3492 = vadd.xlane.f32.xlu0 %v3491_v31 }
 0x4f5   :  { %v8116_v26 = vsub.f32 %v7788_v41, %v3281_v55  ;;  %v3282_v49 = vmul.f32 0.020408163, %v3168_v20 }
 0x4f7   :  { %v8119_v6 = vsub.f32 %v7791_v47, %v3282_v49  ;;  %v3391_v33 = vmul.f32 %v8116_v26, %v8116_v26 }
 0x4f9   :  { %v3494_v54 = vsel %vm3090_vm4, %v3391_v33, 0.0  ;;  %v3392_v58 = vmul.f32 %v8119_v6, %v8119_v6 }
 0x4fa   :  { %3495 = vadd.xlane.f32.xlu1 %v3494_v54  ;;  %v3171_v62 = vpop.xlane.xlu0 %3170 }
 0x4fb   :  { %v3283_v10 = vmul.f32 0.020408163, %v3171_v62  ;;  %v3497_v3 = vsel %vm3090_vm4, %v3392_v58, 0.0 }
 0x4fc   :  { %v3174_v31 = vpop.xlane.xlu1 %3173  ;;  %3498 = vadd.xlane.f32.xlu0 %v3497_v3 }
 0x4fd   :  { %v8128_v41 = vsub.f32 %v7806_v5, %v3283_v10  ;;  %v3284_v47 = vmul.f32 0.020408163, %v3174_v31 }
 0x4ff   :  { %v8131_v55 = vsub.f32 %v7809_v40, %v3284_v47  ;;  %v3393_v20 = vmul.f32 %v8128_v41, %v8128_v41 }
 0x501   :  { %v3500_v49 = vsel %vm3090_vm4, %v3393_v20, 0.0  ;;  %v3394_v33 = vmul.f32 %v8131_v55, %v8131_v55 }
 0x502   :  { %3501 = vadd.xlane.f32.xlu1 %v3500_v49  ;;  %v3177_v54 = vpop.xlane.xlu0 %3176 }
 0x503   :  { %v3285_v58 = vmul.f32 0.020408163, %v3177_v54  ;;  %v3503_v62 = vsel %vm3090_vm4, %v3394_v33, 0.0 }
 0x504   :  { %v3180_v3 = vpop.xlane.xlu1 %3179  ;;  %3504 = vadd.xlane.f32.xlu0 %v3503_v62 }
 0x505   :  { %v8140_v5 = vsub.f32 %v7824_v12, %v3285_v58  ;;  %v3286_v40 = vmul.f32 0.020408163, %v3180_v3 }
 0x507   :  { %v8143_v10 = vsub.f32 %v7827_v39, %v3286_v40  ;;  %v3395_v31 = vmul.f32 %v8140_v5, %v8140_v5 }
 0x509   :  { %v3506_v47 = vsel %vm3090_vm4, %v3395_v31, 0.0  ;;  %v3396_v20 = vmul.f32 %v8143_v10, %v8143_v10 }
 0x50a   :  { %3507 = vadd.xlane.f32.xlu1 %v3506_v47  ;;  %v3183_v49 = vpop.xlane.xlu0 %3182 }
 0x50b   :  { %v3287_v33 = vmul.f32 0.020408163, %v3183_v49  ;;  %v3509_v54 = vsel %vm3090_vm4, %v3396_v20, 0.0 }
 0x50c   :  { %v3186_v62 = vpop.xlane.xlu1 %3185  ;;  %3510 = vadd.xlane.f32.xlu0 %v3509_v54 }
 0x50d   :  { %v8152_v12 = vsub.f32 %v7842_v11, %v3287_v33  ;;  %v3288_v39 = vmul.f32 0.020408163, %v3186_v62 }
 0x50f   :  { %v8155_v58 = vsub.f32 %v7847_v21, %v3288_v39  ;;  %v3397_v3 = vmul.f32 %v8152_v12, %v8152_v12 }
 0x511   :  { %v3512_v40 = vsel %vm3090_vm4, %v3397_v3, 0.0  ;;  %v3398_v31 = vmul.f32 %v8155_v58, %v8155_v58 }
 0x512   :  { %3513 = vadd.xlane.f32.xlu1 %v3512_v40  ;;  %v3189_v47 = vpop.xlane.xlu0 %3188 }
 0x513   :  { %v3289_v20 = vmul.f32 0.020408163, %v3189_v47  ;;  %v3515_v49 = vsel %vm3090_vm4, %v3398_v31, 0.0 }
 0x514   :  { %v3192_v54 = vpop.xlane.xlu1 %3191  ;;  %3516 = vadd.xlane.f32.xlu0 %v3515_v49 }
 0x515   :  { %v8164_v11 = vsub.f32 %v7858_v46, %v3289_v20  ;;  %v3290_v21 = vmul.f32 0.020408163, %v3192_v54 }
 0x517   :  { %v8167_v33 = vsub.f32 %v7863_v32, %v3290_v21  ;;  %v3399_v62 = vmul.f32 %v8164_v11, %v8164_v11 }
 0x519   :  { %v3518_v39 = vsel %vm3090_vm4, %v3399_v62, 0.0  ;;  %v3400_v3 = vmul.f32 %v8167_v33, %v8167_v33 }
 0x51a   :  { %3519 = vadd.xlane.f32.xlu1 %v3518_v39  ;;  %v3195_v40 = vpop.xlane.xlu0 %3194 }
 0x51b   :  { %v3291_v31 = vmul.f32 0.020408163, %v3195_v40  ;;  %v3521_v47 = vsel %vm3090_vm4, %v3400_v3, 0.0 }
 0x51c   :  { %v3198_v49 = vpop.xlane.xlu1 %3197  ;;  %3522 = vadd.xlane.f32.xlu0 %v3521_v47 }
 0x51d   :  { %v8176_v46 = vsub.f32 %v7874_v13, %v3291_v31  ;;  %v3292_v32 = vmul.f32 0.020408163, %v3198_v49 }
 0x51f   :  { %v8179_v20 = vsub.f32 %v7877_v23, %v3292_v32  ;;  %v3401_v54 = vmul.f32 %v8176_v46, %v8176_v46 }
 0x521   :  { %8989 = vst [vmem:[#allocation113_spill] sm:$0xff] %v8179_v20  ;;  %v3524_v21 = vsel %vm3090_vm4, %v3401_v54, 0.0  ;;  %v3402_v62 = vmul.f32 %v8179_v20, %v8179_v20 }
 0x522   :  { %3525 = vadd.xlane.f32.xlu1 %v3524_v21  ;;  %v3201_v39 = vpop.xlane.xlu0 %3200 }
 0x523   :  { %v3293_v3 = vmul.f32 0.020408163, %v3201_v39  ;;  %v3527_v40 = vsel %vm3090_vm4, %v3402_v62, 0.0 }
 0x524   :  { %v3204_v47 = vpop.xlane.xlu1 %3203  ;;  %3528 = vadd.xlane.f32.xlu0 %v3527_v40 }
 0x525   :  { %v8188_v13 = vsub.f32 %v7888_v59, %v3293_v3  ;;  %v3294_v23 = vmul.f32 0.020408163, %v3204_v47 }
 0x527   :  { %8990 = vst [vmem:[#allocation114_spill] sm:$0xff] %v8188_v13  ;;  %v8191_v31 = vsub.f32 %v7891_v30, %v3294_v23  ;;  %v3403_v49 = vmul.f32 %v8188_v13, %v8188_v13 }
 0x528   :  { %v3424_v32 = vpop.xlane.xlu1 %3423 }
 0x529   :  { %8991 = vst [vmem:[#allocation115_spill] sm:$0xff] %v8191_v31  ;;  %v3587_v54 = vmul.f32 0.020408163, %v3424_v32  ;;  %v3427_v20 = vpop.xlane.xlu0 %3426  ;;  %v3530_v21 = vsel %vm3090_vm4, %v3403_v49, 0.0  ;;  %v3404_v62 = vmul.f32 %v8191_v31, %v8191_v31 }
 0x52a   :  { %v3588_v39 = vmul.f32 0.020408163, %v3427_v20  ;;  %3531 = vadd.xlane.f32.xlu1 %v3530_v21 }
 0x52b   :  { %v3642_v40 = vadd.f32 1e-05, %v3587_v54  ;;  %v3533_v59 = vsel %vm3090_vm4, %v3404_v62, 0.0 }
 0x52c   :  { %v3643_v3 = vadd.f32 1e-05, %v3588_v39  ;;  %v3210_v47 = vpop.xlane.xlu1 %3209  ;;  %3534 = vadd.xlane.f32.xlu0 %v3533_v59 }
 0x52d   :  { %5755 = vrsqrt.f32 %v3642_v40  ;;  %v3296_v30 = vmul.f32 0.020408163, %v3210_v47  ;;  %v3207_v23 = vpop.xlane.xlu0 %3206 }
 0x52e   :  { %5757 = vrsqrt.f32 %v3643_v3  ;;  %v3295_v13 = vmul.f32 0.020408163, %v3207_v23 }
 0x52f   :  { %v8200_v32 = vsub.f32 %v7913_v42, %v3296_v30 }
 0x530   :  { %v8203_v49 = vsub.f32 %v7909_v7, %v3295_v13  ;;  %v3430_v31 = vpop.xlane.xlu1 %3429 }
 0x531   :  { %v3589_v20 = vmul.f32 0.020408163, %v3430_v31  ;;  %v3433_v21 = vpop.xlane.xlu0 %3432  ;;  %v3406_v54 = vmul.f32 %v8200_v32, %v8200_v32 }
 0x532   :  { %v3590_v62 = vmul.f32 0.020408163, %v3433_v21  ;;  %v3405_v39 = vmul.f32 %v8203_v49, %v8203_v49 }
 0x533   :  { %v3644_v40 = vadd.f32 1e-05, %v3589_v20  ;;  %v3539_v59 = vsel %vm3090_vm4, %v3406_v54, 0.0 }
 0x534   :  { %v3645_v3 = vadd.f32 1e-05, %v3590_v62  ;;  %3540 = vadd.xlane.f32.xlu0 %v3539_v59  ;;  %v3216_v42 = vpop.xlane.xlu1 %3215  ;;  %v3536_v47 = vsel %vm3090_vm4, %v3405_v39, 0.0 }
 0x535   :  { %5759 = vrsqrt.f32 %v3644_v40  ;;  %v3298_v7 = vmul.f32 0.020408163, %v3216_v42  ;;  %3537 = vadd.xlane.f32.xlu1 %v3536_v47  ;;  %v3213_v13 = vpop.xlane.xlu0 %3212 }
 0x536   :  { %5761 = vrsqrt.f32 %v3645_v3  ;;  %v3297_v31 = vmul.f32 0.020408163, %v3213_v13 }
 0x537   :  { %v5756_v30 = vpop.eup %5755  ;;  %v8212_v23 = vsub.f32 %v7935_v61, %v3298_v7 }
 0x538   :  { %v5758_v21 = vpop.eup %5757  ;;  %v3752_v20 = vmul.f32 %v5756_v30, %v7896_v35  ;;  %v8216_v54 = vsub.f32 %v7931_v14, %v3297_v31  ;;  %v3436_v62 = vpop.xlane.xlu1 %3435  ;;  %v4577_v35 = vld [vmem:[%s8864_s2] sm:$0xff]  ;;  %v4578_v31 = vld [vmem:[%s8864_s2 + $0x8] sm:$0xff] }
 0x539   :  { %v3753_v59 = vmul.f32 %v5758_v21, %v7901_v51  ;;  %v3591_v39 = vmul.f32 0.020408163, %v3436_v62  ;;  %v3439_v40 = vpop.xlane.xlu0 %3438  ;;  %v3408_v42 = vmul.f32 %v8212_v23, %v8212_v23 }
 0x53a   :  { %v4137_v3 = vmul.f32 %v7040_v17, %v3752_v20  ;;  %v3592_v47 = vmul.f32 0.020408163, %v3439_v40  ;;  %v3407_v61 = vmul.f32 %v8216_v54, %v8216_v54 }
 0x53b   :  { %v4138_v14 = vmul.f32 %v7035_v15, %v3753_v59  ;;  %v3646_v7 = vadd.f32 1e-05, %v3591_v39  ;;  %v3545_v51 = vsel %vm3090_vm4, %v3408_v42, 0.0 }
 0x53c   :  { %v4522_v13 = vadd.f32 %v7481_v27, %v4137_v3  ;;  %v3647_v17 = vadd.f32 1e-05, %v3592_v47  ;;  %3546 = vadd.xlane.f32.xlu0 %v3545_v51  ;;  %v3222_v30 = vpop.xlane.xlu1 %3221  ;;  %v3542_v21 = vsel %vm3090_vm4, %v3407_v61, 0.0 }
 0x53d   :  { %v4523_v20 = vadd.f32 %v7491_v45, %v4138_v14  ;;  %5763 = vrsqrt.f32 %v3646_v7  ;;  %v3300_v62 = vmul.f32 0.020408163, %v3222_v30  ;;  %3543 = vadd.xlane.f32.xlu1 %v3542_v21  ;;  %v3219_v15 = vpop.xlane.xlu0 %3218  ;;  %v8992_v30 = vld [vmem:[#allocation53_spill] sm:$0xff] }
 0x53e   :  { %v4632_v59 = vadd.f32 %v4577_v35, %v4522_v13  ;;  %5765 = vrsqrt.f32 %v3647_v17  ;;  %v3299_v39 = vmul.f32 0.020408163, %v3219_v15 }
 0x53f   :  { %v5760_v40 = vpop.eup %5759  ;;  %v4633_v27 = vadd.f32 %v4578_v31, %v4523_v20  ;;  %v8236_v42 = vsub.f32 %v7957_v60, %v3300_v62  ;;  %v4580_v20 = vld [vmem:[%s8864_s2 + $0x18] sm:$0xff] }
 0x540   :  { %v5762_v3 = vpop.eup %5761  ;;  %4687 = vst.msk [vmem:[%s8865_s10] sm:$0xff] %vm3090_vm4, %v4632_v59  ;;  %v3754_v45 = vmul.f32 %v5760_v40, %v7916_v36  ;;  %v8244_v47 = vsub.f32 %v7953_v38, %v3299_v39  ;;  %v3442_v61 = vpop.xlane.xlu1 %3441  ;;  %v4579_v38 = vld [vmem:[%s8864_s2 + $0x10] sm:$0xff]  ;;  %v8993_v59 = vld [vmem:[#allocation54_spill] sm:$0xff] }
 0x541   :  { %4688 = vst.msk [vmem:[%s8865_s10 + $0x8] sm:$0xff] %vm3090_vm4, %v4633_v27  ;;  %v3755_v60 = vmul.f32 %v5762_v3, %v7921_v2  ;;  %v3593_v35 = vmul.f32 0.020408163, %v3442_v61  ;;  %v3225_v14 = vpop.xlane.xlu0 %3224  ;;  %v3410_v7 = vmul.f32 %v8236_v42, %v8236_v42 }
 0x542   :  { %v4139_v51 = vmul.f32 %v7055_v22, %v3754_v45  ;;  %v3301_v13 = vmul.f32 0.020408163, %v3225_v14  ;;  %v3409_v36 = vmul.f32 %v8244_v47, %v8244_v47 }
 0x543   :  { %v4140_v31 = vmul.f32 %v7060_v24, %v3755_v60  ;;  %v3648_v17 = vadd.f32 1e-05, %v3593_v35  ;;  %v3551_v2 = vsel %vm3090_vm4, %v3410_v7, 0.0 }
 0x544   :  { %v4524_v21 = vadd.f32 %v8992_v30, %v4139_v51  ;;  %v8266_v22 = vsub.f32 %v7971_v57, %v3301_v13  ;;  %3552 = vadd.xlane.f32.xlu0 %v3551_v2  ;;  %v3228_v62 = vpop.xlane.xlu1 %3227  ;;  %v3548_v15 = vsel %vm3090_vm4, %v3409_v36, 0.0  ;;  %v4581_v30 = vld [vmem:[%s8864_s2 + $0x20] sm:$0xff] }
 0x545   :  { %v4525_v39 = vadd.f32 %v8993_v59, %v4140_v31  ;;  %5767 = vrsqrt.f32 %v3648_v17  ;;  %v3302_v24 = vmul.f32 0.020408163, %v3228_v62  ;;  %3549 = vadd.xlane.f32.xlu1 %v3548_v15  ;;  %v3445_v40 = vpop.xlane.xlu0 %3444  ;;  %v8994_v17 = vld [vmem:[#allocation2_spill] sm:$0xff] }
 0x546   :  { %v4634_v27 = vadd.f32 %v4579_v38, %v4524_v21  ;;  %v3594_v3 = vmul.f32 0.020408163, %v3445_v40  ;;  %v3411_v45 = vmul.f32 %v8266_v22, %v8266_v22  ;;  %v8995_v21 = vld [vmem:[#allocation3_spill] sm:$0xff] }
 0x547   :  { %v5764_v61 = vpop.eup %5763  ;;  %v4635_v60 = vadd.f32 %v4580_v20, %v4525_v39  ;;  %v8273_v57 = vsub.f32 %v7976_v19, %v3302_v24  ;;  %v4582_v39 = vld [vmem:[%s8864_s2 + $0x28] sm:$0xff] }
 0x548   :  { %v5766_v35 = vpop.eup %5765  ;;  %4689 = vst.msk [vmem:[%s8865_s10 + $0x10] sm:$0xff] %vm3090_vm4, %v4634_v27  ;;  %v3756_v14 = vmul.f32 %v5764_v61, %v7938_v43  ;;  %v3649_v7 = vadd.f32 1e-05, %v3594_v3  ;;  %v3448_v51 = vpop.xlane.xlu1 %3447  ;;  %v3554_v13 = vsel %vm3090_vm4, %v3411_v45, 0.0  ;;  %v8997_v27 = vld [vmem:[#allocation56_spill] sm:$0xff] }
 0x549   :  { %4690 = vst.msk [vmem:[%s8865_s10 + $0x18] sm:$0xff] %vm3090_vm4, %v4635_v60  ;;  %v3757_v19 = vmul.f32 %v5766_v35, %v7943_v18  ;;  %v3595_v36 = vmul.f32 0.020408163, %v3448_v51  ;;  %3555 = vadd.xlane.f32.xlu1 %v3554_v13  ;;  %v3231_v38 = vpop.xlane.xlu0 %3230  ;;  %v3412_v31 = vmul.f32 %v8273_v57, %v8273_v57  ;;  %v8996_v18 = vld [vmem:[#allocation55_spill] sm:$0xff] }
 0x54a   :  { %v4141_v2 = vmul.f32 %v8994_v17, %v3756_v14  ;;  %5769 = vrsqrt.f32 %v3649_v7  ;;  %v3303_v43 = vmul.f32 0.020408163, %v3231_v38 }
 0x54b   :  { %v4142_v20 = vmul.f32 %v8995_v21, %v3757_v19  ;;  %v3650_v62 = vadd.f32 1e-05, %v3595_v36  ;;  %v3557_v15 = vsel %vm3090_vm4, %v3412_v31, 0.0 }
 0x54c   :  { %v4526_v59 = vadd.f32 %v8996_v18, %v4141_v2  ;;  %v8299_v24 = vsub.f32 %v7991_v28, %v3303_v43  ;;  %3558 = vadd.xlane.f32.xlu0 %v3557_v15  ;;  %v3234_v40 = vpop.xlane.xlu1 %3233  ;;  %v8998_v2 = vld [vmem:[#allocation4_spill] sm:$0xff]  ;;  %v8999_v15 = vld [vmem:[#allocation57_spill] sm:$0xff] }
 0x54d   :  { %v4527_v3 = vadd.f32 %v8997_v27, %v4142_v20  ;;  %5771 = vrsqrt.f32 %v3650_v62  ;;  %v3304_v45 = vmul.f32 0.020408163, %v3234_v40  ;;  %v3451_v61 = vpop.xlane.xlu0 %3450  ;;  %v9000_v40 = vld [vmem:[#allocation104_spill] sm:$0xff] }
 0x54e   :  { %v4636_v60 = vadd.f32 %v4581_v30, %v4526_v59  ;;  %v3596_v35 = vmul.f32 0.020408163, %v3451_v61  ;;  %v3413_v14 = vmul.f32 %v8299_v24, %v8299_v24 }
 0x54f   :  { %v5768_v7 = vpop.eup %5767  ;;  %v4637_v51 = vadd.f32 %v4582_v39, %v4527_v3  ;;  %v8305_v13 = vsub.f32 %v7996_v53, %v3304_v45 }
 0x550   :  { %4691 = vst.msk [vmem:[%s8865_s10 + $0x20] sm:$0xff] %vm3090_vm4, %v4636_v60  ;;  %v3758_v28 = vmul.f32 %v5768_v7, %v7960_v44  ;;  %v3651_v19 = vadd.f32 1e-05, %v3596_v35  ;;  %v3454_v36 = vpop.xlane.xlu1 %3453  ;;  %v3560_v38 = vsel %vm3090_vm4, %v3413_v14, 0.0  ;;  %v4583_v44 = vld [vmem:[%s8864_s2 + $0x30] sm:$0xff]  ;;  %v9001_v7 = vld [vmem:[#allocation5_spill] sm:$0xff] }
 0x551   :  { %4692 = vst.msk [vmem:[%s8865_s10 + $0x28] sm:$0xff] %vm3090_vm4, %v4637_v51  ;;  %v3597_v31 = vmul.f32 0.020408163, %v3454_v36  ;;  %3561 = vadd.xlane.f32.xlu1 %v3560_v38  ;;  %v3237_v53 = vpop.xlane.xlu0 %3236  ;;  %v3414_v17 = vmul.f32 %v8305_v13, %v8305_v13 }
 0x552   :  { %v4143_v43 = vmul.f32 %v8998_v2, %v3758_v28  ;;  %5773 = vrsqrt.f32 %v3651_v19  ;;  %v3305_v30 = vmul.f32 0.020408163, %v3237_v53  ;;  %v9002_v19 = vld [vmem:[#allocation105_spill] sm:$0xff] }
 0x553   :  { %v3652_v21 = vadd.f32 1e-05, %v3597_v31  ;;  %v3563_v20 = vsel %vm3090_vm4, %v3414_v17, 0.0  ;;  %v9003_v17 = vld [vmem:[#allocation58_spill] sm:$0xff] }
 0x554   :  { %v5770_v62 = vpop.eup %5769  ;;  %v4528_v18 = vadd.f32 %v8999_v15, %v4143_v43  ;;  %v8326_v59 = vsub.f32 %v8011_v1, %v3305_v30  ;;  %3564 = vadd.xlane.f32.xlu0 %v3563_v20  ;;  %v3240_v39 = vpop.xlane.xlu1 %3239  ;;  %v4584_v1 = vld [vmem:[%s8864_s2 + $0x38] sm:$0xff]  ;;  %v4585_v15 = vld [vmem:[%s8864_s2 + $0x40] sm:$0xff] }
 0x555   :  { %v3759_v27 = vmul.f32 %v5770_v62, %v9000_v40  ;;  %5775 = vrsqrt.f32 %v3652_v21  ;;  %v3306_v3 = vmul.f32 0.020408163, %v3240_v39  ;;  %v3457_v45 = vpop.xlane.xlu0 %3456 }
 0x556   :  { %v4638_v61 = vadd.f32 %v4583_v44, %v4528_v18  ;;  %v3598_v60 = vmul.f32 0.020408163, %v3457_v45  ;;  %v3415_v35 = vmul.f32 %v8326_v59, %v8326_v59  ;;  %v9004_v44 = vld [vmem:[#allocation6_spill] sm:$0xff] }
 0x557   :  { %v5772_v14 = vpop.eup %5771  ;;  %v4144_v51 = vmul.f32 %v9001_v7, %v3759_v27  ;;  %v8333_v28 = vsub.f32 %v8016_v4, %v3306_v3  ;;  %v9005_v27 = vld [vmem:[#allocation59_spill] sm:$0xff] }
 0x558   :  { %4693 = vst.msk [vmem:[%s8865_s10 + $0x30] sm:$0xff] %vm3090_vm4, %v4638_v61  ;;  %v3760_v36 = vmul.f32 %v5772_v14, %v9002_v19  ;;  %v3653_v38 = vadd.f32 1e-05, %v3598_v60  ;;  %v3460_v31 = vpop.xlane.xlu1 %3459  ;;  %v3566_v53 = vsel %vm3090_vm4, %v3415_v35, 0.0  ;;  %v9006_v60 = vld [vmem:[#allocation106_spill] sm:$0xff] }
 0x559   :  { %v4529_v2 = vadd.f32 %v9003_v17, %v4144_v51  ;;  %v3599_v43 = vmul.f32 0.020408163, %v3460_v31  ;;  %3567 = vadd.xlane.f32.xlu1 %v3566_v53  ;;  %v3243_v4 = vpop.xlane.xlu0 %3242  ;;  %v3416_v30 = vmul.f32 %v8333_v28, %v8333_v28  ;;  %v4586_v53 = vld [vmem:[%s8864_s2 + $0x48] sm:$0xff] }
 0x55a   :  { %v4145_v21 = vmul.f32 %v9004_v44, %v3760_v36  ;;  %5777 = vrsqrt.f32 %v3653_v38  ;;  %v3307_v20 = vmul.f32 0.020408163, %v3243_v4  ;;  %v9008_v17 = vld [vmem:[#allocation107_spill] sm:$0xff]  ;;  %v9009_v44 = vld [vmem:[#allocation60_spill] sm:$0xff] }
 0x55b   :  { %v4639_v62 = vadd.f32 %v4584_v1, %v4529_v2  ;;  %v3654_v18 = vadd.f32 1e-05, %v3599_v43  ;;  %v3569_v39 = vsel %vm3090_vm4, %v3416_v30, 0.0 }
 0x55c   :  { %v5774_v40 = vpop.eup %5773  ;;  %v4530_v3 = vadd.f32 %v9005_v27, %v4145_v21  ;;  %v8354_v45 = vsub.f32 %v8031_v16, %v3307_v20  ;;  %3570 = vadd.xlane.f32.xlu0 %v3569_v39  ;;  %v3246_v61 = vpop.xlane.xlu1 %3245  ;;  %v9007_v16 = vld [vmem:[#allocation7_spill] sm:$0xff]  ;;  %v4587_v27 = vld [vmem:[%s8864_s2 + $0x50] sm:$0xff] }
 0x55d   :  { %4694 = vst.msk [vmem:[%s8865_s10 + $0x38] sm:$0xff] %vm3090_vm4, %v4639_v62  ;;  %v3761_v35 = vmul.f32 %v5774_v40, %v9006_v60  ;;  %5779 = vrsqrt.f32 %v3654_v18  ;;  %v3308_v14 = vmul.f32 0.020408163, %v3246_v61  ;;  %v3463_v7 = vpop.xlane.xlu0 %3462 }
 0x55e   :  { %v4640_v51 = vadd.f32 %v4585_v15, %v4530_v3  ;;  %v3600_v1 = vmul.f32 0.020408163, %v3463_v7  ;;  %v3417_v19 = vmul.f32 %v8354_v45, %v8354_v45  ;;  %v9010_v15 = vld [vmem:[#allocation8_spill] sm:$0xff] }
 0x55f   :  { %v5776_v36 = vpop.eup %5775  ;;  %v4146_v38 = vmul.f32 %v9007_v16, %v3761_v35  ;;  %v8365_v31 = vsub.f32 %v8036_v25, %v3308_v14  ;;  %v9011_v35 = vld [vmem:[#allocation61_spill] sm:$0xff] }
 0x560   :  { %4695 = vst.msk [vmem:[%s8865_s10 + $0x40] sm:$0xff] %vm3090_vm4, %v4640_v51  ;;  %v3762_v2 = vmul.f32 %v5776_v36, %v9008_v17  ;;  %v3655_v43 = vadd.f32 1e-05, %v3600_v1  ;;  %v3466_v4 = vpop.xlane.xlu1 %3465  ;;  %v3572_v30 = vsel %vm3090_vm4, %v3417_v19, 0.0  ;;  %v9012_v1 = vld [vmem:[#allocation108_spill] sm:$0xff] }
 0x561   :  { %v4531_v21 = vadd.f32 %v9009_v44, %v4146_v38  ;;  %v3601_v20 = vmul.f32 0.020408163, %v3466_v4  ;;  %3573 = vadd.xlane.f32.xlu1 %v3572_v30  ;;  %v3249_v25 = vpop.xlane.xlu0 %3248  ;;  %v3418_v62 = vmul.f32 %v8365_v31, %v8365_v31  ;;  %v4588_v30 = vld [vmem:[%s8864_s2 + $0x58] sm:$0xff] }
 0x562   :  { %v4147_v18 = vmul.f32 %v9010_v15, %v3762_v2  ;;  %5781 = vrsqrt.f32 %v3655_v43  ;;  %v3309_v39 = vmul.f32 0.020408163, %v3249_v25  ;;  %v9014_v44 = vld [vmem:[#allocation109_spill] sm:$0xff]  ;;  %v9015_v15 = vld [vmem:[#allocation62_spill] sm:$0xff] }
 0x563   :  { %v4641_v40 = vadd.f32 %v4586_v53, %v4531_v21  ;;  %v3656_v3 = vadd.f32 1e-05, %v3601_v20  ;;  %v3575_v61 = vsel %vm3090_vm4, %v3418_v62, 0.0 }
 0x564   :  { %v5778_v60 = vpop.eup %5777  ;;  %v4532_v14 = vadd.f32 %v9011_v35, %v4147_v18  ;;  %v8386_v7 = vsub.f32 %v8051_v8, %v3309_v39  ;;  %3576 = vadd.xlane.f32.xlu0 %v3575_v61  ;;  %v3252_v51 = vpop.xlane.xlu1 %3251  ;;  %v9013_v8 = vld [vmem:[#allocation9_spill] sm:$0xff]  ;;  %v4589_v35 = vld [vmem:[%s8864_s2 + $0x60] sm:$0xff] }
 0x565   :  { %4696 = vst.msk [vmem:[%s8865_s10 + $0x48] sm:$0xff] %vm3090_vm4, %v4641_v40  ;;  %v3763_v19 = vmul.f32 %v5778_v60, %v9012_v1  ;;  %5783 = vrsqrt.f32 %v3656_v3  ;;  %v3310_v36 = vmul.f32 0.020408163, %v3252_v51  ;;  %v3469_v16 = vpop.xlane.xlu0 %3468 }
 0x566   :  { %v4642_v38 = vadd.f32 %v4587_v27, %v4532_v14  ;;  %v3602_v53 = vmul.f32 0.020408163, %v3469_v16  ;;  %v3419_v17 = vmul.f32 %v8386_v7, %v8386_v7  ;;  %v9016_v27 = vld [vmem:[#allocation10_spill] sm:$0xff] }
 0x567   :  { %v5780_v2 = vpop.eup %5779  ;;  %v4148_v43 = vmul.f32 %v9013_v8, %v3763_v19  ;;  %v8397_v4 = vsub.f32 %v8056_v34, %v3310_v36  ;;  %v9017_v19 = vld [vmem:[#allocation63_spill] sm:$0xff] }
 0x568   :  { %4697 = vst.msk [vmem:[%s8865_s10 + $0x50] sm:$0xff] %vm3090_vm4, %v4642_v38  ;;  %v3764_v21 = vmul.f32 %v5780_v2, %v9014_v44  ;;  %v3657_v20 = vadd.f32 1e-05, %v3602_v53  ;;  %v3472_v25 = vpop.xlane.xlu1 %3471  ;;  %v3578_v62 = vsel %vm3090_vm4, %v3419_v17, 0.0  ;;  %v9018_v38 = vld [vmem:[#allocation110_spill] sm:$0xff]  ;;  %v9019_v44 = vld [vmem:[#allocation11_spill] sm:$0xff] }
 0x569   :  { %v4533_v18 = vadd.f32 %v9015_v15, %v4148_v43  ;;  %v3603_v39 = vmul.f32 0.020408163, %v3472_v25  ;;  %3579 = vadd.xlane.f32.xlu1 %v3578_v62  ;;  %v3255_v34 = vpop.xlane.xlu0 %3254  ;;  %v3420_v40 = vmul.f32 %v8397_v4, %v8397_v4  ;;  %v9020_v25 = vld [vmem:[#allocation111_spill] sm:$0xff] }
 0x56a   :  { %v4149_v3 = vmul.f32 %v9016_v27, %v3764_v21  ;;  %5785 = vrsqrt.f32 %v3657_v20  ;;  %v3311_v61 = vmul.f32 0.020408163, %v3255_v34  ;;  %v4590_v20 = vld [vmem:[%s8864_s2 + $0x68] sm:$0xff]  ;;  %v9021_v34 = vld [vmem:[#allocation64_spill] sm:$0xff] }
 0x56b   :  { %v4643_v60 = vadd.f32 %v4588_v30, %v4533_v18  ;;  %v3658_v14 = vadd.f32 1e-05, %v3603_v39  ;;  %v3581_v51 = vsel %vm3090_vm4, %v3420_v40, 0.0 }
 0x56c   :  { %v5782_v1 = vpop.eup %5781  ;;  %v4534_v36 = vadd.f32 %v9017_v19, %v4149_v3  ;;  %v8418_v16 = vsub.f32 %v8071_v0, %v3311_v61  ;;  %3582 = vadd.xlane.f32.xlu0 %v3581_v51  ;;  %v9022_v3 = vld [vmem:[#allocation12_spill] sm:$0xff]  ;;  %v9023_v19 = vld [vmem:[#allocation65_spill] sm:$0xff] }
 0x56d   :  { %4698 = vst.msk [vmem:[%s8865_s10 + $0x58] sm:$0xff] %vm3090_vm4, %v4643_v60  ;;  %v3765_v53 = vmul.f32 %v5782_v1, %v9018_v38  ;;  %5787 = vrsqrt.f32 %v3658_v14  ;;  %v3475_v17 = vpop.xlane.xlu0 %3474  ;;  %v4591_v51 = vld [vmem:[%s8864_s2 + $0x70] sm:$0xff] }
 0x56e   :  { %v4644_v2 = vadd.f32 %v4589_v35, %v4534_v36  ;;  %v3604_v8 = vmul.f32 0.020408163, %v3475_v17  ;;  %v3421_v43 = vmul.f32 %v8418_v16, %v8418_v16 }
 0x56f   :  { %v5784_v30 = vpop.eup %5783  ;;  %v4150_v21 = vmul.f32 %v9019_v44, %v3765_v53  ;;  %v3478_v0 = vpop.xlane.xlu1 %3477  ;;  %v9024_v53 = vld [vmem:[#allocation112_spill] sm:$0xff] }
 0x570   :  { %4699 = vst.msk [vmem:[%s8865_s10 + $0x60] sm:$0xff] %vm3090_vm4, %v4644_v2  ;;  %v3766_v62 = vmul.f32 %v5784_v30, %v9020_v25  ;;  %v3659_v15 = vadd.f32 1e-05, %v3604_v8  ;;  %v3605_v18 = vmul.f32 0.020408163, %v3478_v0  ;;  %v3584_v39 = vsel %vm3090_vm4, %v3421_v43, 0.0 }
 0x571   :  { %v4535_v40 = vadd.f32 %v9021_v34, %v4150_v21  ;;  %3585 = vadd.xlane.f32.xlu1 %v3584_v39  ;;  %v3481_v27 = vpop.xlane.xlu0 %3480  ;;  %v9025_v43 = vld [vmem:[#allocation13_spill] sm:$0xff]  ;;  %v9026_v25 = vld [vmem:[#allocation66_spill] sm:$0xff] }
 0x572   :  { %v4151_v61 = vmul.f32 %v9022_v3, %v3766_v62  ;;  %5789 = vrsqrt.f32 %v3659_v15  ;;  %v3660_v60 = vadd.f32 1e-05, %v3605_v18  ;;  %v3606_v35 = vmul.f32 0.020408163, %v3481_v27  ;;  %v4592_v21 = vld [vmem:[%s8864_s2 + $0x78] sm:$0xff]  ;;  %v9027_v18 = vld [vmem:[#allocation14_spill] sm:$0xff] }
 0x573   :  { %v4645_v14 = vadd.f32 %v4590_v20, %v4535_v40  ;;  %v4593_v3 = vld [vmem:[%s8864_s2 + $0x80] sm:$0xff] }
 0x574   :  { %v5786_v1 = vpop.eup %5785  ;;  %v4536_v36 = vadd.f32 %v9023_v19, %v4151_v61  ;;  %5791 = vrsqrt.f32 %v3660_v60  ;;  %v3661_v38 = vadd.f32 1e-05, %v3606_v35  ;;  %v9028_v60 = vld [vmem:[#allocation67_spill] sm:$0xff] }
 0x575   :  { %4700 = vst.msk [vmem:[%s8865_s10 + $0x68] sm:$0xff] %vm3090_vm4, %v4645_v14  ;;  %v3767_v17 = vmul.f32 %v5786_v1, %v9024_v53  ;;  %v9029_v19 = vld [vmem:[#allocation15_spill] sm:$0xff] }
 0x576   :  { %v4646_v2 = vadd.f32 %v4591_v51, %v4536_v36  ;;  %5793 = vrsqrt.f32 %v3661_v38 }
 0x577   :  { %v5788_v8 = vpop.eup %5787  ;;  %v4152_v30 = vmul.f32 %v9025_v43, %v3767_v17  ;;  %v3484_v44 = vpop.xlane.xlu1 %3483  ;;  %v4246_v17 = vld [vmem:[%s8863_s9 + $0x1b0] sm:$0xff] }
 0x578   :  { %4701 = vst.msk [vmem:[%s8865_s10 + $0x70] sm:$0xff] %vm3090_vm4, %v4646_v2  ;;  %v3768_v0 = vmul.f32 %v5788_v8, %v8061_v37  ;;  %v3607_v20 = vmul.f32 0.020408163, %v3484_v44  ;;  %v4245_v2 = vld [vmem:[%s8863_s9 + $0x1a8] sm:$0xff]  ;;  %v9030_v43 = vld [vmem:[#allocation68_spill] sm:$0xff] }
 0x579   :  { %v4537_v62 = vadd.f32 %v9026_v25, %v4152_v30  ;;  %v3487_v15 = vpop.xlane.xlu0 %3486  ;;  %v9031_v44 = vld [vmem:[#allocation16_spill] sm:$0xff] }
 0x57a   :  { %v4153_v39 = vmul.f32 %v9027_v18, %v3768_v0  ;;  %v3662_v34 = vadd.f32 1e-05, %v3607_v20  ;;  %v3608_v40 = vmul.f32 0.020408163, %v3487_v15  ;;  %v4595_v25 = vld [vmem:[%s8864_s2 + $0x90] sm:$0xff] }
 0x57b   :  { %v4647_v27 = vadd.f32 %v4592_v21, %v4537_v62 }
 0x57c   :  { %v5790_v61 = vpop.eup %5789  ;;  %v4538_v35 = vadd.f32 %v9028_v60, %v4153_v39  ;;  %5795 = vrsqrt.f32 %v3662_v34  ;;  %v3663_v14 = vadd.f32 1e-05, %v3608_v40  ;;  %v9032_v39 = vld [vmem:[#allocation69_spill] sm:$0xff]  ;;  %v9034_v60 = vld [vmem:[#allocation70_spill] sm:$0xff] }
 0x57d   :  { %4702 = vst.msk [vmem:[%s8865_s10 + $0x78] sm:$0xff] %vm3090_vm4, %v4647_v27  ;;  %v3769_v37 = vmul.f32 %v5790_v61, %v8066_v9  ;;  %v4594_v9 = vld [vmem:[%s8864_s2 + $0x88] sm:$0xff]  ;;  %v9033_v40 = vld [vmem:[#allocation17_spill] sm:$0xff] }
 0x57e   :  { %v5792_v51 = vpop.eup %5791  ;;  %v4648_v1 = vadd.f32 %v4593_v3, %v4538_v35  ;;  %5797 = vrsqrt.f32 %v3663_v14  ;;  %v4596_v3 = vld [vmem:[%s8864_s2 + $0x98] sm:$0xff] }
 0x57f   :  { %v4154_v36 = vmul.f32 %v9029_v19, %v3769_v37  ;;  %v3770_v38 = vmul.f32 %v5792_v51, %v8079_v52  ;;  %v3490_v53 = vpop.xlane.xlu1 %3489 }
 0x580   :  { %v5794_v8 = vpop.eup %5793  ;;  %4703 = vst.msk [vmem:[%s8865_s10 + $0x80] sm:$0xff] %vm3090_vm4, %v4648_v1  ;;  %v3609_v52 = vmul.f32 0.020408163, %v3490_v53 }
 0x581   :  { %v4539_v30 = vadd.f32 %v9030_v43, %v4154_v36  ;;  %v4155_v21 = vmul.f32 %v9031_v44, %v3770_v38  ;;  %v3771_v0 = vmul.f32 %v5794_v8, %v8082_v29  ;;  %v3493_v20 = vpop.xlane.xlu0 %3492  ;;  %v9035_v38 = vld [vmem:[#allocation18_spill] sm:$0xff] }
 0x582   :  { %v3664_v62 = vadd.f32 1e-05, %v3609_v52  ;;  %v3610_v15 = vmul.f32 0.020408163, %v3493_v20  ;;  %4519 = vperm.xlu0 %5297, %v4246_v17   ;;  %4514 = vperm.xlu1 %5298, %v4245_v2   ;;  %v4597_v8 = vld [vmem:[%s8864_s2 + $0xa0] sm:$0xff] }
 0x583   :  { %v4649_v18 = vadd.f32 %v4594_v9, %v4539_v30  ;;  %v4540_v34 = vadd.f32 %v9032_v39, %v4155_v21  ;;  %v4156_v27 = vmul.f32 %v9033_v40, %v3771_v0  ;;  %v9037_v30 = vld [vmem:[#allocation19_spill] sm:$0xff] }
 0x584   :  { %5799 = vrsqrt.f32 %v3664_v62  ;;  %v3665_v29 = vadd.f32 1e-05, %v3610_v15  ;;  %v4598_v21 = vld [vmem:[%s8864_s2 + $0xa8] sm:$0xff] }
 0x585   :  { %4704 = vst.msk [vmem:[%s8865_s10 + $0x88] sm:$0xff] %vm3090_vm4, %v4649_v18  ;;  %v4650_v61 = vadd.f32 %v4595_v25, %v4540_v34  ;;  %v4541_v35 = vadd.f32 %v9034_v60, %v4156_v27  ;;  %v9038_v25 = vld [vmem:[#allocation72_spill] sm:$0xff] }
 0x586   :  { %v5796_v14 = vpop.eup %5795  ;;  %5801 = vrsqrt.f32 %v3665_v29  ;;  %v9039_v27 = vld [vmem:[#allocation20_spill] sm:$0xff] }
 0x587   :  { %4705 = vst.msk [vmem:[%s8865_s10 + $0x90] sm:$0xff] %vm3090_vm4, %v4650_v61  ;;  %v4651_v37 = vadd.f32 %v4596_v3, %v4541_v35  ;;  %v3772_v51 = vmul.f32 %v5796_v14, %v8092_v56  ;;  %v3496_v1 = vpop.xlane.xlu1 %3495  ;;  %v9036_v56 = vld [vmem:[#allocation71_spill] sm:$0xff]  ;;  %v4599_v60 = vld [vmem:[%s8864_s2 + $0xb0] sm:$0xff] }
 0x588   :  { %v5798_v19 = vpop.eup %5797  ;;  %v3611_v36 = vmul.f32 0.020408163, %v3496_v1 }
 0x589   :  { %4706 = vst.msk [vmem:[%s8865_s10 + $0x98] sm:$0xff] %vm3090_vm4, %v4651_v37  ;;  %v4157_v53 = vmul.f32 %v9035_v38, %v3772_v51  ;;  %v3773_v17 = vmul.f32 %v5798_v19, %v8095_v50  ;;  %v3499_v2 = vpop.xlane.xlu0 %3498  ;;  %v9041_v51 = vld [vmem:[#allocation21_spill] sm:$0xff] }
 0x58a   :  { %v3666_v9 = vadd.f32 1e-05, %v3611_v36  ;;  %v3612_v52 = vmul.f32 0.020408163, %v3499_v2  ;;  %v4600_v19 = vld [vmem:[%s8864_s2 + $0xb8] sm:$0xff] }
 0x58b   :  { %v4542_v43 = vadd.f32 %v9036_v56, %v4157_v53  ;;  %v4158_v44 = vmul.f32 %v9037_v30, %v3773_v17  ;;  %v9042_v53 = vld [vmem:[#allocation74_spill] sm:$0xff] }
 0x58c   :  { %5803 = vrsqrt.f32 %v3666_v9  ;;  %v3667_v0 = vadd.f32 1e-05, %v3612_v52 }
 0x58d   :  { %v4652_v20 = vadd.f32 %v4597_v8, %v4542_v43  ;;  %v4543_v50 = vadd.f32 %v9038_v25, %v4158_v44  ;;  %v9043_v43 = vld [vmem:[#allocation22_spill] sm:$0xff] }
 0x58e   :  { %v5800_v62 = vpop.eup %5799  ;;  %5805 = vrsqrt.f32 %v3667_v0  ;;  %v4601_v0 = vld [vmem:[%s8864_s2 + $0xc0] sm:$0xff] }
 0x58f   :  { %4707 = vst.msk [vmem:[%s8865_s10 + $0xa0] sm:$0xff] %vm3090_vm4, %v4652_v20  ;;  %v4653_v15 = vadd.f32 %v4598_v21, %v4543_v50  ;;  %v3774_v18 = vmul.f32 %v5800_v62, %v8104_v48  ;;  %v3502_v39 = vpop.xlane.xlu1 %3501  ;;  %v9040_v48 = vld [vmem:[#allocation73_spill] sm:$0xff]  ;;  %v9045_v62 = vld [vmem:[#allocation23_spill] sm:$0xff] }
 0x590   :  { %v5802_v34 = vpop.eup %5801  ;;  %v3613_v40 = vmul.f32 0.020408163, %v3502_v39 }
 0x591   :  { %4708 = vst.msk [vmem:[%s8865_s10 + $0xa8] sm:$0xff] %vm3090_vm4, %v4653_v15  ;;  %v4159_v3 = vmul.f32 %v9039_v27, %v3774_v18  ;;  %v3775_v29 = vmul.f32 %v5802_v34, %v8107_v63  ;;  %v3505_v61 = vpop.xlane.xlu0 %3504  ;;  %v4602_v18 = vld [vmem:[%s8864_s2 + $0xc8] sm:$0xff] }
 0x592   :  { %v3668_v35 = vadd.f32 1e-05, %v3613_v40  ;;  %v3614_v14 = vmul.f32 0.020408163, %v3505_v61  ;;  %v9046_v40 = vld [vmem:[#allocation76_spill] sm:$0xff] }
 0x593   :  { %v4544_v37 = vadd.f32 %v9040_v48, %v4159_v3  ;;  %v4160_v1 = vmul.f32 %v9041_v51, %v3775_v29 }
 0x594   :  { %5807 = vrsqrt.f32 %v3668_v35  ;;  %v3669_v36 = vadd.f32 1e-05, %v3614_v14  ;;  %v9047_v14 = vld [vmem:[#allocation24_spill] sm:$0xff] }
 0x595   :  { %v4654_v38 = vadd.f32 %v4599_v60, %v4544_v37  ;;  %v4545_v63 = vadd.f32 %v9042_v53, %v4160_v1  ;;  %v4603_v1 = vld [vmem:[%s8864_s2 + $0xd0] sm:$0xff]  ;;  %v9049_v53 = vld [vmem:[#allocation25_spill] sm:$0xff] }
 0x596   :  { %v5804_v17 = vpop.eup %5803  ;;  %5809 = vrsqrt.f32 %v3669_v36 }
 0x597   :  { %4709 = vst.msk [vmem:[%s8865_s10 + $0xb0] sm:$0xff] %vm3090_vm4, %v4654_v38  ;;  %v4655_v2 = vadd.f32 %v4600_v19, %v4545_v63  ;;  %v3776_v8 = vmul.f32 %v5804_v17, %v8116_v26  ;;  %v3508_v9 = vpop.xlane.xlu1 %3507  ;;  %v9044_v26 = vld [vmem:[#allocation75_spill] sm:$0xff]  ;;  %v4604_v17 = vld [vmem:[%s8864_s2 + $0xd8] sm:$0xff] }
 0x598   :  { %v5806_v52 = vpop.eup %5805  ;;  %v3615_v56 = vmul.f32 0.020408163, %v3508_v9  ;;  %v9050_v9 = vld [vmem:[#allocation78_spill] sm:$0xff] }
 0x599   :  { %4710 = vst.msk [vmem:[%s8865_s10 + $0xb8] sm:$0xff] %vm3090_vm4, %v4655_v2  ;;  %v4161_v30 = vmul.f32 %v9043_v43, %v3776_v8  ;;  %v3777_v44 = vmul.f32 %v5806_v52, %v8119_v6  ;;  %v3511_v21 = vpop.xlane.xlu0 %3510 }
 0x59a   :  { %v3670_v20 = vadd.f32 1e-05, %v3615_v56  ;;  %v3616_v25 = vmul.f32 0.020408163, %v3511_v21 }
 0x59b   :  { %v4546_v50 = vadd.f32 %v9044_v26, %v4161_v30  ;;  %v4162_v15 = vmul.f32 %v9045_v62, %v3777_v44 }
 0x59c   :  { %5811 = vrsqrt.f32 %v3670_v20  ;;  %v3671_v39 = vadd.f32 1e-05, %v3616_v25 }
 0x59d   :  { %v4656_v34 = vadd.f32 %v4601_v0, %v4546_v50  ;;  %v4547_v6 = vadd.f32 %v9046_v40, %v4162_v15  ;;  %v9051_v0 = vld [vmem:[#allocation26_spill] sm:$0xff]  ;;  %v4606_v40 = vld [vmem:[%s8864_s2 + $0xe8] sm:$0xff] }
 0x59e   :  { %v5808_v27 = vpop.eup %5807  ;;  %5813 = vrsqrt.f32 %v3671_v39  ;;  %v4605_v50 = vld [vmem:[%s8864_s2 + $0xe0] sm:$0xff]  ;;  %v9053_v39 = vld [vmem:[#allocation27_spill] sm:$0xff] }
 0x59f   :  { %4711 = vst.msk [vmem:[%s8865_s10 + $0xc0] sm:$0xff] %vm3090_vm4, %v4656_v34  ;;  %v4657_v3 = vadd.f32 %v4602_v18, %v4547_v6  ;;  %v3778_v29 = vmul.f32 %v5808_v27, %v8128_v41  ;;  %v3514_v61 = vpop.xlane.xlu1 %3513  ;;  %v9048_v41 = vld [vmem:[#allocation77_spill] sm:$0xff] }
 0x5a0   :  { %v5810_v60 = vpop.eup %5809  ;;  %v3617_v35 = vmul.f32 0.020408163, %v3514_v61 }
 0x5a1   :  { %4712 = vst.msk [vmem:[%s8865_s10 + $0xc8] sm:$0xff] %vm3090_vm4, %v4657_v3  ;;  %v4163_v48 = vmul.f32 %v9047_v14, %v3778_v29  ;;  %v3779_v37 = vmul.f32 %v5810_v60, %v8131_v55  ;;  %v3517_v51 = vpop.xlane.xlu0 %3516  ;;  %v9054_v3 = vld [vmem:[#allocation80_spill] sm:$0xff] }
 0x5a2   :  { %v3672_v19 = vadd.f32 1e-05, %v3617_v35  ;;  %v3618_v36 = vmul.f32 0.020408163, %v3517_v51 }
 0x5a3   :  { %v4548_v38 = vadd.f32 %v9048_v41, %v4163_v48  ;;  %v4164_v63 = vmul.f32 %v9049_v53, %v3779_v37  ;;  %v9055_v37 = vld [vmem:[#allocation28_spill] sm:$0xff] }
 0x5a4   :  { %5815 = vrsqrt.f32 %v3672_v19  ;;  %v3673_v2 = vadd.f32 1e-05, %v3618_v36  ;;  %v4607_v36 = vld [vmem:[%s8864_s2 + $0xf0] sm:$0xff] }
 0x5a5   :  { %v4658_v8 = vadd.f32 %v4603_v1, %v4548_v38  ;;  %v4549_v55 = vadd.f32 %v9050_v9, %v4164_v63  ;;  %v9057_v63 = vld [vmem:[#allocation29_spill] sm:$0xff] }
 0x5a6   :  { %v5812_v52 = vpop.eup %5811  ;;  %5817 = vrsqrt.f32 %v3673_v2  ;;  %v4608_v2 = vld [vmem:[%s8864_s2 + $0xf8] sm:$0xff] }
 0x5a7   :  { %4713 = vst.msk [vmem:[%s8865_s10 + $0xd0] sm:$0xff] %vm3090_vm4, %v4658_v8  ;;  %v4659_v56 = vadd.f32 %v4604_v17, %v4549_v55  ;;  %v3780_v43 = vmul.f32 %v5812_v52, %v8140_v5  ;;  %v3520_v30 = vpop.xlane.xlu1 %3519  ;;  %v9052_v5 = vld [vmem:[#allocation79_spill] sm:$0xff]  ;;  %v9058_v55 = vld [vmem:[#allocation82_spill] sm:$0xff] }
 0x5a8   :  { %v5814_v44 = vpop.eup %5813  ;;  %v3619_v21 = vmul.f32 0.020408163, %v3520_v30 }
 0x5a9   :  { %4714 = vst.msk [vmem:[%s8865_s10 + $0xd8] sm:$0xff] %vm3090_vm4, %v4659_v56  ;;  %v4165_v20 = vmul.f32 %v9051_v0, %v3780_v43  ;;  %v3781_v25 = vmul.f32 %v5814_v44, %v8143_v10  ;;  %v3523_v26 = vpop.xlane.xlu0 %3522  ;;  %v9059_v0 = vld [vmem:[#allocation30_spill] sm:$0xff] }
 0x5aa   :  { %v3674_v62 = vadd.f32 1e-05, %v3619_v21  ;;  %v3620_v15 = vmul.f32 0.020408163, %v3523_v26 }
 0x5ab   :  { %v4550_v18 = vadd.f32 %v9052_v5, %v4165_v20  ;;  %v4166_v34 = vmul.f32 %v9053_v39, %v3781_v25 }
 0x5ac   :  { %5819 = vrsqrt.f32 %v3674_v62  ;;  %v3675_v6 = vadd.f32 1e-05, %v3620_v15 }
 0x5ad   :  { %v4660_v27 = vadd.f32 %v4605_v50, %v4550_v18  ;;  %v4551_v10 = vadd.f32 %v9054_v3, %v4166_v34  ;;  %v4609_v50 = vld [vmem:[%s8864_s2 + $0x100] sm:$0xff]  ;;  %v9061_v18 = vld [vmem:[#allocation31_spill] sm:$0xff] }
 0x5ae   :  { %v5816_v29 = vpop.eup %5815  ;;  %5821 = vrsqrt.f32 %v3675_v6  ;;  %v4610_v34 = vld [vmem:[%s8864_s2 + $0x108] sm:$0xff] }
 0x5af   :  { %4715 = vst.msk [vmem:[%s8865_s10 + $0xe0] sm:$0xff] %vm3090_vm4, %v4660_v27  ;;  %v4661_v61 = vadd.f32 %v4606_v40, %v4551_v10  ;;  %v3782_v60 = vmul.f32 %v5816_v29, %v8152_v12  ;;  %v3526_v35 = vpop.xlane.xlu1 %3525  ;;  %v9056_v12 = vld [vmem:[#allocation81_spill] sm:$0xff]  ;;  %v9062_v27 = vld [vmem:[#allocation84_spill] sm:$0xff] }
 0x5b0   :  { %v5818_v14 = vpop.eup %5817  ;;  %v3621_v48 = vmul.f32 0.020408163, %v3526_v35 }
 0x5b1   :  { %4716 = vst.msk [vmem:[%s8865_s10 + $0xe8] sm:$0xff] %vm3090_vm4, %v4661_v61  ;;  %v4167_v51 = vmul.f32 %v9055_v37, %v3782_v60  ;;  %v3783_v1 = vmul.f32 %v5818_v14, %v8155_v58  ;;  %v3529_v19 = vpop.xlane.xlu0 %3528  ;;  %v9063_v60 = vld [vmem:[#allocation32_spill] sm:$0xff]  ;;  %v9064_v14 = vld [vmem:[#allocation113_spill] sm:$0xff] }
 0x5b2   :  { %v3676_v41 = vadd.f32 1e-05, %v3621_v48  ;;  %v3622_v38 = vmul.f32 0.020408163, %v3529_v19 }
 0x5b3   :  { %v4552_v53 = vadd.f32 %v9056_v12, %v4167_v51  ;;  %v4168_v17 = vmul.f32 %v9057_v63, %v3783_v1  ;;  %v4611_v51 = vld [vmem:[%s8864_s2 + $0x110] sm:$0xff] }
 0x5b4   :  { %5823 = vrsqrt.f32 %v3676_v41  ;;  %v3677_v8 = vadd.f32 1e-05, %v3622_v38 }
 0x5b5   :  { %v4662_v9 = vadd.f32 %v4607_v36, %v4552_v53  ;;  %v4553_v58 = vadd.f32 %v9058_v55, %v4168_v17  ;;  %v9065_v36 = vld [vmem:[#allocation85_spill] sm:$0xff] }
 0x5b6   :  { %v5820_v52 = vpop.eup %5819  ;;  %5825 = vrsqrt.f32 %v3677_v8  ;;  %v4612_v53 = vld [vmem:[%s8864_s2 + $0x118] sm:$0xff] }
 0x5b7   :  { %4717 = vst.msk [vmem:[%s8865_s10 + $0xf0] sm:$0xff] %vm3090_vm4, %v4662_v9  ;;  %v4663_v56 = vadd.f32 %v4608_v2, %v4553_v58  ;;  %v3784_v43 = vmul.f32 %v5820_v52, %v8164_v11  ;;  %v3532_v30 = vpop.xlane.xlu1 %3531  ;;  %v9060_v11 = vld [vmem:[#allocation83_spill] sm:$0xff]  ;;  %v9067_v2 = vld [vmem:[#allocation86_spill] sm:$0xff] }
 0x5b8   :  { %v5822_v44 = vpop.eup %5821  ;;  %v3623_v21 = vmul.f32 0.020408163, %v3532_v30  ;;  %v9068_v52 = vld [vmem:[#allocation114_spill] sm:$0xff] }
 0x5b9   :  { %4718 = vst.msk [vmem:[%s8865_s10 + $0xf8] sm:$0xff] %vm3090_vm4, %v4663_v56  ;;  %v4169_v20 = vmul.f32 %v9059_v0, %v3784_v43  ;;  %v3785_v25 = vmul.f32 %v5822_v44, %v8167_v33  ;;  %v3535_v26 = vpop.xlane.xlu0 %3534  ;;  %v9069_v30 = vld [vmem:[#allocation34_spill] sm:$0xff] }
 0x5ba   :  { %v3678_v62 = vadd.f32 1e-05, %v3623_v21  ;;  %v3624_v15 = vmul.f32 0.020408163, %v3535_v26  ;;  %v9070_v21 = vld [vmem:[#allocation115_spill] sm:$0xff] }
 0x5bb   :  { %v4554_v5 = vadd.f32 %v9060_v11, %v4169_v20  ;;  %v4170_v39 = vmul.f32 %v9061_v18, %v3785_v25  ;;  %v4613_v25 = vld [vmem:[%s8864_s2 + $0x120] sm:$0xff]  ;;  %v9072_v11 = vld [vmem:[#allocation35_spill] sm:$0xff] }
 0x5bc   :  { %5827 = vrsqrt.f32 %v3678_v62  ;;  %v3679_v40 = vadd.f32 1e-05, %v3624_v15  ;;  %v9071_v62 = vld [vmem:[#allocation87_spill] sm:$0xff] }
 0x5bd   :  { %v4664_v6 = vadd.f32 %v4609_v50, %v4554_v5  ;;  %v4555_v33 = vadd.f32 %v9062_v27, %v4170_v39  ;;  %v4614_v39 = vld [vmem:[%s8864_s2 + $0x128] sm:$0xff] }
 0x5be   :  { %v5824_v3 = vpop.eup %5823  ;;  %5829 = vrsqrt.f32 %v3679_v40 }
 0x5bf   :  { %4719 = vst.msk [vmem:[%s8865_s10 + $0x100] sm:$0xff] %vm3090_vm4, %v4664_v6  ;;  %v4665_v10 = vadd.f32 %v4610_v34, %v4555_v33  ;;  %v3786_v29 = vmul.f32 %v5824_v3, %v8176_v46  ;;  %v9066_v46 = vld [vmem:[#allocation33_spill] sm:$0xff]  ;;  %v9073_v6 = vld [vmem:[#allocation88_spill] sm:$0xff] }
 0x5c0   :  { %v5826_v61 = vpop.eup %5825 }
 0x5c1   :  { %4720 = vst.msk [vmem:[%s8865_s10 + $0x108] sm:$0xff] %vm3090_vm4, %v4665_v10  ;;  %v4171_v35 = vmul.f32 %v9063_v60, %v3786_v29  ;;  %v3787_v48 = vmul.f32 %v5826_v61, %v9064_v14  ;;  %v3541_v37 = vpop.xlane.xlu0 %3540 }
 0x5c2   :  { %v3626_v1 = vmul.f32 0.020408163, %v3541_v37  ;;  %v3538_v19 = vpop.xlane.xlu1 %3537  ;;  %v9074_v37 = vld [vmem:[#allocation37_spill] sm:$0xff] }
 0x5c3   :  { %v4556_v41 = vadd.f32 %v9065_v36, %v4171_v35  ;;  %v4172_v38 = vmul.f32 %v9066_v46, %v3787_v48  ;;  %v3625_v12 = vmul.f32 0.020408163, %v3538_v19  ;;  %v4616_v19 = vld [vmem:[%s8864_s2 + $0x138] sm:$0xff]  ;;  %v9075_v36 = vld [vmem:[#allocation36_spill] sm:$0xff] }
 0x5c4   :  { %v3681_v63 = vadd.f32 1e-05, %v3626_v1 }
 0x5c5   :  { %v4666_v17 = vadd.f32 %v4611_v51, %v4556_v41  ;;  %v4557_v8 = vadd.f32 %v9067_v2, %v4172_v38  ;;  %v3680_v9 = vadd.f32 1e-05, %v3625_v12  ;;  %v9076_v38 = vld [vmem:[#allocation90_spill] sm:$0xff] }
 0x5c6   :  { %v5828_v55 = vpop.eup %5827  ;;  %5831 = vrsqrt.f32 %v3681_v63 }
 0x5c7   :  { %4721 = vst.msk [vmem:[%s8865_s10 + $0x110] sm:$0xff] %vm3090_vm4, %v4666_v17  ;;  %v4667_v58 = vadd.f32 %v4612_v53, %v4557_v8  ;;  %v3788_v56 = vmul.f32 %v5828_v55, %v9068_v52  ;;  %5833 = vrsqrt.f32 %v3680_v9 }
 0x5c8   :  { %v5830_v43 = vpop.eup %5829 }
 0x5c9   :  { %4722 = vst.msk [vmem:[%s8865_s10 + $0x118] sm:$0xff] %vm3090_vm4, %v4667_v58  ;;  %v4173_v44 = vmul.f32 %v9069_v30, %v3788_v56  ;;  %v3789_v0 = vmul.f32 %v5830_v43, %v9070_v21  ;;  %v3547_v20 = vpop.xlane.xlu0 %3546  ;;  %v9078_v21 = vld [vmem:[#allocation39_spill] sm:$0xff] }
 0x5ca   :  { %v3628_v26 = vmul.f32 0.020408163, %v3547_v20  ;;  %v3544_v50 = vpop.xlane.xlu1 %3543  ;;  %v4618_v20 = vld [vmem:[%s8864_s2 + $0x148] sm:$0xff] }
 0x5cb   :  { %v4558_v15 = vadd.f32 %v9071_v62, %v4173_v44  ;;  %v4174_v5 = vmul.f32 %v9072_v11, %v3789_v0  ;;  %v3627_v18 = vmul.f32 0.020408163, %v3544_v50  ;;  %v9080_v50 = vld [vmem:[#allocation92_spill] sm:$0xff]  ;;  %v9081_v11 = vld [vmem:[#allocation91_spill] sm:$0xff] }
 0x5cc   :  { %v3683_v34 = vadd.f32 1e-05, %v3628_v26 }
 0x5cd   :  { %v4668_v40 = vadd.f32 %v4613_v25, %v4558_v15  ;;  %v4559_v27 = vadd.f32 %v9073_v6, %v4174_v5  ;;  %v3682_v33 = vadd.f32 1e-05, %v3627_v18  ;;  %v9079_v25 = vld [vmem:[#allocation38_spill] sm:$0xff] }
 0x5ce   :  { %5835 = vrsqrt.f32 %v3683_v34  ;;  %v4617_v15 = vld [vmem:[%s8864_s2 + $0x140] sm:$0xff] }
 0x5cf   :  { %4723 = vst.msk [vmem:[%s8865_s10 + $0x120] sm:$0xff] %vm3090_vm4, %v4668_v40  ;;  %v4669_v3 = vadd.f32 %v4614_v39, %v4559_v27  ;;  %5837 = vrsqrt.f32 %v3682_v33 }
 0x5d0   :  { %v5832_v10 = vpop.eup %5831 }
 0x5d1   :  { %v5834_v29 = vpop.eup %5833  ;;  %4724 = vst.msk [vmem:[%s8865_s10 + $0x128] sm:$0xff] %vm3090_vm4, %v4669_v3  ;;  %v3791_v61 = vmul.f32 %v5832_v10, %v8200_v32  ;;  %v3553_v60 = vpop.xlane.xlu0 %3552  ;;  %v4615_v32 = vld [vmem:[%s8864_s2 + $0x130] sm:$0xff] }
 0x5d2   :  { %v3790_v35 = vmul.f32 %v5834_v29, %v8203_v49  ;;  %v3630_v14 = vmul.f32 0.020408163, %v3553_v60  ;;  %v3550_v48 = vpop.xlane.xlu1 %3549  ;;  %v9077_v49 = vld [vmem:[#allocation89_spill] sm:$0xff] }
 0x5d3   :  { %v4176_v51 = vmul.f32 %v9074_v37, %v3791_v61  ;;  %v3629_v1 = vmul.f32 0.020408163, %v3550_v48  ;;  %v9082_v61 = vld [vmem:[#allocation41_spill] sm:$0xff] }
 0x5d4   :  { %v4175_v41 = vmul.f32 %v9075_v36, %v3790_v35  ;;  %v3685_v46 = vadd.f32 1e-05, %v3630_v14  ;;  %v4620_v35 = vld [vmem:[%s8864_s2 + $0x158] sm:$0xff]  ;;  %v9083_v14 = vld [vmem:[#allocation40_spill] sm:$0xff] }
 0x5d5   :  { %v4561_v12 = vadd.f32 %v9076_v38, %v4176_v51  ;;  %v3684_v53 = vadd.f32 1e-05, %v3629_v1  ;;  %v9084_v51 = vld [vmem:[#allocation94_spill] sm:$0xff]  ;;  %v9085_v36 = vld [vmem:[#allocation93_spill] sm:$0xff] }
 0x5d6   :  { %v4560_v63 = vadd.f32 %v9077_v49, %v4175_v41  ;;  %5839 = vrsqrt.f32 %v3685_v46  ;;  %v3556_v17 = vpop.xlane.xlu1 %3555  ;;  %v9086_v49 = vld [vmem:[#allocation42_spill] sm:$0xff] }
 0x5d7   :  { %v4671_v2 = vadd.f32 %v4616_v19, %v4561_v12  ;;  %5841 = vrsqrt.f32 %v3684_v53  ;;  %v3631_v8 = vmul.f32 0.020408163, %v3556_v17  ;;  %v4619_v19 = vld [vmem:[%s8864_s2 + $0x150] sm:$0xff]  ;;  %v4621_v17 = vld [vmem:[%s8864_s2 + $0x160] sm:$0xff] }
 0x5d8   :  { %v5836_v9 = vpop.eup %5835  ;;  %v4670_v55 = vadd.f32 %v4615_v32, %v4560_v63 }
 0x5d9   :  { %v5838_v58 = vpop.eup %5837  ;;  %4726 = vst.msk [vmem:[%s8865_s10 + $0x138] sm:$0xff] %vm3090_vm4, %v4671_v2  ;;  %v3793_v52 = vmul.f32 %v5836_v9, %v8212_v23  ;;  %v3686_v56 = vadd.f32 1e-05, %v3631_v8  ;;  %v3559_v43 = vpop.xlane.xlu0 %3558  ;;  %v9087_v9 = vld [vmem:[#allocation95_spill] sm:$0xff] }
 0x5da   :  { %4725 = vst.msk [vmem:[%s8865_s10 + $0x130] sm:$0xff] %vm3090_vm4, %v4670_v55  ;;  %v3792_v30 = vmul.f32 %v5838_v58, %v8216_v54  ;;  %v3632_v44 = vmul.f32 0.020408163, %v3559_v43 }
 0x5db   :  { %v4178_v0 = vmul.f32 %v9078_v21, %v3793_v52  ;;  %5843 = vrsqrt.f32 %v3686_v56  ;;  %v9088_v52 = vld [vmem:[#allocation43_spill] sm:$0xff]  ;;  %v9089_v21 = vld [vmem:[#allocation96_spill] sm:$0xff] }
 0x5dc   :  { %v4177_v26 = vmul.f32 %v9079_v25, %v3792_v30  ;;  %v3687_v23 = vadd.f32 1e-05, %v3632_v44  ;;  %v4622_v30 = vld [vmem:[%s8864_s2 + $0x168] sm:$0xff] }
 0x5dd   :  { %v4563_v62 = vadd.f32 %v9080_v50, %v4178_v0 }
 0x5de   :  { %v4562_v5 = vadd.f32 %v9081_v11, %v4177_v26  ;;  %5845 = vrsqrt.f32 %v3687_v23  ;;  %v3562_v54 = vpop.xlane.xlu1 %3561  ;;  %v4623_v11 = vld [vmem:[%s8864_s2 + $0x170] sm:$0xff] }
 0x5df   :  { %v4673_v18 = vadd.f32 %v4618_v20, %v4563_v62  ;;  %v3633_v39 = vmul.f32 0.020408163, %v3562_v54  ;;  %v9090_v62 = vld [vmem:[#allocation44_spill] sm:$0xff] }
 0x5e0   :  { %v5840_v34 = vpop.eup %5839  ;;  %v4672_v40 = vadd.f32 %v4617_v15, %v4562_v5 }
 0x5e1   :  { %v5842_v6 = vpop.eup %5841  ;;  %4728 = vst.msk [vmem:[%s8865_s10 + $0x148] sm:$0xff] %vm3090_vm4, %v4673_v18  ;;  %v3795_v27 = vmul.f32 %v5840_v34, %v8236_v42  ;;  %v3688_v33 = vadd.f32 1e-05, %v3633_v39  ;;  %v3565_v3 = vpop.xlane.xlu0 %3564  ;;  %v9091_v18 = vld [vmem:[#allocation97_spill] sm:$0xff] }
 0x5e2   :  { %4727 = vst.msk [vmem:[%s8865_s10 + $0x140] sm:$0xff] %vm3090_vm4, %v4672_v40  ;;  %v3794_v10 = vmul.f32 %v5842_v6, %v8244_v47  ;;  %v3634_v29 = vmul.f32 0.020408163, %v3565_v3  ;;  %v9092_v40 = vld [vmem:[#allocation45_spill] sm:$0xff] }
 0x5e3   :  { %v4180_v60 = vmul.f32 %v9082_v61, %v3795_v27  ;;  %5847 = vrsqrt.f32 %v3688_v33  ;;  %v4624_v33 = vld [vmem:[%s8864_s2 + $0x178] sm:$0xff] }
 0x5e4   :  { %v4179_v48 = vmul.f32 %v9083_v14, %v3794_v10  ;;  %v3689_v42 = vadd.f32 1e-05, %v3634_v29  ;;  %v9093_v29 = vld [vmem:[#allocation98_spill] sm:$0xff] }
 0x5e5   :  { %v5844_v37 = vpop.eup %5843  ;;  %v4565_v1 = vadd.f32 %v9084_v51, %v4180_v60  ;;  %v4625_v51 = vld [vmem:[%s8864_s2 + $0x180] sm:$0xff] }
 0x5e6   :  { %v4564_v47 = vadd.f32 %v9085_v36, %v4179_v48  ;;  %v3796_v41 = vmul.f32 %v5844_v37, %v8266_v22  ;;  %5849 = vrsqrt.f32 %v3689_v42  ;;  %v3568_v46 = vpop.xlane.xlu1 %3567  ;;  %v9094_v42 = vld [vmem:[#allocation46_spill] sm:$0xff]  ;;  %v9095_v36 = vld [vmem:[#allocation99_spill] sm:$0xff] }
 0x5e7   :  { %v4675_v38 = vadd.f32 %v4620_v35, %v4565_v1  ;;  %v3635_v12 = vmul.f32 0.020408163, %v3568_v46  ;;  %v9096_v46 = vld [vmem:[#allocation47_spill] sm:$0xff] }
 0x5e8   :  { %v5846_v32 = vpop.eup %5845  ;;  %v4674_v53 = vadd.f32 %v4619_v19, %v4564_v47  ;;  %v4181_v63 = vmul.f32 %v9086_v49, %v3796_v41 }
 0x5e9   :  { %4730 = vst.msk [vmem:[%s8865_s10 + $0x158] sm:$0xff] %vm3090_vm4, %v4675_v38  ;;  %v3797_v2 = vmul.f32 %v5846_v32, %v8273_v57  ;;  %v3690_v22 = vadd.f32 1e-05, %v3635_v12  ;;  %v3571_v8 = vpop.xlane.xlu0 %3570  ;;  %v4626_v32 = vld [vmem:[%s8864_s2 + $0x188] sm:$0xff] }
 0x5ea   :  { %4729 = vst.msk [vmem:[%s8865_s10 + $0x150] sm:$0xff] %vm3090_vm4, %v4674_v53  ;;  %v4566_v55 = vadd.f32 %v9087_v9, %v4181_v63  ;;  %v3636_v58 = vmul.f32 0.020408163, %v3571_v8  ;;  %v9097_v63 = vld [vmem:[#allocation100_spill] sm:$0xff] }
 0x5eb   :  { %v4182_v56 = vmul.f32 %v9088_v52, %v3797_v2  ;;  %5851 = vrsqrt.f32 %v3690_v22  ;;  %v4627_v52 = vld [vmem:[%s8864_s2 + $0x190] sm:$0xff] }
 0x5ec   :  { %v4676_v43 = vadd.f32 %v4621_v17, %v4566_v55  ;;  %v3691_v44 = vadd.f32 1e-05, %v3636_v58  ;;  %v9098_v55 = vld [vmem:[#allocation48_spill] sm:$0xff] }
 0x5ed   :  { %v5848_v57 = vpop.eup %5847  ;;  %v4567_v0 = vadd.f32 %v9089_v21, %v4182_v56 }
 0x5ee   :  { %4731 = vst.msk [vmem:[%s8865_s10 + $0x160] sm:$0xff] %vm3090_vm4, %v4676_v43  ;;  %v3798_v20 = vmul.f32 %v5848_v57, %v8299_v24  ;;  %5853 = vrsqrt.f32 %v3691_v44  ;;  %v3574_v25 = vpop.xlane.xlu1 %3573  ;;  %v9100_v44 = vld [vmem:[#allocation49_spill] sm:$0xff] }
 0x5ef   :  { %v4677_v26 = vadd.f32 %v4622_v30, %v4567_v0  ;;  %v3637_v23 = vmul.f32 0.020408163, %v3574_v25  ;;  %v4628_v0 = vld [vmem:[%s8864_s2 + $0x198] sm:$0xff]  ;;  %v9101_v25 = vld [vmem:[#allocation102_spill] sm:$0xff] }
 0x5f0   :  { %v5850_v50 = vpop.eup %5849  ;;  %v4183_v15 = vmul.f32 %v9090_v62, %v3798_v20  ;;  %v9102_v62 = vld [vmem:[#allocation50_spill] sm:$0xff] }
 0x5f1   :  { %4732 = vst.msk [vmem:[%s8865_s10 + $0x168] sm:$0xff] %vm3090_vm4, %v4677_v26  ;;  %v3799_v5 = vmul.f32 %v5850_v50, %v8305_v13  ;;  %v3692_v54 = vadd.f32 1e-05, %v3637_v23  ;;  %v3577_v24 = vpop.xlane.xlu0 %3576 }
 0x5f2   :  { %v4568_v39 = vadd.f32 %v9091_v18, %v4183_v15  ;;  %v3638_v34 = vmul.f32 0.020408163, %v3577_v24  ;;  %v9104_v18 = vld [vmem:[#allocation51_spill] sm:$0xff] }
 0x5f3   :  { %v4184_v6 = vmul.f32 %v9092_v40, %v3799_v5  ;;  %5855 = vrsqrt.f32 %v3692_v54  ;;  %v9103_v54 = vld [vmem:[#allocation103_spill] sm:$0xff] }
 0x5f4   :  { %v4678_v27 = vadd.f32 %v4623_v11, %v4568_v39  ;;  %v3693_v3 = vadd.f32 1e-05, %v3638_v34  ;;  %v4629_v11 = vld [vmem:[%s8864_s2 + $0x1a0] sm:$0xff]  ;;  %v4630_v34 = vld [vmem:[%s8864_s2 + $0x1a8] sm:$0xff] }
 0x5f5   :  { %v5852_v10 = vpop.eup %5851  ;;  %v4569_v61 = vadd.f32 %v9093_v29, %v4184_v6  ;;  %v4631_v29 = vld [vmem:[%s8864_s2 + $0x1b0] sm:$0xff] }
 0x5f6   :  { %4733 = vst.msk [vmem:[%s8865_s10 + $0x170] sm:$0xff] %vm3090_vm4, %v4678_v27  ;;  %v3800_v13 = vmul.f32 %v5852_v10, %v8326_v59  ;;  %5857 = vrsqrt.f32 %v3693_v3  ;;  %v3580_v60 = vpop.xlane.xlu1 %3579  ;;  %v9105_v3 = vld [vmem:[#allocation52_spill] sm:$0xff] }
 0x5f7   :  { %v4679_v35 = vadd.f32 %v4624_v33, %v4569_v61  ;;  %v3639_v14 = vmul.f32 0.020408163, %v3580_v60 }
 0x5f8   :  { %v5854_v48 = vpop.eup %5853  ;;  %v4185_v37 = vmul.f32 %v9094_v42, %v3800_v13 }
 0x5f9   :  { %4734 = vst.msk [vmem:[%s8865_s10 + $0x178] sm:$0xff] %vm3090_vm4, %v4679_v35  ;;  %v3801_v1 = vmul.f32 %v5854_v48, %v8333_v28  ;;  %v3694_v19 = vadd.f32 1e-05, %v3639_v14  ;;  %v3583_v59 = vpop.xlane.xlu0 %3582 }
 0x5fa   :  { %v4570_v47 = vadd.f32 %v9095_v36, %v4185_v37  ;;  %v3640_v41 = vmul.f32 0.020408163, %v3583_v59 }
 0x5fb   :  { %v4186_v38 = vmul.f32 %v9096_v46, %v3801_v1  ;;  %5859 = vrsqrt.f32 %v3694_v19 }
 0x5fc   :  { %v4680_v12 = vadd.f32 %v4625_v51, %v4570_v47  ;;  %v3695_v53 = vadd.f32 1e-05, %v3640_v41 }
 0x5fd   :  { %v5856_v49 = vpop.eup %5855  ;;  %v4571_v17 = vadd.f32 %v9097_v63, %v4186_v38 }
 0x5fe   :  { %4735 = vst.msk [vmem:[%s8865_s10 + $0x180] sm:$0xff] %vm3090_vm4, %v4680_v12  ;;  %v3802_v28 = vmul.f32 %v5856_v49, %v8354_v45  ;;  %5861 = vrsqrt.f32 %v3695_v53  ;;  %v3586_v2 = vpop.xlane.xlu1 %3585  ;;  %v9099_v45 = vld [vmem:[#allocation101_spill] sm:$0xff] }
 0x5ff   :  { %v4681_v22 = vadd.f32 %v4626_v32, %v4571_v17  ;;  %v3641_v8 = vmul.f32 0.020408163, %v3586_v2 }
 0x600   :  { %v5858_v9 = vpop.eup %5857  ;;  %v4187_v58 = vmul.f32 %v9098_v55, %v3802_v28 }
 0x601   :  { %4736 = vst.msk [vmem:[%s8865_s10 + $0x188] sm:$0xff] %vm3090_vm4, %v4681_v22  ;;  %v3803_v56 = vmul.f32 %v5858_v9, %v8365_v31  ;;  %v3696_v43 = vadd.f32 1e-05, %v3641_v8  ;;  %v4520_v61 = vpop.permute.xlu0 %4519 }
 0x602   :  { %v4572_v30 = vadd.f32 %v9099_v45, %v4187_v58  ;;  %v4515_v40 = vpop.permute.xlu1 %4514 }
 0x603   :  { %v4188_v57 = vmul.f32 %v9100_v44, %v3803_v56  ;;  %5863 = vrsqrt.f32 %v3696_v43 }
 0x604   :  { %v4682_v21 = vadd.f32 %v4627_v52, %v4572_v30 }
 0x605   :  { %v5860_v20 = vpop.eup %5859  ;;  %v4573_v26 = vadd.f32 %v9101_v25, %v4188_v57 }
 0x606   :  { %4737 = vst.msk [vmem:[%s8865_s10 + $0x190] sm:$0xff] %vm3090_vm4, %v4682_v21  ;;  %v3804_v31 = vmul.f32 %v5860_v20, %v8386_v7 }
 0x607   :  { %v4683_v23 = vadd.f32 %v4628_v0, %v4573_v26 }
 0x608   :  { %v5862_v50 = vpop.eup %5861  ;;  %v4189_v15 = vmul.f32 %v9102_v62, %v3804_v31 }
 0x609   :  { %4738 = vst.msk [vmem:[%s8865_s10 + $0x198] sm:$0xff] %vm3090_vm4, %v4683_v23  ;;  %v3805_v5 = vmul.f32 %v5862_v50, %v8397_v4 }
 0x60a   :  { %v4574_v24 = vadd.f32 %v9103_v54, %v4189_v15 }
 0x60b   :  { %v4190_v39 = vmul.f32 %v9104_v18, %v3805_v5 }
 0x60c   :  { %v4684_v7 = vadd.f32 %v4629_v11, %v4574_v24 }
 0x60d   :  { %v5864_v6 = vpop.eup %5863  ;;  %v4575_v27 = vadd.f32 %v4515_v40, %v4190_v39 }
 0x60e   :  { %4739 = vst.msk [vmem:[%s8865_s10 + $0x1a0] sm:$0xff] %vm3090_vm4, %v4684_v7  ;;  %v3806_v33 = vmul.f32 %v5864_v6, %v8418_v16 }
 0x60f   :  { %v4685_v4 = vadd.f32 %v4630_v34, %v4575_v27 }
 0x610   :  { %v4191_v10 = vmul.f32 %v9105_v3, %v3806_v33 }
 0x611   :  { %4740 = vst.msk [vmem:[%s8865_s10 + $0x1a8] sm:$0xff] %vm3090_vm4, %v4685_v4 }
 0x612   :  { %v4576_v13 = vadd.f32 %v4520_v61, %v4191_v10 }
 0x614   :  { %v4686_v60 = vadd.f32 %v4631_v29, %v4576_v13 }
 0x616   :  { %4741 = vst.msk [vmem:[%s8865_s10 + $0x1b0] sm:$0xff] %vm3090_vm4, %v4686_v60 }

</bundles_post_ra>
